<compile_context>
chip_gen: v5e
topology: v5e:2x2
jax: 0.10.0
libtpu: 0.0.40
codegen_flags: <defaults>
</compile_context>

<pallas_src>
import math
import functools

import jax
import jax.numpy as jnp
from jax.experimental import pallas as pl
from jax.experimental.pallas import tpu as pltpu


LANE = 128  # channel padding target -> lane-dense vregs / unmasked stores


# ----------------------------------------------------------------------------
# Fused whole-model Pallas kernel
# ----------------------------------------------------------------------------
def _fused_model_kernel(dw_ref, x_ref, adj_ref, wlinT_ref, blin_ref,
                        wgcnT_ref, bgcn_ref, invnz_ref, o_ref,
                        x_scr, lin_scr, *,
                        save_weights, num_add_layers, num_layers, eps):
    """All 6 layers + final sum over dims in one kernel invocation.

    Shapes (CP = padded channels = 128):
      dw_ref    : (D,)            SMEM   normalized dimension weights
      x_ref     : (D*N, CP)       VMEM   stacked input features (dim-major)
      adj_ref   : (D, N, N)       VMEM   normalized adjacencies A_hat[d]
      wlinT_ref : (L, CP, CP)     VMEM   shared Linear weights (transposed)
      blin_ref  : (L, 1, CP)      VMEM
      wgcnT_ref : (L*D, CP, CP)   VMEM   per-dim GCN weights (transposed)
      bgcn_ref  : (L*D, 1, CP)    VMEM
      invnz_ref : (N, 1)          VMEM   1 / non_zero
      o_ref     : (N, CP)         VMEM   sum_d L6_out[d] + eps
      x_scr/lin_scr : (D*N, CP)   VMEM scratch, activations resident per layer
    """
    D, N, _ = adj_ref.shape

    x_scr[...] = x_ref[...]
    invnz = invnz_ref[...]                              # (N, 1)

    for layer in range(num_layers):
        # --- shared Linear, batched over all dims: one big MXU dot ----------
        lin_scr[...] = (jnp.dot(x_scr[...], wlinT_ref[layer],
                                preferred_element_type=jnp.float32)
                        + blin_ref[layer])

        if layer < num_add_layers:
            # MultiDimensionalGCNConv:
            #   fused = sum_d dw_d * (A_d @ (lin_d @ WgcnT_d) + b_d)
            #   conv_out_d = lin_d + save_weight * fused / non_zero
            #   layer_out_d = relu(lin_d + conv_out_d) = relu(2*lin_d + add)
            fused = None
            for d in range(D):
                li = lin_scr[pl.ds(d * N, N), :]
                xw = jnp.dot(li, wgcnT_ref[layer * D + d],
                             preferred_element_type=jnp.float32)
                g = (jnp.dot(adj_ref[d], xw,
                             preferred_element_type=jnp.float32)
                     + bgcn_ref[layer * D + d])
                term = dw_ref[d] * g
                fused = term if fused is None else fused + term
            add = (save_weights[layer] * fused) * invnz
            for d in range(D):
                li = lin_scr[pl.ds(d * N, N), :]
                x_scr[pl.ds(d * N, N), :] = jnp.maximum(li + (li + add), 0.0)
        else:
            # MultiDimensionalNormalGCNConv: out_d = relu(lin_d + GCN_d(lin_d))
            last = layer == num_layers - 1
            acc = None
            for d in range(D):
                li = lin_scr[pl.ds(d * N, N), :]
                xw = jnp.dot(li, wgcnT_ref[layer * D + d],
                             preferred_element_type=jnp.float32)
                g = (jnp.dot(adj_ref[d], xw,
                             preferred_element_type=jnp.float32)
                     + bgcn_ref[layer * D + d])
                r = jnp.maximum(li + g, 0.0)
                if last:
                    acc = r if acc is None else acc + r   # fused sum_dims
                else:
                    x_scr[pl.ds(d * N, N), :] = r
            if last:
                o_ref[...] = acc + eps


def fused_forward_pallas(dw, x_flat, adj, wlinT, blin, wgcnT, bgcn, invnz,
                         *, save_weights, num_add_layers, eps=1e-8):
    L, CP, _ = wlinT.shape
    D, N, _ = adj.shape
    kernel = functools.partial(_fused_model_kernel,
                               save_weights=tuple(float(s) for s in save_weights),
                               num_add_layers=num_add_layers,
                               num_layers=L, eps=float(eps))
    vmem = pl.BlockSpec(memory_space=pltpu.MemorySpace.VMEM)
    smem = pl.BlockSpec(memory_space=pltpu.MemorySpace.SMEM)
    return pl.pallas_call(
        kernel,
        out_shape=jax.ShapeDtypeStruct((N, CP), jnp.float32),
        in_specs=[smem, vmem, vmem, vmem, vmem, vmem, vmem, vmem],
        out_specs=vmem,
        scratch_shapes=[pltpu.VMEM((D * N, CP), jnp.float32),
                        pltpu.VMEM((D * N, CP), jnp.float32)],
    )(dw, x_flat, adj, wlinT, blin, wgcnT, bgcn, invnz)


# ----------------------------------------------------------------------------
# Glue: GCN normalized adjacency (torch_geometric gcn_norm semantics)
# ----------------------------------------------------------------------------
def build_norm_adj(src, dst, w, num_nodes):
    # A[i, j] = weight of edge j -> i, plus self-loops of weight 1.
    A = jnp.zeros((num_nodes, num_nodes), jnp.float32).at[dst, src].add(w)
    A = A + jnp.eye(num_nodes, dtype=jnp.float32)
    deg = A.sum(axis=1)
    dinv = jnp.where(deg > 0, 1.0 / jnp.sqrt(deg), 0.0)
    return dinv[:, None] * A * dinv[None, :]


# ----------------------------------------------------------------------------
# Parameters + packing (pad channels to LANE, transpose, stack all 6 layers)
# ----------------------------------------------------------------------------
def init_params(key, in_c, hid_c, out_c, num_dims):
    ks = iter(jax.random.split(key, 64))

    def linear(cin, cout):
        w = jax.random.normal(next(ks), (cout, cin), jnp.float32) * 0.1
        b = jax.random.normal(next(ks), (cout,), jnp.float32) * 0.1
        return w, b

    def gcn_stack(cin, cout):
        w = jax.random.normal(next(ks), (num_dims, cout, cin), jnp.float32) * 0.1
        b = jax.random.normal(next(ks), (num_dims, cout), jnp.float32) * 0.1
        return w, b

    p = {}
    p["L1_lin"] = linear(in_c, hid_c)
    p["L2_lin"] = linear(hid_c, out_c)
    for n in ("L3_lin", "L4_lin", "L5_lin", "L6_lin"):
        p[n] = linear(out_c, out_c)
    p["L1_gcn"] = gcn_stack(hid_c, hid_c)
    for n in ("L2_gcn", "L3_gcn", "L4_gcn", "L5_gcn", "L6_gcn"):
        p[n] = gcn_stack(out_c, out_c)
    p["dimension_weights"] = jnp.ones((num_dims,), jnp.float32)
    return p


_LAYERS = (("L1_lin", "L1_gcn"), ("L2_lin", "L2_gcn"), ("L3_lin", "L3_gcn"),
           ("L4_lin", "L4_gcn"), ("L5_lin", "L5_gcn"), ("L6_lin", "L6_gcn"))


def _pad2(w, rows, cols):
    out = jnp.zeros((rows, cols), jnp.float32)
    return out.at[:w.shape[0], :w.shape[1]].set(w.astype(jnp.float32))


def pack_weights(params, num_dims, cp):
    wlinT_l, blin_l, wgcnT_l, bgcn_l = [], [], [], []
    for name_lin, name_gcn in _LAYERS:
        wlin, blin = params[name_lin]          # (cout, cin), (cout,)
        wgcn, bgcn = params[name_gcn]          # (D, cout, cin), (D, cout)
        wlinT_l.append(_pad2(wlin.T, cp, cp))
        blin_l.append(_pad2(blin.reshape(1, -1), 1, cp))
        for d in range(num_dims):
            wgcnT_l.append(_pad2(wgcn[d].T, cp, cp))
            bgcn_l.append(_pad2(bgcn[d].reshape(1, -1), 1, cp))
    return (jnp.stack(wlinT_l), jnp.stack(blin_l),
            jnp.stack(wgcnT_l), jnp.stack(bgcn_l))


# ----------------------------------------------------------------------------
# Forward (wrapper) and pure-JAX reference
# ----------------------------------------------------------------------------
def forward(params, dims, adj, non_zero, out_c, cp=LANE):
    """dims: (D, N, in_c); adj: (D, N, N); non_zero: (N,). Returns (N, out_c)."""
    D, N, in_c = dims.shape
    dw = params["dimension_weights"]
    dw = (dw / dw.sum()).astype(jnp.float32)
    invnz = (1.0 / non_zero.astype(jnp.float32)).reshape(N, 1)
    wlinT, blin, wgcnT, bgcn = pack_weights(params, D, cp)
    x_flat = jnp.zeros((D * N, cp), jnp.float32).at[:, :in_c].set(
        dims.reshape(D * N, in_c).astype(jnp.float32))
    save_weights = (math.exp(-0.0), math.exp(-1.0), math.exp(-2.0),
                    0.0, 0.0, 0.0)   # L4..L6 unused
    out = fused_forward_pallas(dw, x_flat, adj, wlinT, blin, wgcnT, bgcn,
                               invnz, save_weights=save_weights,
                               num_add_layers=3, eps=1e-8)
    return out[:, :out_c]


def forward_reference(params, dims, adj, non_zero):
    D, N, _ = dims.shape
    dw = params["dimension_weights"]
    dw = dw / dw.sum()
    nz = non_zero.astype(jnp.float32).reshape(N, 1)
    x = [dims[d].astype(jnp.float32) for d in range(D)]
    specs = [(0, True), (1, True), (2, True), (None, False), (None, False),
             (None, False)]
    for (pos, is_add), (name_lin, name_gcn) in zip(specs, _LAYERS):
        wlin, blin = params[name_lin]
        wgcn, bgcn = params[name_gcn]
        lin = [xd @ wlin.T + blin for xd in x]
        gcn = [adj[d] @ (lin[d] @ wgcn[d].T) + bgcn[d] for d in range(D)]
        if is_add:
            fused = sum(dw[d] * gcn[d] for d in range(D))
            add = math.exp(-pos) * fused / nz
            x = [jax.nn.relu(lin[d] + (lin[d] + add)) for d in range(D)]
        else:
            x = [jax.nn.relu(lin[d] + gcn[d]) for d in range(D)]
    return sum(x) + 1e-8


# ----------------------------------------------------------------------------
if __name__ == "__main__":
    NUM_DIMS = 5
    N = 8            # nodes
    IN_C = 16
    HID_C = 32
    OUT_C = 32

    key = jax.random.PRNGKey(0)
    k_feat, k_w, k_nz, k_par = jax.random.split(key, 4)

    # 5 node-feature matrices (dim1..dim5)
    dims = jax.random.normal(k_feat, (NUM_DIMS, N, IN_C), jnp.float32)

    # deterministic edges per dimension: ring with stride (d+1), bidirectional
    adj_list = []
    wkeys = jax.random.split(k_w, NUM_DIMS)
    for d in range(NUM_DIMS):
        src = jnp.arange(N, dtype=jnp.int32)
        dst = (src + d + 1) % N
        s = jnp.concatenate([src, dst])
        t = jnp.concatenate([dst, src])
        w = jax.random.uniform(wkeys[d], (2 * N,), jnp.float32,
                               minval=0.5, maxval=1.5)
        adj_list.append(build_norm_adj(s, t, w, N))
    adj = jnp.stack(adj_list, axis=0)

    # non_zero: per-node positive divisor (count of active dimensions)
    non_zero = jax.random.randint(k_nz, (N,), 1, NUM_DIMS + 1).astype(jnp.float32)

    params = init_params(k_par, IN_C, HID_C, OUT_C, NUM_DIMS)

    fwd = jax.jit(functools.partial(forward, out_c=OUT_C))
    out = jax.block_until_ready(fwd(params, dims, adj, non_zero))

    ref = jax.block_until_ready(forward_reference(params, dims, adj, non_zero))

    assert out.shape == (N, OUT_C) and out.dtype == jnp.float32
    assert bool(jnp.all(jnp.isfinite(out)))
    assert bool(jnp.allclose(out, ref, rtol=2e-3, atol=2e-3))
    print("KERNEL_OK")
</pallas_src>

<mosaic_0001>
module attributes {stable_mosaic.version = 11 : i64} {
  func.func @_fused_model_kernel(%arg0: memref<5xf32, #tpu.memory_space<smem>>, %arg1: memref<40x128xf32, #tpu.memory_space<vmem>>, %arg2: memref<5x8x8xf32, #tpu.memory_space<vmem>>, %arg3: memref<6x128x128xf32, #tpu.memory_space<vmem>>, %arg4: memref<6x1x128xf32, #tpu.memory_space<vmem>>, %arg5: memref<30x128x128xf32, #tpu.memory_space<vmem>>, %arg6: memref<30x1x128xf32, #tpu.memory_space<vmem>>, %arg7: memref<8x1xf32, #tpu.memory_space<vmem>>, %arg8: memref<8x128xf32, #tpu.memory_space<vmem>>, %arg9: memref<40x128xf32, #tpu.memory_space<vmem>>, %arg10: memref<40x128xf32, #tpu.memory_space<vmem>>) attributes {dimension_semantics = [], scalar_prefetch = 0 : i64, scratch_operands = 2 : i64, tpu.core_type = #tpu.core_type<tc>} {
    %c0 = arith.constant 0 : index
    %c0_0 = arith.constant 0 : index
    %0 = vector.load %arg1[%c0, %c0_0] : memref<40x128xf32, #tpu.memory_space<vmem>>, vector<40x128xf32>
    %c0_1 = arith.constant 0 : index
    %c0_2 = arith.constant 0 : index
    %1 = vector.load %arg9[%c0_1, %c0_2] : memref<40x128xf32, #tpu.memory_space<vmem>>, vector<40x128xf32>
    tpu.vector_store %arg9[%c0_1, %c0_2], %0 {strides = array<i32>} : memref<40x128xf32, #tpu.memory_space<vmem>>, vector<40x128xf32>,
    %c0_3 = arith.constant 0 : index
    %c0_4 = arith.constant 0 : index
    %2 = vector.load %arg7[%c0_3, %c0_4] : memref<8x1xf32, #tpu.memory_space<vmem>>, vector<8x1xf32>
    %c0_5 = arith.constant 0 : index
    %c0_6 = arith.constant 0 : index
    %3 = vector.load %arg9[%c0_5, %c0_6] : memref<40x128xf32, #tpu.memory_space<vmem>>, vector<40x128xf32>
    %c0_7 = arith.constant 0 : index
    %c0_8 = arith.constant 0 : index
    %c0_9 = arith.constant 0 : index
    %4 = vector.load %arg3[%c0_7, %c0_8, %c0_9] : memref<6x128x128xf32, #tpu.memory_space<vmem>>, vector<1x128x128xf32>
    %5 = vector.shape_cast %4 : vector<1x128x128xf32> to vector<128x128xf32>
    %cst = arith.constant dense<0.000000e+00> : vector<40x128xf32>
    %6 = tpu.matmul %3, %5, %cst {dimension_numbers = #tpu.dot_dimension_numbers<[1], [0], [0], [1], [0, 0, 1, 1], [], []>} : vector<40x128xf32>, vector<128x128xf32>, vector<40x128xf32> -> vector<40x128xf32>
    %c0_10 = arith.constant 0 : index
    %c0_11 = arith.constant 0 : index
    %c0_12 = arith.constant 0 : index
    %7 = vector.load %arg4[%c0_10, %c0_11, %c0_12] : memref<6x1x128xf32, #tpu.memory_space<vmem>>, vector<1x1x128xf32>
    %8 = vector.shape_cast %7 : vector<1x1x128xf32> to vector<1x128xf32>
    %9 = vector.broadcast %8 : vector<1x128xf32> to vector<40x128xf32>
    %10 = arith.addf %6, %9 : vector<40x128xf32>
    %c0_13 = arith.constant 0 : index
    %c0_14 = arith.constant 0 : index
    %11 = vector.load %arg10[%c0_13, %c0_14] : memref<40x128xf32, #tpu.memory_space<vmem>>, vector<40x128xf32>
    tpu.vector_store %arg10[%c0_13, %c0_14], %10 {strides = array<i32>} : memref<40x128xf32, #tpu.memory_space<vmem>>, vector<40x128xf32>,
    %c0_15 = arith.constant 0 : index
    %c0_16 = arith.constant 0 : index
    %12 = vector.load %arg10[%c0_15, %c0_16] : memref<40x128xf32, #tpu.memory_space<vmem>>, vector<8x128xf32>
    %c0_17 = arith.constant 0 : index
    %c0_18 = arith.constant 0 : index
    %c0_19 = arith.constant 0 : index
    %13 = vector.load %arg5[%c0_17, %c0_18, %c0_19] : memref<30x128x128xf32, #tpu.memory_space<vmem>>, vector<1x128x128xf32>
    %14 = vector.shape_cast %13 : vector<1x128x128xf32> to vector<128x128xf32>
    %cst_20 = arith.constant dense<0.000000e+00> : vector<8x128xf32>
    %15 = tpu.matmul %12, %14, %cst_20 {dimension_numbers = #tpu.dot_dimension_numbers<[1], [0], [0], [1], [0, 0, 1, 1], [], []>} : vector<8x128xf32>, vector<128x128xf32>, vector<8x128xf32> -> vector<8x128xf32>
    %c0_21 = arith.constant 0 : index
    %c0_22 = arith.constant 0 : index
    %c0_23 = arith.constant 0 : index
    %16 = vector.load %arg2[%c0_21, %c0_22, %c0_23] : memref<5x8x8xf32, #tpu.memory_space<vmem>>, vector<1x8x8xf32>
    %17 = vector.shape_cast %16 : vector<1x8x8xf32> to vector<8x8xf32>
    %cst_24 = arith.constant dense<0.000000e+00> : vector<8x128xf32>
    %18 = tpu.matmul %17, %15, %cst_24 {dimension_numbers = #tpu.dot_dimension_numbers<[1], [0], [0], [1], [0, 0, 1, 1], [], []>} : vector<8x8xf32>, vector<8x128xf32>, vector<8x128xf32> -> vector<8x128xf32>
    %c0_25 = arith.constant 0 : index
    %c0_26 = arith.constant 0 : index
    %c0_27 = arith.constant 0 : index
    %19 = vector.load %arg6[%c0_25, %c0_26, %c0_27] : memref<30x1x128xf32, #tpu.memory_space<vmem>>, vector<1x1x128xf32>
    %20 = vector.shape_cast %19 : vector<1x1x128xf32> to vector<1x128xf32>
    %21 = vector.broadcast %20 : vector<1x128xf32> to vector<8x128xf32>
    %22 = arith.addf %18, %21 : vector<8x128xf32>
    %c0_28 = arith.constant 0 : index
    %23 = memref.load %arg0[%c0_28] : memref<5xf32, #tpu.memory_space<smem>>
    %24 = vector.broadcast %23 : f32 to vector<8x128xf32>
    %25 = arith.mulf %24, %22 : vector<8x128xf32>
    %c8 = arith.constant 8 : index
    %c0_29 = arith.constant 0 : index
    %26 = vector.load %arg10[%c8, %c0_29] : memref<40x128xf32, #tpu.memory_space<vmem>>, vector<8x128xf32>
    %c1 = arith.constant 1 : index
    %c0_30 = arith.constant 0 : index
    %c0_31 = arith.constant 0 : index
    %27 = vector.load %arg5[%c1, %c0_30, %c0_31] : memref<30x128x128xf32, #tpu.memory_space<vmem>>, vector<1x128x128xf32>
    %28 = vector.shape_cast %27 : vector<1x128x128xf32> to vector<128x128xf32>
    %cst_32 = arith.constant dense<0.000000e+00> : vector<8x128xf32>
    %29 = tpu.matmul %26, %28, %cst_32 {dimension_numbers = #tpu.dot_dimension_numbers<[1], [0], [0], [1], [0, 0, 1, 1], [], []>} : vector<8x128xf32>, vector<128x128xf32>, vector<8x128xf32> -> vector<8x128xf32>
    %c1_33 = arith.constant 1 : index
    %c0_34 = arith.constant 0 : index
    %c0_35 = arith.constant 0 : index
    %30 = vector.load %arg2[%c1_33, %c0_34, %c0_35] : memref<5x8x8xf32, #tpu.memory_space<vmem>>, vector<1x8x8xf32>
    %31 = vector.shape_cast %30 : vector<1x8x8xf32> to vector<8x8xf32>
    %cst_36 = arith.constant dense<0.000000e+00> : vector<8x128xf32>
    %32 = tpu.matmul %31, %29, %cst_36 {dimension_numbers = #tpu.dot_dimension_numbers<[1], [0], [0], [1], [0, 0, 1, 1], [], []>} : vector<8x8xf32>, vector<8x128xf32>, vector<8x128xf32> -> vector<8x128xf32>
    %c1_37 = arith.constant 1 : index
    %c0_38 = arith.constant 0 : index
    %c0_39 = arith.constant 0 : index
    %33 = vector.load %arg6[%c1_37, %c0_38, %c0_39] : memref<30x1x128xf32, #tpu.memory_space<vmem>>, vector<1x1x128xf32>
    %34 = vector.shape_cast %33 : vector<1x1x128xf32> to vector<1x128xf32>
    %35 = vector.broadcast %34 : vector<1x128xf32> to vector<8x128xf32>
    %36 = arith.addf %32, %35 : vector<8x128xf32>
    %c1_40 = arith.constant 1 : index
    %37 = memref.load %arg0[%c1_40] : memref<5xf32, #tpu.memory_space<smem>>
    %38 = vector.broadcast %37 : f32 to vector<8x128xf32>
    %39 = arith.mulf %38, %36 : vector<8x128xf32>
    %40 = arith.addf %25, %39 : vector<8x128xf32>
    %c16 = arith.constant 16 : index
    %c0_41 = arith.constant 0 : index
    %41 = vector.load %arg10[%c16, %c0_41] : memref<40x128xf32, #tpu.memory_space<vmem>>, vector<8x128xf32>
    %c2 = arith.constant 2 : index
    %c0_42 = arith.constant 0 : index
    %c0_43 = arith.constant 0 : index
    %42 = vector.load %arg5[%c2, %c0_42, %c0_43] : memref<30x128x128xf32, #tpu.memory_space<vmem>>, vector<1x128x128xf32>
    %43 = vector.shape_cast %42 : vector<1x128x128xf32> to vector<128x128xf32>
    %cst_44 = arith.constant dense<0.000000e+00> : vector<8x128xf32>
    %44 = tpu.matmul %41, %43, %cst_44 {dimension_numbers = #tpu.dot_dimension_numbers<[1], [0], [0], [1], [0, 0, 1, 1], [], []>} : vector<8x128xf32>, vector<128x128xf32>, vector<8x128xf32> -> vector<8x128xf32>
    %c2_45 = arith.constant 2 : index
    %c0_46 = arith.constant 0 : index
    %c0_47 = arith.constant 0 : index
    %45 = vector.load %arg2[%c2_45, %c0_46, %c0_47] : memref<5x8x8xf32, #tpu.memory_space<vmem>>, vector<1x8x8xf32>
    %46 = vector.shape_cast %45 : vector<1x8x8xf32> to vector<8x8xf32>
    %cst_48 = arith.constant dense<0.000000e+00> : vector<8x128xf32>
    %47 = tpu.matmul %46, %44, %cst_48 {dimension_numbers = #tpu.dot_dimension_numbers<[1], [0], [0], [1], [0, 0, 1, 1], [], []>} : vector<8x8xf32>, vector<8x128xf32>, vector<8x128xf32> -> vector<8x128xf32>
    %c2_49 = arith.constant 2 : index
    %c0_50 = arith.constant 0 : index
    %c0_51 = arith.constant 0 : index
    %48 = vector.load %arg6[%c2_49, %c0_50, %c0_51] : memref<30x1x128xf32, #tpu.memory_space<vmem>>, vector<1x1x128xf32>
    %49 = vector.shape_cast %48 : vector<1x1x128xf32> to vector<1x128xf32>
    %50 = vector.broadcast %49 : vector<1x128xf32> to vector<8x128xf32>
    %51 = arith.addf %47, %50 : vector<8x128xf32>
    %c2_52 = arith.constant 2 : index
    %52 = memref.load %arg0[%c2_52] : memref<5xf32, #tpu.memory_space<smem>>
    %53 = vector.broadcast %52 : f32 to vector<8x128xf32>
    %54 = arith.mulf %53, %51 : vector<8x128xf32>
    %55 = arith.addf %40, %54 : vector<8x128xf32>
    %c24 = arith.constant 24 : index
    %c0_53 = arith.constant 0 : index
    %56 = vector.load %arg10[%c24, %c0_53] : memref<40x128xf32, #tpu.memory_space<vmem>>, vector<8x128xf32>
    %c3 = arith.constant 3 : index
    %c0_54 = arith.constant 0 : index
    %c0_55 = arith.constant 0 : index
    %57 = vector.load %arg5[%c3, %c0_54, %c0_55] : memref<30x128x128xf32, #tpu.memory_space<vmem>>, vector<1x128x128xf32>
    %58 = vector.shape_cast %57 : vector<1x128x128xf32> to vector<128x128xf32>
    %cst_56 = arith.constant dense<0.000000e+00> : vector<8x128xf32>
    %59 = tpu.matmul %56, %58, %cst_56 {dimension_numbers = #tpu.dot_dimension_numbers<[1], [0], [0], [1], [0, 0, 1, 1], [], []>} : vector<8x128xf32>, vector<128x128xf32>, vector<8x128xf32> -> vector<8x128xf32>
    %c3_57 = arith.constant 3 : index
    %c0_58 = arith.constant 0 : index
    %c0_59 = arith.constant 0 : index
    %60 = vector.load %arg2[%c3_57, %c0_58, %c0_59] : memref<5x8x8xf32, #tpu.memory_space<vmem>>, vector<1x8x8xf32>
    %61 = vector.shape_cast %60 : vector<1x8x8xf32> to vector<8x8xf32>
    %cst_60 = arith.constant dense<0.000000e+00> : vector<8x128xf32>
    %62 = tpu.matmul %61, %59, %cst_60 {dimension_numbers = #tpu.dot_dimension_numbers<[1], [0], [0], [1], [0, 0, 1, 1], [], []>} : vector<8x8xf32>, vector<8x128xf32>, vector<8x128xf32> -> vector<8x128xf32>
    %c3_61 = arith.constant 3 : index
    %c0_62 = arith.constant 0 : index
    %c0_63 = arith.constant 0 : index
    %63 = vector.load %arg6[%c3_61, %c0_62, %c0_63] : memref<30x1x128xf32, #tpu.memory_space<vmem>>, vector<1x1x128xf32>
    %64 = vector.shape_cast %63 : vector<1x1x128xf32> to vector<1x128xf32>
    %65 = vector.broadcast %64 : vector<1x128xf32> to vector<8x128xf32>
    %66 = arith.addf %62, %65 : vector<8x128xf32>
    %c3_64 = arith.constant 3 : index
    %67 = memref.load %arg0[%c3_64] : memref<5xf32, #tpu.memory_space<smem>>
    %68 = vector.broadcast %67 : f32 to vector<8x128xf32>
    %69 = arith.mulf %68, %66 : vector<8x128xf32>
    %70 = arith.addf %55, %69 : vector<8x128xf32>
    %c32 = arith.constant 32 : index
    %c0_65 = arith.constant 0 : index
    %71 = vector.load %arg10[%c32, %c0_65] : memref<40x128xf32, #tpu.memory_space<vmem>>, vector<8x128xf32>
    %c4 = arith.constant 4 : index
    %c0_66 = arith.constant 0 : index
    %c0_67 = arith.constant 0 : index
    %72 = vector.load %arg5[%c4, %c0_66, %c0_67] : memref<30x128x128xf32, #tpu.memory_space<vmem>>, vector<1x128x128xf32>
    %73 = vector.shape_cast %72 : vector<1x128x128xf32> to vector<128x128xf32>
    %cst_68 = arith.constant dense<0.000000e+00> : vector<8x128xf32>
    %74 = tpu.matmul %71, %73, %cst_68 {dimension_numbers = #tpu.dot_dimension_numbers<[1], [0], [0], [1], [0, 0, 1, 1], [], []>} : vector<8x128xf32>, vector<128x128xf32>, vector<8x128xf32> -> vector<8x128xf32>
    %c4_69 = arith.constant 4 : index
    %c0_70 = arith.constant 0 : index
    %c0_71 = arith.constant 0 : index
    %75 = vector.load %arg2[%c4_69, %c0_70, %c0_71] : memref<5x8x8xf32, #tpu.memory_space<vmem>>, vector<1x8x8xf32>
    %76 = vector.shape_cast %75 : vector<1x8x8xf32> to vector<8x8xf32>
    %cst_72 = arith.constant dense<0.000000e+00> : vector<8x128xf32>
    %77 = tpu.matmul %76, %74, %cst_72 {dimension_numbers = #tpu.dot_dimension_numbers<[1], [0], [0], [1], [0, 0, 1, 1], [], []>} : vector<8x8xf32>, vector<8x128xf32>, vector<8x128xf32> -> vector<8x128xf32>
    %c4_73 = arith.constant 4 : index
    %c0_74 = arith.constant 0 : index
    %c0_75 = arith.constant 0 : index
    %78 = vector.load %arg6[%c4_73, %c0_74, %c0_75] : memref<30x1x128xf32, #tpu.memory_space<vmem>>, vector<1x1x128xf32>
    %79 = vector.shape_cast %78 : vector<1x1x128xf32> to vector<1x128xf32>
    %80 = vector.broadcast %79 : vector<1x128xf32> to vector<8x128xf32>
    %81 = arith.addf %77, %80 : vector<8x128xf32>
    %c4_76 = arith.constant 4 : index
    %82 = memref.load %arg0[%c4_76] : memref<5xf32, #tpu.memory_space<smem>>
    %83 = vector.broadcast %82 : f32 to vector<8x128xf32>
    %84 = arith.mulf %83, %81 : vector<8x128xf32>
    %85 = arith.addf %70, %84 : vector<8x128xf32>
    %cst_77 = arith.constant 1.000000e+00 : f32
    %86 = vector.broadcast %cst_77 : f32 to vector<8x128xf32>
    %87 = arith.mulf %86, %85 : vector<8x128xf32>
    %88 = vector.broadcast %2 : vector<8x1xf32> to vector<8x128xf32>
    %89 = arith.mulf %87, %88 : vector<8x128xf32>
    %c0_78 = arith.constant 0 : index
    %c0_79 = arith.constant 0 : index
    %90 = vector.load %arg10[%c0_78, %c0_79] : memref<40x128xf32, #tpu.memory_space<vmem>>, vector<8x128xf32>
    %91 = arith.addf %90, %89 : vector<8x128xf32>
    %92 = arith.addf %90, %91 : vector<8x128xf32>
    %cst_80 = arith.constant 0.000000e+00 : f32
    %93 = vector.broadcast %cst_80 : f32 to vector<8x128xf32>
    %94 = arith.maximumf %92, %93 : vector<8x128xf32>
    %c0_81 = arith.constant 0 : index
    %c0_82 = arith.constant 0 : index
    %95 = vector.load %arg9[%c0_81, %c0_82] : memref<40x128xf32, #tpu.memory_space<vmem>>, vector<8x128xf32>
    tpu.vector_store %arg9[%c0_81, %c0_82], %94 {strides = array<i32>} : memref<40x128xf32, #tpu.memory_space<vmem>>, vector<8x128xf32>,
    %c8_83 = arith.constant 8 : index
    %c0_84 = arith.constant 0 : index
    %96 = vector.load %arg10[%c8_83, %c0_84] : memref<40x128xf32, #tpu.memory_space<vmem>>, vector<8x128xf32>
    %97 = arith.addf %96, %89 : vector<8x128xf32>
    %98 = arith.addf %96, %97 : vector<8x128xf32>
    %cst_85 = arith.constant 0.000000e+00 : f32
    %99 = vector.broadcast %cst_85 : f32 to vector<8x128xf32>
    %100 = arith.maximumf %98, %99 : vector<8x128xf32>
    %c8_86 = arith.constant 8 : index
    %c0_87 = arith.constant 0 : index
    %101 = vector.load %arg9[%c8_86, %c0_87] : memref<40x128xf32, #tpu.memory_space<vmem>>, vector<8x128xf32>
    tpu.vector_store %arg9[%c8_86, %c0_87], %100 {strides = array<i32>} : memref<40x128xf32, #tpu.memory_space<vmem>>, vector<8x128xf32>,
    %c16_88 = arith.constant 16 : index
    %c0_89 = arith.constant 0 : index
    %102 = vector.load %arg10[%c16_88, %c0_89] : memref<40x128xf32, #tpu.memory_space<vmem>>, vector<8x128xf32>
    %103 = arith.addf %102, %89 : vector<8x128xf32>
    %104 = arith.addf %102, %103 : vector<8x128xf32>
    %cst_90 = arith.constant 0.000000e+00 : f32
    %105 = vector.broadcast %cst_90 : f32 to vector<8x128xf32>
    %106 = arith.maximumf %104, %105 : vector<8x128xf32>
    %c16_91 = arith.constant 16 : index
    %c0_92 = arith.constant 0 : index
    %107 = vector.load %arg9[%c16_91, %c0_92] : memref<40x128xf32, #tpu.memory_space<vmem>>, vector<8x128xf32>
    tpu.vector_store %arg9[%c16_91, %c0_92], %106 {strides = array<i32>} : memref<40x128xf32, #tpu.memory_space<vmem>>, vector<8x128xf32>,
    %c24_93 = arith.constant 24 : index
    %c0_94 = arith.constant 0 : index
    %108 = vector.load %arg10[%c24_93, %c0_94] : memref<40x128xf32, #tpu.memory_space<vmem>>, vector<8x128xf32>
    %109 = arith.addf %108, %89 : vector<8x128xf32>
    %110 = arith.addf %108, %109 : vector<8x128xf32>
    %cst_95 = arith.constant 0.000000e+00 : f32
    %111 = vector.broadcast %cst_95 : f32 to vector<8x128xf32>
    %112 = arith.maximumf %110, %111 : vector<8x128xf32>
    %c24_96 = arith.constant 24 : index
    %c0_97 = arith.constant 0 : index
    %113 = vector.load %arg9[%c24_96, %c0_97] : memref<40x128xf32, #tpu.memory_space<vmem>>, vector<8x128xf32>
    tpu.vector_store %arg9[%c24_96, %c0_97], %112 {strides = array<i32>} : memref<40x128xf32, #tpu.memory_space<vmem>>, vector<8x128xf32>,
    %c32_98 = arith.constant 32 : index
    %c0_99 = arith.constant 0 : index
    %114 = vector.load %arg10[%c32_98, %c0_99] : memref<40x128xf32, #tpu.memory_space<vmem>>, vector<8x128xf32>
    %115 = arith.addf %114, %89 : vector<8x128xf32>
    %116 = arith.addf %114, %115 : vector<8x128xf32>
    %cst_100 = arith.constant 0.000000e+00 : f32
    %117 = vector.broadcast %cst_100 : f32 to vector<8x128xf32>
    %118 = arith.maximumf %116, %117 : vector<8x128xf32>
    %c32_101 = arith.constant 32 : index
    %c0_102 = arith.constant 0 : index
    %119 = vector.load %arg9[%c32_101, %c0_102] : memref<40x128xf32, #tpu.memory_space<vmem>>, vector<8x128xf32>
    tpu.vector_store %arg9[%c32_101, %c0_102], %118 {strides = array<i32>} : memref<40x128xf32, #tpu.memory_space<vmem>>, vector<8x128xf32>,
    %c0_103 = arith.constant 0 : index
    %c0_104 = arith.constant 0 : index
    %120 = vector.load %arg9[%c0_103, %c0_104] : memref<40x128xf32, #tpu.memory_space<vmem>>, vector<40x128xf32>
    %c1_105 = arith.constant 1 : index
    %c0_106 = arith.constant 0 : index
    %c0_107 = arith.constant 0 : index
    %121 = vector.load %arg3[%c1_105, %c0_106, %c0_107] : memref<6x128x128xf32, #tpu.memory_space<vmem>>, vector<1x128x128xf32>
    %122 = vector.shape_cast %121 : vector<1x128x128xf32> to vector<128x128xf32>
    %cst_108 = arith.constant dense<0.000000e+00> : vector<40x128xf32>
    %123 = tpu.matmul %120, %122, %cst_108 {dimension_numbers = #tpu.dot_dimension_numbers<[1], [0], [0], [1], [0, 0, 1, 1], [], []>} : vector<40x128xf32>, vector<128x128xf32>, vector<40x128xf32> -> vector<40x128xf32>
    %c1_109 = arith.constant 1 : index
    %c0_110 = arith.constant 0 : index
    %c0_111 = arith.constant 0 : index
    %124 = vector.load %arg4[%c1_109, %c0_110, %c0_111] : memref<6x1x128xf32, #tpu.memory_space<vmem>>, vector<1x1x128xf32>
    %125 = vector.shape_cast %124 : vector<1x1x128xf32> to vector<1x128xf32>
    %126 = vector.broadcast %125 : vector<1x128xf32> to vector<40x128xf32>
    %127 = arith.addf %123, %126 : vector<40x128xf32>
    %c0_112 = arith.constant 0 : index
    %c0_113 = arith.constant 0 : index
    %128 = vector.load %arg10[%c0_112, %c0_113] : memref<40x128xf32, #tpu.memory_space<vmem>>, vector<40x128xf32>
    tpu.vector_store %arg10[%c0_112, %c0_113], %127 {strides = array<i32>} : memref<40x128xf32, #tpu.memory_space<vmem>>, vector<40x128xf32>,
    %c0_114 = arith.constant 0 : index
    %c0_115 = arith.constant 0 : index
    %129 = vector.load %arg10[%c0_114, %c0_115] : memref<40x128xf32, #tpu.memory_space<vmem>>, vector<8x128xf32>
    %c5 = arith.constant 5 : index
    %c0_116 = arith.constant 0 : index
    %c0_117 = arith.constant 0 : index
    %130 = vector.load %arg5[%c5, %c0_116, %c0_117] : memref<30x128x128xf32, #tpu.memory_space<vmem>>, vector<1x128x128xf32>
    %131 = vector.shape_cast %130 : vector<1x128x128xf32> to vector<128x128xf32>
    %cst_118 = arith.constant dense<0.000000e+00> : vector<8x128xf32>
    %132 = tpu.matmul %129, %131, %cst_118 {dimension_numbers = #tpu.dot_dimension_numbers<[1], [0], [0], [1], [0, 0, 1, 1], [], []>} : vector<8x128xf32>, vector<128x128xf32>, vector<8x128xf32> -> vector<8x128xf32>
    %c0_119 = arith.constant 0 : index
    %c0_120 = arith.constant 0 : index
    %c0_121 = arith.constant 0 : index
    %133 = vector.load %arg2[%c0_119, %c0_120, %c0_121] : memref<5x8x8xf32, #tpu.memory_space<vmem>>, vector<1x8x8xf32>
    %134 = vector.shape_cast %133 : vector<1x8x8xf32> to vector<8x8xf32>
    %cst_122 = arith.constant dense<0.000000e+00> : vector<8x128xf32>
    %135 = tpu.matmul %134, %132, %cst_122 {dimension_numbers = #tpu.dot_dimension_numbers<[1], [0], [0], [1], [0, 0, 1, 1], [], []>} : vector<8x8xf32>, vector<8x128xf32>, vector<8x128xf32> -> vector<8x128xf32>
    %c5_123 = arith.constant 5 : index
    %c0_124 = arith.constant 0 : index
    %c0_125 = arith.constant 0 : index
    %136 = vector.load %arg6[%c5_123, %c0_124, %c0_125] : memref<30x1x128xf32, #tpu.memory_space<vmem>>, vector<1x1x128xf32>
    %137 = vector.shape_cast %136 : vector<1x1x128xf32> to vector<1x128xf32>
    %138 = vector.broadcast %137 : vector<1x128xf32> to vector<8x128xf32>
    %139 = arith.addf %135, %138 : vector<8x128xf32>
    %c0_126 = arith.constant 0 : index
    %140 = memref.load %arg0[%c0_126] : memref<5xf32, #tpu.memory_space<smem>>
    %141 = vector.broadcast %140 : f32 to vector<8x128xf32>
    %142 = arith.mulf %141, %139 : vector<8x128xf32>
    %c8_127 = arith.constant 8 : index
    %c0_128 = arith.constant 0 : index
    %143 = vector.load %arg10[%c8_127, %c0_128] : memref<40x128xf32, #tpu.memory_space<vmem>>, vector<8x128xf32>
    %c6 = arith.constant 6 : index
    %c0_129 = arith.constant 0 : index
    %c0_130 = arith.constant 0 : index
    %144 = vector.load %arg5[%c6, %c0_129, %c0_130] : memref<30x128x128xf32, #tpu.memory_space<vmem>>, vector<1x128x128xf32>
    %145 = vector.shape_cast %144 : vector<1x128x128xf32> to vector<128x128xf32>
    %cst_131 = arith.constant dense<0.000000e+00> : vector<8x128xf32>
    %146 = tpu.matmul %143, %145, %cst_131 {dimension_numbers = #tpu.dot_dimension_numbers<[1], [0], [0], [1], [0, 0, 1, 1], [], []>} : vector<8x128xf32>, vector<128x128xf32>, vector<8x128xf32> -> vector<8x128xf32>
    %c1_132 = arith.constant 1 : index
    %c0_133 = arith.constant 0 : index
    %c0_134 = arith.constant 0 : index
    %147 = vector.load %arg2[%c1_132, %c0_133, %c0_134] : memref<5x8x8xf32, #tpu.memory_space<vmem>>, vector<1x8x8xf32>
    %148 = vector.shape_cast %147 : vector<1x8x8xf32> to vector<8x8xf32>
    %cst_135 = arith.constant dense<0.000000e+00> : vector<8x128xf32>
    %149 = tpu.matmul %148, %146, %cst_135 {dimension_numbers = #tpu.dot_dimension_numbers<[1], [0], [0], [1], [0, 0, 1, 1], [], []>} : vector<8x8xf32>, vector<8x128xf32>, vector<8x128xf32> -> vector<8x128xf32>
    %c6_136 = arith.constant 6 : index
    %c0_137 = arith.constant 0 : index
    %c0_138 = arith.constant 0 : index
    %150 = vector.load %arg6[%c6_136, %c0_137, %c0_138] : memref<30x1x128xf32, #tpu.memory_space<vmem>>, vector<1x1x128xf32>
    %151 = vector.shape_cast %150 : vector<1x1x128xf32> to vector<1x128xf32>
    %152 = vector.broadcast %151 : vector<1x128xf32> to vector<8x128xf32>
    %153 = arith.addf %149, %152 : vector<8x128xf32>
    %c1_139 = arith.constant 1 : index
    %154 = memref.load %arg0[%c1_139] : memref<5xf32, #tpu.memory_space<smem>>
    %155 = vector.broadcast %154 : f32 to vector<8x128xf32>
    %156 = arith.mulf %155, %153 : vector<8x128xf32>
    %157 = arith.addf %142, %156 : vector<8x128xf32>
    %c16_140 = arith.constant 16 : index
    %c0_141 = arith.constant 0 : index
    %158 = vector.load %arg10[%c16_140, %c0_141] : memref<40x128xf32, #tpu.memory_space<vmem>>, vector<8x128xf32>
    %c7 = arith.constant 7 : index
    %c0_142 = arith.constant 0 : index
    %c0_143 = arith.constant 0 : index
    %159 = vector.load %arg5[%c7, %c0_142, %c0_143] : memref<30x128x128xf32, #tpu.memory_space<vmem>>, vector<1x128x128xf32>
    %160 = vector.shape_cast %159 : vector<1x128x128xf32> to vector<128x128xf32>
    %cst_144 = arith.constant dense<0.000000e+00> : vector<8x128xf32>
    %161 = tpu.matmul %158, %160, %cst_144 {dimension_numbers = #tpu.dot_dimension_numbers<[1], [0], [0], [1], [0, 0, 1, 1], [], []>} : vector<8x128xf32>, vector<128x128xf32>, vector<8x128xf32> -> vector<8x128xf32>
    %c2_145 = arith.constant 2 : index
    %c0_146 = arith.constant 0 : index
    %c0_147 = arith.constant 0 : index
    %162 = vector.load %arg2[%c2_145, %c0_146, %c0_147] : memref<5x8x8xf32, #tpu.memory_space<vmem>>, vector<1x8x8xf32>
    %163 = vector.shape_cast %162 : vector<1x8x8xf32> to vector<8x8xf32>
    %cst_148 = arith.constant dense<0.000000e+00> : vector<8x128xf32>
    %164 = tpu.matmul %163, %161, %cst_148 {dimension_numbers = #tpu.dot_dimension_numbers<[1], [0], [0], [1], [0, 0, 1, 1], [], []>} : vector<8x8xf32>, vector<8x128xf32>, vector<8x128xf32> -> vector<8x128xf32>
    %c7_149 = arith.constant 7 : index
    %c0_150 = arith.constant 0 : index
    %c0_151 = arith.constant 0 : index
    %165 = vector.load %arg6[%c7_149, %c0_150, %c0_151] : memref<30x1x128xf32, #tpu.memory_space<vmem>>, vector<1x1x128xf32>
    %166 = vector.shape_cast %165 : vector<1x1x128xf32> to vector<1x128xf32>
    %167 = vector.broadcast %166 : vector<1x128xf32> to vector<8x128xf32>
    %168 = arith.addf %164, %167 : vector<8x128xf32>
    %c2_152 = arith.constant 2 : index
    %169 = memref.load %arg0[%c2_152] : memref<5xf32, #tpu.memory_space<smem>>
    %170 = vector.broadcast %169 : f32 to vector<8x128xf32>
    %171 = arith.mulf %170, %168 : vector<8x128xf32>
    %172 = arith.addf %157, %171 : vector<8x128xf32>
    %c24_153 = arith.constant 24 : index
    %c0_154 = arith.constant 0 : index
    %173 = vector.load %arg10[%c24_153, %c0_154] : memref<40x128xf32, #tpu.memory_space<vmem>>, vector<8x128xf32>
    %c8_155 = arith.constant 8 : index
    %c0_156 = arith.constant 0 : index
    %c0_157 = arith.constant 0 : index
    %174 = vector.load %arg5[%c8_155, %c0_156, %c0_157] : memref<30x128x128xf32, #tpu.memory_space<vmem>>, vector<1x128x128xf32>
    %175 = vector.shape_cast %174 : vector<1x128x128xf32> to vector<128x128xf32>
    %cst_158 = arith.constant dense<0.000000e+00> : vector<8x128xf32>
    %176 = tpu.matmul %173, %175, %cst_158 {dimension_numbers = #tpu.dot_dimension_numbers<[1], [0], [0], [1], [0, 0, 1, 1], [], []>} : vector<8x128xf32>, vector<128x128xf32>, vector<8x128xf32> -> vector<8x128xf32>
    %c3_159 = arith.constant 3 : index
    %c0_160 = arith.constant 0 : index
    %c0_161 = arith.constant 0 : index
    %177 = vector.load %arg2[%c3_159, %c0_160, %c0_161] : memref<5x8x8xf32, #tpu.memory_space<vmem>>, vector<1x8x8xf32>
    %178 = vector.shape_cast %177 : vector<1x8x8xf32> to vector<8x8xf32>
    %cst_162 = arith.constant dense<0.000000e+00> : vector<8x128xf32>
    %179 = tpu.matmul %178, %176, %cst_162 {dimension_numbers = #tpu.dot_dimension_numbers<[1], [0], [0], [1], [0, 0, 1, 1], [], []>} : vector<8x8xf32>, vector<8x128xf32>, vector<8x128xf32> -> vector<8x128xf32>
    %c8_163 = arith.constant 8 : index
    %c0_164 = arith.constant 0 : index
    %c0_165 = arith.constant 0 : index
    %180 = vector.load %arg6[%c8_163, %c0_164, %c0_165] : memref<30x1x128xf32, #tpu.memory_space<vmem>>, vector<1x1x128xf32>
    %181 = vector.shape_cast %180 : vector<1x1x128xf32> to vector<1x128xf32>
    %182 = vector.broadcast %181 : vector<1x128xf32> to vector<8x128xf32>
    %183 = arith.addf %179, %182 : vector<8x128xf32>
    %c3_166 = arith.constant 3 : index
    %184 = memref.load %arg0[%c3_166] : memref<5xf32, #tpu.memory_space<smem>>
    %185 = vector.broadcast %184 : f32 to vector<8x128xf32>
    %186 = arith.mulf %185, %183 : vector<8x128xf32>
    %187 = arith.addf %172, %186 : vector<8x128xf32>
    %c32_167 = arith.constant 32 : index
    %c0_168 = arith.constant 0 : index
    %188 = vector.load %arg10[%c32_167, %c0_168] : memref<40x128xf32, #tpu.memory_space<vmem>>, vector<8x128xf32>
    %c9 = arith.constant 9 : index
    %c0_169 = arith.constant 0 : index
    %c0_170 = arith.constant 0 : index
    %189 = vector.load %arg5[%c9, %c0_169, %c0_170] : memref<30x128x128xf32, #tpu.memory_space<vmem>>, vector<1x128x128xf32>
    %190 = vector.shape_cast %189 : vector<1x128x128xf32> to vector<128x128xf32>
    %cst_171 = arith.constant dense<0.000000e+00> : vector<8x128xf32>
    %191 = tpu.matmul %188, %190, %cst_171 {dimension_numbers = #tpu.dot_dimension_numbers<[1], [0], [0], [1], [0, 0, 1, 1], [], []>} : vector<8x128xf32>, vector<128x128xf32>, vector<8x128xf32> -> vector<8x128xf32>
    %c4_172 = arith.constant 4 : index
    %c0_173 = arith.constant 0 : index
    %c0_174 = arith.constant 0 : index
    %192 = vector.load %arg2[%c4_172, %c0_173, %c0_174] : memref<5x8x8xf32, #tpu.memory_space<vmem>>, vector<1x8x8xf32>
    %193 = vector.shape_cast %192 : vector<1x8x8xf32> to vector<8x8xf32>
    %cst_175 = arith.constant dense<0.000000e+00> : vector<8x128xf32>
    %194 = tpu.matmul %193, %191, %cst_175 {dimension_numbers = #tpu.dot_dimension_numbers<[1], [0], [0], [1], [0, 0, 1, 1], [], []>} : vector<8x8xf32>, vector<8x128xf32>, vector<8x128xf32> -> vector<8x128xf32>
    %c9_176 = arith.constant 9 : index
    %c0_177 = arith.constant 0 : index
    %c0_178 = arith.constant 0 : index
    %195 = vector.load %arg6[%c9_176, %c0_177, %c0_178] : memref<30x1x128xf32, #tpu.memory_space<vmem>>, vector<1x1x128xf32>
    %196 = vector.shape_cast %195 : vector<1x1x128xf32> to vector<1x128xf32>
    %197 = vector.broadcast %196 : vector<1x128xf32> to vector<8x128xf32>
    %198 = arith.addf %194, %197 : vector<8x128xf32>
    %c4_179 = arith.constant 4 : index
    %199 = memref.load %arg0[%c4_179] : memref<5xf32, #tpu.memory_space<smem>>
    %200 = vector.broadcast %199 : f32 to vector<8x128xf32>
    %201 = arith.mulf %200, %198 : vector<8x128xf32>
    %202 = arith.addf %187, %201 : vector<8x128xf32>
    %cst_180 = arith.constant 0.36787945 : f32
    %203 = vector.broadcast %cst_180 : f32 to vector<8x128xf32>
    %204 = arith.mulf %203, %202 : vector<8x128xf32>
    %205 = vector.broadcast %2 : vector<8x1xf32> to vector<8x128xf32>
    %206 = arith.mulf %204, %205 : vector<8x128xf32>
    %c0_181 = arith.constant 0 : index
    %c0_182 = arith.constant 0 : index
    %207 = vector.load %arg10[%c0_181, %c0_182] : memref<40x128xf32, #tpu.memory_space<vmem>>, vector<8x128xf32>
    %208 = arith.addf %207, %206 : vector<8x128xf32>
    %209 = arith.addf %207, %208 : vector<8x128xf32>
    %cst_183 = arith.constant 0.000000e+00 : f32
    %210 = vector.broadcast %cst_183 : f32 to vector<8x128xf32>
    %211 = arith.maximumf %209, %210 : vector<8x128xf32>
    %c0_184 = arith.constant 0 : index
    %c0_185 = arith.constant 0 : index
    %212 = vector.load %arg9[%c0_184, %c0_185] : memref<40x128xf32, #tpu.memory_space<vmem>>, vector<8x128xf32>
    tpu.vector_store %arg9[%c0_184, %c0_185], %211 {strides = array<i32>} : memref<40x128xf32, #tpu.memory_space<vmem>>, vector<8x128xf32>,
    %c8_186 = arith.constant 8 : index
    %c0_187 = arith.constant 0 : index
    %213 = vector.load %arg10[%c8_186, %c0_187] : memref<40x128xf32, #tpu.memory_space<vmem>>, vector<8x128xf32>
    %214 = arith.addf %213, %206 : vector<8x128xf32>
    %215 = arith.addf %213, %214 : vector<8x128xf32>
    %cst_188 = arith.constant 0.000000e+00 : f32
    %216 = vector.broadcast %cst_188 : f32 to vector<8x128xf32>
    %217 = arith.maximumf %215, %216 : vector<8x128xf32>
    %c8_189 = arith.constant 8 : index
    %c0_190 = arith.constant 0 : index
    %218 = vector.load %arg9[%c8_189, %c0_190] : memref<40x128xf32, #tpu.memory_space<vmem>>, vector<8x128xf32>
    tpu.vector_store %arg9[%c8_189, %c0_190], %217 {strides = array<i32>} : memref<40x128xf32, #tpu.memory_space<vmem>>, vector<8x128xf32>,
    %c16_191 = arith.constant 16 : index
    %c0_192 = arith.constant 0 : index
    %219 = vector.load %arg10[%c16_191, %c0_192] : memref<40x128xf32, #tpu.memory_space<vmem>>, vector<8x128xf32>
    %220 = arith.addf %219, %206 : vector<8x128xf32>
    %221 = arith.addf %219, %220 : vector<8x128xf32>
    %cst_193 = arith.constant 0.000000e+00 : f32
    %222 = vector.broadcast %cst_193 : f32 to vector<8x128xf32>
    %223 = arith.maximumf %221, %222 : vector<8x128xf32>
    %c16_194 = arith.constant 16 : index
    %c0_195 = arith.constant 0 : index
    %224 = vector.load %arg9[%c16_194, %c0_195] : memref<40x128xf32, #tpu.memory_space<vmem>>, vector<8x128xf32>
    tpu.vector_store %arg9[%c16_194, %c0_195], %223 {strides = array<i32>} : memref<40x128xf32, #tpu.memory_space<vmem>>, vector<8x128xf32>,
    %c24_196 = arith.constant 24 : index
    %c0_197 = arith.constant 0 : index
    %225 = vector.load %arg10[%c24_196, %c0_197] : memref<40x128xf32, #tpu.memory_space<vmem>>, vector<8x128xf32>
    %226 = arith.addf %225, %206 : vector<8x128xf32>
    %227 = arith.addf %225, %226 : vector<8x128xf32>
    %cst_198 = arith.constant 0.000000e+00 : f32
    %228 = vector.broadcast %cst_198 : f32 to vector<8x128xf32>
    %229 = arith.maximumf %227, %228 : vector<8x128xf32>
    %c24_199 = arith.constant 24 : index
    %c0_200 = arith.constant 0 : index
    %230 = vector.load %arg9[%c24_199, %c0_200] : memref<40x128xf32, #tpu.memory_space<vmem>>, vector<8x128xf32>
    tpu.vector_store %arg9[%c24_199, %c0_200], %229 {strides = array<i32>} : memref<40x128xf32, #tpu.memory_space<vmem>>, vector<8x128xf32>,
    %c32_201 = arith.constant 32 : index
    %c0_202 = arith.constant 0 : index
    %231 = vector.load %arg10[%c32_201, %c0_202] : memref<40x128xf32, #tpu.memory_space<vmem>>, vector<8x128xf32>
    %232 = arith.addf %231, %206 : vector<8x128xf32>
    %233 = arith.addf %231, %232 : vector<8x128xf32>
    %cst_203 = arith.constant 0.000000e+00 : f32
    %234 = vector.broadcast %cst_203 : f32 to vector<8x128xf32>
    %235 = arith.maximumf %233, %234 : vector<8x128xf32>
    %c32_204 = arith.constant 32 : index
    %c0_205 = arith.constant 0 : index
    %236 = vector.load %arg9[%c32_204, %c0_205] : memref<40x128xf32, #tpu.memory_space<vmem>>, vector<8x128xf32>
    tpu.vector_store %arg9[%c32_204, %c0_205], %235 {strides = array<i32>} : memref<40x128xf32, #tpu.memory_space<vmem>>, vector<8x128xf32>,
    %c0_206 = arith.constant 0 : index
    %c0_207 = arith.constant 0 : index
    %237 = vector.load %arg9[%c0_206, %c0_207] : memref<40x128xf32, #tpu.memory_space<vmem>>, vector<40x128xf32>
    %c2_208 = arith.constant 2 : index
    %c0_209 = arith.constant 0 : index
    %c0_210 = arith.constant 0 : index
    %238 = vector.load %arg3[%c2_208, %c0_209, %c0_210] : memref<6x128x128xf32, #tpu.memory_space<vmem>>, vector<1x128x128xf32>
    %239 = vector.shape_cast %238 : vector<1x128x128xf32> to vector<128x128xf32>
    %cst_211 = arith.constant dense<0.000000e+00> : vector<40x128xf32>
    %240 = tpu.matmul %237, %239, %cst_211 {dimension_numbers = #tpu.dot_dimension_numbers<[1], [0], [0], [1], [0, 0, 1, 1], [], []>} : vector<40x128xf32>, vector<128x128xf32>, vector<40x128xf32> -> vector<40x128xf32>
    %c2_212 = arith.constant 2 : index
    %c0_213 = arith.constant 0 : index
    %c0_214 = arith.constant 0 : index
    %241 = vector.load %arg4[%c2_212, %c0_213, %c0_214] : memref<6x1x128xf32, #tpu.memory_space<vmem>>, vector<1x1x128xf32>
    %242 = vector.shape_cast %241 : vector<1x1x128xf32> to vector<1x128xf32>
    %243 = vector.broadcast %242 : vector<1x128xf32> to vector<40x128xf32>
    %244 = arith.addf %240, %243 : vector<40x128xf32>
    %c0_215 = arith.constant 0 : index
    %c0_216 = arith.constant 0 : index
    %245 = vector.load %arg10[%c0_215, %c0_216] : memref<40x128xf32, #tpu.memory_space<vmem>>, vector<40x128xf32>
    tpu.vector_store %arg10[%c0_215, %c0_216], %244 {strides = array<i32>} : memref<40x128xf32, #tpu.memory_space<vmem>>, vector<40x128xf32>,
    %c0_217 = arith.constant 0 : index
    %c0_218 = arith.constant 0 : index
    %246 = vector.load %arg10[%c0_217, %c0_218] : memref<40x128xf32, #tpu.memory_space<vmem>>, vector<8x128xf32>
    %c10 = arith.constant 10 : index
    %c0_219 = arith.constant 0 : index
    %c0_220 = arith.constant 0 : index
    %247 = vector.load %arg5[%c10, %c0_219, %c0_220] : memref<30x128x128xf32, #tpu.memory_space<vmem>>, vector<1x128x128xf32>
    %248 = vector.shape_cast %247 : vector<1x128x128xf32> to vector<128x128xf32>
    %cst_221 = arith.constant dense<0.000000e+00> : vector<8x128xf32>
    %249 = tpu.matmul %246, %248, %cst_221 {dimension_numbers = #tpu.dot_dimension_numbers<[1], [0], [0], [1], [0, 0, 1, 1], [], []>} : vector<8x128xf32>, vector<128x128xf32>, vector<8x128xf32> -> vector<8x128xf32>
    %c0_222 = arith.constant 0 : index
    %c0_223 = arith.constant 0 : index
    %c0_224 = arith.constant 0 : index
    %250 = vector.load %arg2[%c0_222, %c0_223, %c0_224] : memref<5x8x8xf32, #tpu.memory_space<vmem>>, vector<1x8x8xf32>
    %251 = vector.shape_cast %250 : vector<1x8x8xf32> to vector<8x8xf32>
    %cst_225 = arith.constant dense<0.000000e+00> : vector<8x128xf32>
    %252 = tpu.matmul %251, %249, %cst_225 {dimension_numbers = #tpu.dot_dimension_numbers<[1], [0], [0], [1], [0, 0, 1, 1], [], []>} : vector<8x8xf32>, vector<8x128xf32>, vector<8x128xf32> -> vector<8x128xf32>
    %c10_226 = arith.constant 10 : index
    %c0_227 = arith.constant 0 : index
    %c0_228 = arith.constant 0 : index
    %253 = vector.load %arg6[%c10_226, %c0_227, %c0_228] : memref<30x1x128xf32, #tpu.memory_space<vmem>>, vector<1x1x128xf32>
    %254 = vector.shape_cast %253 : vector<1x1x128xf32> to vector<1x128xf32>
    %255 = vector.broadcast %254 : vector<1x128xf32> to vector<8x128xf32>
    %256 = arith.addf %252, %255 : vector<8x128xf32>
    %c0_229 = arith.constant 0 : index
    %257 = memref.load %arg0[%c0_229] : memref<5xf32, #tpu.memory_space<smem>>
    %258 = vector.broadcast %257 : f32 to vector<8x128xf32>
    %259 = arith.mulf %258, %256 : vector<8x128xf32>
    %c8_230 = arith.constant 8 : index
    %c0_231 = arith.constant 0 : index
    %260 = vector.load %arg10[%c8_230, %c0_231] : memref<40x128xf32, #tpu.memory_space<vmem>>, vector<8x128xf32>
    %c11 = arith.constant 11 : index
    %c0_232 = arith.constant 0 : index
    %c0_233 = arith.constant 0 : index
    %261 = vector.load %arg5[%c11, %c0_232, %c0_233] : memref<30x128x128xf32, #tpu.memory_space<vmem>>, vector<1x128x128xf32>
    %262 = vector.shape_cast %261 : vector<1x128x128xf32> to vector<128x128xf32>
    %cst_234 = arith.constant dense<0.000000e+00> : vector<8x128xf32>
    %263 = tpu.matmul %260, %262, %cst_234 {dimension_numbers = #tpu.dot_dimension_numbers<[1], [0], [0], [1], [0, 0, 1, 1], [], []>} : vector<8x128xf32>, vector<128x128xf32>, vector<8x128xf32> -> vector<8x128xf32>
    %c1_235 = arith.constant 1 : index
    %c0_236 = arith.constant 0 : index
    %c0_237 = arith.constant 0 : index
    %264 = vector.load %arg2[%c1_235, %c0_236, %c0_237] : memref<5x8x8xf32, #tpu.memory_space<vmem>>, vector<1x8x8xf32>
    %265 = vector.shape_cast %264 : vector<1x8x8xf32> to vector<8x8xf32>
    %cst_238 = arith.constant dense<0.000000e+00> : vector<8x128xf32>
    %266 = tpu.matmul %265, %263, %cst_238 {dimension_numbers = #tpu.dot_dimension_numbers<[1], [0], [0], [1], [0, 0, 1, 1], [], []>} : vector<8x8xf32>, vector<8x128xf32>, vector<8x128xf32> -> vector<8x128xf32>
    %c11_239 = arith.constant 11 : index
    %c0_240 = arith.constant 0 : index
    %c0_241 = arith.constant 0 : index
    %267 = vector.load %arg6[%c11_239, %c0_240, %c0_241] : memref<30x1x128xf32, #tpu.memory_space<vmem>>, vector<1x1x128xf32>
    %268 = vector.shape_cast %267 : vector<1x1x128xf32> to vector<1x128xf32>
    %269 = vector.broadcast %268 : vector<1x128xf32> to vector<8x128xf32>
    %270 = arith.addf %266, %269 : vector<8x128xf32>
    %c1_242 = arith.constant 1 : index
    %271 = memref.load %arg0[%c1_242] : memref<5xf32, #tpu.memory_space<smem>>
    %272 = vector.broadcast %271 : f32 to vector<8x128xf32>
    %273 = arith.mulf %272, %270 : vector<8x128xf32>
    %274 = arith.addf %259, %273 : vector<8x128xf32>
    %c16_243 = arith.constant 16 : index
    %c0_244 = arith.constant 0 : index
    %275 = vector.load %arg10[%c16_243, %c0_244] : memref<40x128xf32, #tpu.memory_space<vmem>>, vector<8x128xf32>
    %c12 = arith.constant 12 : index
    %c0_245 = arith.constant 0 : index
    %c0_246 = arith.constant 0 : index
    %276 = vector.load %arg5[%c12, %c0_245, %c0_246] : memref<30x128x128xf32, #tpu.memory_space<vmem>>, vector<1x128x128xf32>
    %277 = vector.shape_cast %276 : vector<1x128x128xf32> to vector<128x128xf32>
    %cst_247 = arith.constant dense<0.000000e+00> : vector<8x128xf32>
    %278 = tpu.matmul %275, %277, %cst_247 {dimension_numbers = #tpu.dot_dimension_numbers<[1], [0], [0], [1], [0, 0, 1, 1], [], []>} : vector<8x128xf32>, vector<128x128xf32>, vector<8x128xf32> -> vector<8x128xf32>
    %c2_248 = arith.constant 2 : index
    %c0_249 = arith.constant 0 : index
    %c0_250 = arith.constant 0 : index
    %279 = vector.load %arg2[%c2_248, %c0_249, %c0_250] : memref<5x8x8xf32, #tpu.memory_space<vmem>>, vector<1x8x8xf32>
    %280 = vector.shape_cast %279 : vector<1x8x8xf32> to vector<8x8xf32>
    %cst_251 = arith.constant dense<0.000000e+00> : vector<8x128xf32>
    %281 = tpu.matmul %280, %278, %cst_251 {dimension_numbers = #tpu.dot_dimension_numbers<[1], [0], [0], [1], [0, 0, 1, 1], [], []>} : vector<8x8xf32>, vector<8x128xf32>, vector<8x128xf32> -> vector<8x128xf32>
    %c12_252 = arith.constant 12 : index
    %c0_253 = arith.constant 0 : index
    %c0_254 = arith.constant 0 : index
    %282 = vector.load %arg6[%c12_252, %c0_253, %c0_254] : memref<30x1x128xf32, #tpu.memory_space<vmem>>, vector<1x1x128xf32>
    %283 = vector.shape_cast %282 : vector<1x1x128xf32> to vector<1x128xf32>
    %284 = vector.broadcast %283 : vector<1x128xf32> to vector<8x128xf32>
    %285 = arith.addf %281, %284 : vector<8x128xf32>
    %c2_255 = arith.constant 2 : index
    %286 = memref.load %arg0[%c2_255] : memref<5xf32, #tpu.memory_space<smem>>
    %287 = vector.broadcast %286 : f32 to vector<8x128xf32>
    %288 = arith.mulf %287, %285 : vector<8x128xf32>
    %289 = arith.addf %274, %288 : vector<8x128xf32>
    %c24_256 = arith.constant 24 : index
    %c0_257 = arith.constant 0 : index
    %290 = vector.load %arg10[%c24_256, %c0_257] : memref<40x128xf32, #tpu.memory_space<vmem>>, vector<8x128xf32>
    %c13 = arith.constant 13 : index
    %c0_258 = arith.constant 0 : index
    %c0_259 = arith.constant 0 : index
    %291 = vector.load %arg5[%c13, %c0_258, %c0_259] : memref<30x128x128xf32, #tpu.memory_space<vmem>>, vector<1x128x128xf32>
    %292 = vector.shape_cast %291 : vector<1x128x128xf32> to vector<128x128xf32>
    %cst_260 = arith.constant dense<0.000000e+00> : vector<8x128xf32>
    %293 = tpu.matmul %290, %292, %cst_260 {dimension_numbers = #tpu.dot_dimension_numbers<[1], [0], [0], [1], [0, 0, 1, 1], [], []>} : vector<8x128xf32>, vector<128x128xf32>, vector<8x128xf32> -> vector<8x128xf32>
    %c3_261 = arith.constant 3 : index
    %c0_262 = arith.constant 0 : index
    %c0_263 = arith.constant 0 : index
    %294 = vector.load %arg2[%c3_261, %c0_262, %c0_263] : memref<5x8x8xf32, #tpu.memory_space<vmem>>, vector<1x8x8xf32>
    %295 = vector.shape_cast %294 : vector<1x8x8xf32> to vector<8x8xf32>
    %cst_264 = arith.constant dense<0.000000e+00> : vector<8x128xf32>
    %296 = tpu.matmul %295, %293, %cst_264 {dimension_numbers = #tpu.dot_dimension_numbers<[1], [0], [0], [1], [0, 0, 1, 1], [], []>} : vector<8x8xf32>, vector<8x128xf32>, vector<8x128xf32> -> vector<8x128xf32>
    %c13_265 = arith.constant 13 : index
    %c0_266 = arith.constant 0 : index
    %c0_267 = arith.constant 0 : index
    %297 = vector.load %arg6[%c13_265, %c0_266, %c0_267] : memref<30x1x128xf32, #tpu.memory_space<vmem>>, vector<1x1x128xf32>
    %298 = vector.shape_cast %297 : vector<1x1x128xf32> to vector<1x128xf32>
    %299 = vector.broadcast %298 : vector<1x128xf32> to vector<8x128xf32>
    %300 = arith.addf %296, %299 : vector<8x128xf32>
    %c3_268 = arith.constant 3 : index
    %301 = memref.load %arg0[%c3_268] : memref<5xf32, #tpu.memory_space<smem>>
    %302 = vector.broadcast %301 : f32 to vector<8x128xf32>
    %303 = arith.mulf %302, %300 : vector<8x128xf32>
    %304 = arith.addf %289, %303 : vector<8x128xf32>
    %c32_269 = arith.constant 32 : index
    %c0_270 = arith.constant 0 : index
    %305 = vector.load %arg10[%c32_269, %c0_270] : memref<40x128xf32, #tpu.memory_space<vmem>>, vector<8x128xf32>
    %c14 = arith.constant 14 : index
    %c0_271 = arith.constant 0 : index
    %c0_272 = arith.constant 0 : index
    %306 = vector.load %arg5[%c14, %c0_271, %c0_272] : memref<30x128x128xf32, #tpu.memory_space<vmem>>, vector<1x128x128xf32>
    %307 = vector.shape_cast %306 : vector<1x128x128xf32> to vector<128x128xf32>
    %cst_273 = arith.constant dense<0.000000e+00> : vector<8x128xf32>
    %308 = tpu.matmul %305, %307, %cst_273 {dimension_numbers = #tpu.dot_dimension_numbers<[1], [0], [0], [1], [0, 0, 1, 1], [], []>} : vector<8x128xf32>, vector<128x128xf32>, vector<8x128xf32> -> vector<8x128xf32>
    %c4_274 = arith.constant 4 : index
    %c0_275 = arith.constant 0 : index
    %c0_276 = arith.constant 0 : index
    %309 = vector.load %arg2[%c4_274, %c0_275, %c0_276] : memref<5x8x8xf32, #tpu.memory_space<vmem>>, vector<1x8x8xf32>
    %310 = vector.shape_cast %309 : vector<1x8x8xf32> to vector<8x8xf32>
    %cst_277 = arith.constant dense<0.000000e+00> : vector<8x128xf32>
    %311 = tpu.matmul %310, %308, %cst_277 {dimension_numbers = #tpu.dot_dimension_numbers<[1], [0], [0], [1], [0, 0, 1, 1], [], []>} : vector<8x8xf32>, vector<8x128xf32>, vector<8x128xf32> -> vector<8x128xf32>
    %c14_278 = arith.constant 14 : index
    %c0_279 = arith.constant 0 : index
    %c0_280 = arith.constant 0 : index
    %312 = vector.load %arg6[%c14_278, %c0_279, %c0_280] : memref<30x1x128xf32, #tpu.memory_space<vmem>>, vector<1x1x128xf32>
    %313 = vector.shape_cast %312 : vector<1x1x128xf32> to vector<1x128xf32>
    %314 = vector.broadcast %313 : vector<1x128xf32> to vector<8x128xf32>
    %315 = arith.addf %311, %314 : vector<8x128xf32>
    %c4_281 = arith.constant 4 : index
    %316 = memref.load %arg0[%c4_281] : memref<5xf32, #tpu.memory_space<smem>>
    %317 = vector.broadcast %316 : f32 to vector<8x128xf32>
    %318 = arith.mulf %317, %315 : vector<8x128xf32>
    %319 = arith.addf %304, %318 : vector<8x128xf32>
    %cst_282 = arith.constant 0.135335281 : f32
    %320 = vector.broadcast %cst_282 : f32 to vector<8x128xf32>
    %321 = arith.mulf %320, %319 : vector<8x128xf32>
    %322 = vector.broadcast %2 : vector<8x1xf32> to vector<8x128xf32>
    %323 = arith.mulf %321, %322 : vector<8x128xf32>
    %c0_283 = arith.constant 0 : index
    %c0_284 = arith.constant 0 : index
    %324 = vector.load %arg10[%c0_283, %c0_284] : memref<40x128xf32, #tpu.memory_space<vmem>>, vector<8x128xf32>
    %325 = arith.addf %324, %323 : vector<8x128xf32>
    %326 = arith.addf %324, %325 : vector<8x128xf32>
    %cst_285 = arith.constant 0.000000e+00 : f32
    %327 = vector.broadcast %cst_285 : f32 to vector<8x128xf32>
    %328 = arith.maximumf %326, %327 : vector<8x128xf32>
    %c0_286 = arith.constant 0 : index
    %c0_287 = arith.constant 0 : index
    %329 = vector.load %arg9[%c0_286, %c0_287] : memref<40x128xf32, #tpu.memory_space<vmem>>, vector<8x128xf32>
    tpu.vector_store %arg9[%c0_286, %c0_287], %328 {strides = array<i32>} : memref<40x128xf32, #tpu.memory_space<vmem>>, vector<8x128xf32>,
    %c8_288 = arith.constant 8 : index
    %c0_289 = arith.constant 0 : index
    %330 = vector.load %arg10[%c8_288, %c0_289] : memref<40x128xf32, #tpu.memory_space<vmem>>, vector<8x128xf32>
    %331 = arith.addf %330, %323 : vector<8x128xf32>
    %332 = arith.addf %330, %331 : vector<8x128xf32>
    %cst_290 = arith.constant 0.000000e+00 : f32
    %333 = vector.broadcast %cst_290 : f32 to vector<8x128xf32>
    %334 = arith.maximumf %332, %333 : vector<8x128xf32>
    %c8_291 = arith.constant 8 : index
    %c0_292 = arith.constant 0 : index
    %335 = vector.load %arg9[%c8_291, %c0_292] : memref<40x128xf32, #tpu.memory_space<vmem>>, vector<8x128xf32>
    tpu.vector_store %arg9[%c8_291, %c0_292], %334 {strides = array<i32>} : memref<40x128xf32, #tpu.memory_space<vmem>>, vector<8x128xf32>,
    %c16_293 = arith.constant 16 : index
    %c0_294 = arith.constant 0 : index
    %336 = vector.load %arg10[%c16_293, %c0_294] : memref<40x128xf32, #tpu.memory_space<vmem>>, vector<8x128xf32>
    %337 = arith.addf %336, %323 : vector<8x128xf32>
    %338 = arith.addf %336, %337 : vector<8x128xf32>
    %cst_295 = arith.constant 0.000000e+00 : f32
    %339 = vector.broadcast %cst_295 : f32 to vector<8x128xf32>
    %340 = arith.maximumf %338, %339 : vector<8x128xf32>
    %c16_296 = arith.constant 16 : index
    %c0_297 = arith.constant 0 : index
    %341 = vector.load %arg9[%c16_296, %c0_297] : memref<40x128xf32, #tpu.memory_space<vmem>>, vector<8x128xf32>
    tpu.vector_store %arg9[%c16_296, %c0_297], %340 {strides = array<i32>} : memref<40x128xf32, #tpu.memory_space<vmem>>, vector<8x128xf32>,
    %c24_298 = arith.constant 24 : index
    %c0_299 = arith.constant 0 : index
    %342 = vector.load %arg10[%c24_298, %c0_299] : memref<40x128xf32, #tpu.memory_space<vmem>>, vector<8x128xf32>
    %343 = arith.addf %342, %323 : vector<8x128xf32>
    %344 = arith.addf %342, %343 : vector<8x128xf32>
    %cst_300 = arith.constant 0.000000e+00 : f32
    %345 = vector.broadcast %cst_300 : f32 to vector<8x128xf32>
    %346 = arith.maximumf %344, %345 : vector<8x128xf32>
    %c24_301 = arith.constant 24 : index
    %c0_302 = arith.constant 0 : index
    %347 = vector.load %arg9[%c24_301, %c0_302] : memref<40x128xf32, #tpu.memory_space<vmem>>, vector<8x128xf32>
    tpu.vector_store %arg9[%c24_301, %c0_302], %346 {strides = array<i32>} : memref<40x128xf32, #tpu.memory_space<vmem>>, vector<8x128xf32>,
    %c32_303 = arith.constant 32 : index
    %c0_304 = arith.constant 0 : index
    %348 = vector.load %arg10[%c32_303, %c0_304] : memref<40x128xf32, #tpu.memory_space<vmem>>, vector<8x128xf32>
    %349 = arith.addf %348, %323 : vector<8x128xf32>
    %350 = arith.addf %348, %349 : vector<8x128xf32>
    %cst_305 = arith.constant 0.000000e+00 : f32
    %351 = vector.broadcast %cst_305 : f32 to vector<8x128xf32>
    %352 = arith.maximumf %350, %351 : vector<8x128xf32>
    %c32_306 = arith.constant 32 : index
    %c0_307 = arith.constant 0 : index
    %353 = vector.load %arg9[%c32_306, %c0_307] : memref<40x128xf32, #tpu.memory_space<vmem>>, vector<8x128xf32>
    tpu.vector_store %arg9[%c32_306, %c0_307], %352 {strides = array<i32>} : memref<40x128xf32, #tpu.memory_space<vmem>>, vector<8x128xf32>,
    %c0_308 = arith.constant 0 : index
    %c0_309 = arith.constant 0 : index
    %354 = vector.load %arg9[%c0_308, %c0_309] : memref<40x128xf32, #tpu.memory_space<vmem>>, vector<40x128xf32>
    %c3_310 = arith.constant 3 : index
    %c0_311 = arith.constant 0 : index
    %c0_312 = arith.constant 0 : index
    %355 = vector.load %arg3[%c3_310, %c0_311, %c0_312] : memref<6x128x128xf32, #tpu.memory_space<vmem>>, vector<1x128x128xf32>
    %356 = vector.shape_cast %355 : vector<1x128x128xf32> to vector<128x128xf32>
    %cst_313 = arith.constant dense<0.000000e+00> : vector<40x128xf32>
    %357 = tpu.matmul %354, %356, %cst_313 {dimension_numbers = #tpu.dot_dimension_numbers<[1], [0], [0], [1], [0, 0, 1, 1], [], []>} : vector<40x128xf32>, vector<128x128xf32>, vector<40x128xf32> -> vector<40x128xf32>
    %c3_314 = arith.constant 3 : index
    %c0_315 = arith.constant 0 : index
    %c0_316 = arith.constant 0 : index
    %358 = vector.load %arg4[%c3_314, %c0_315, %c0_316] : memref<6x1x128xf32, #tpu.memory_space<vmem>>, vector<1x1x128xf32>
    %359 = vector.shape_cast %358 : vector<1x1x128xf32> to vector<1x128xf32>
    %360 = vector.broadcast %359 : vector<1x128xf32> to vector<40x128xf32>
    %361 = arith.addf %357, %360 : vector<40x128xf32>
    %c0_317 = arith.constant 0 : index
    %c0_318 = arith.constant 0 : index
    %362 = vector.load %arg10[%c0_317, %c0_318] : memref<40x128xf32, #tpu.memory_space<vmem>>, vector<40x128xf32>
    tpu.vector_store %arg10[%c0_317, %c0_318], %361 {strides = array<i32>} : memref<40x128xf32, #tpu.memory_space<vmem>>, vector<40x128xf32>,
    %c0_319 = arith.constant 0 : index
    %c0_320 = arith.constant 0 : index
    %363 = vector.load %arg10[%c0_319, %c0_320] : memref<40x128xf32, #tpu.memory_space<vmem>>, vector<8x128xf32>
    %c15 = arith.constant 15 : index
    %c0_321 = arith.constant 0 : index
    %c0_322 = arith.constant 0 : index
    %364 = vector.load %arg5[%c15, %c0_321, %c0_322] : memref<30x128x128xf32, #tpu.memory_space<vmem>>, vector<1x128x128xf32>
    %365 = vector.shape_cast %364 : vector<1x128x128xf32> to vector<128x128xf32>
    %cst_323 = arith.constant dense<0.000000e+00> : vector<8x128xf32>
    %366 = tpu.matmul %363, %365, %cst_323 {dimension_numbers = #tpu.dot_dimension_numbers<[1], [0], [0], [1], [0, 0, 1, 1], [], []>} : vector<8x128xf32>, vector<128x128xf32>, vector<8x128xf32> -> vector<8x128xf32>
    %c0_324 = arith.constant 0 : index
    %c0_325 = arith.constant 0 : index
    %c0_326 = arith.constant 0 : index
    %367 = vector.load %arg2[%c0_324, %c0_325, %c0_326] : memref<5x8x8xf32, #tpu.memory_space<vmem>>, vector<1x8x8xf32>
    %368 = vector.shape_cast %367 : vector<1x8x8xf32> to vector<8x8xf32>
    %cst_327 = arith.constant dense<0.000000e+00> : vector<8x128xf32>
    %369 = tpu.matmul %368, %366, %cst_327 {dimension_numbers = #tpu.dot_dimension_numbers<[1], [0], [0], [1], [0, 0, 1, 1], [], []>} : vector<8x8xf32>, vector<8x128xf32>, vector<8x128xf32> -> vector<8x128xf32>
    %c15_328 = arith.constant 15 : index
    %c0_329 = arith.constant 0 : index
    %c0_330 = arith.constant 0 : index
    %370 = vector.load %arg6[%c15_328, %c0_329, %c0_330] : memref<30x1x128xf32, #tpu.memory_space<vmem>>, vector<1x1x128xf32>
    %371 = vector.shape_cast %370 : vector<1x1x128xf32> to vector<1x128xf32>
    %372 = vector.broadcast %371 : vector<1x128xf32> to vector<8x128xf32>
    %373 = arith.addf %369, %372 : vector<8x128xf32>
    %374 = arith.addf %363, %373 : vector<8x128xf32>
    %cst_331 = arith.constant 0.000000e+00 : f32
    %375 = vector.broadcast %cst_331 : f32 to vector<8x128xf32>
    %376 = arith.maximumf %374, %375 : vector<8x128xf32>
    %c0_332 = arith.constant 0 : index
    %c0_333 = arith.constant 0 : index
    %377 = vector.load %arg9[%c0_332, %c0_333] : memref<40x128xf32, #tpu.memory_space<vmem>>, vector<8x128xf32>
    tpu.vector_store %arg9[%c0_332, %c0_333], %376 {strides = array<i32>} : memref<40x128xf32, #tpu.memory_space<vmem>>, vector<8x128xf32>,
    %c8_334 = arith.constant 8 : index
    %c0_335 = arith.constant 0 : index
    %378 = vector.load %arg10[%c8_334, %c0_335] : memref<40x128xf32, #tpu.memory_space<vmem>>, vector<8x128xf32>
    %c16_336 = arith.constant 16 : index
    %c0_337 = arith.constant 0 : index
    %c0_338 = arith.constant 0 : index
    %379 = vector.load %arg5[%c16_336, %c0_337, %c0_338] : memref<30x128x128xf32, #tpu.memory_space<vmem>>, vector<1x128x128xf32>
    %380 = vector.shape_cast %379 : vector<1x128x128xf32> to vector<128x128xf32>
    %cst_339 = arith.constant dense<0.000000e+00> : vector<8x128xf32>
    %381 = tpu.matmul %378, %380, %cst_339 {dimension_numbers = #tpu.dot_dimension_numbers<[1], [0], [0], [1], [0, 0, 1, 1], [], []>} : vector<8x128xf32>, vector<128x128xf32>, vector<8x128xf32> -> vector<8x128xf32>
    %c1_340 = arith.constant 1 : index
    %c0_341 = arith.constant 0 : index
    %c0_342 = arith.constant 0 : index
    %382 = vector.load %arg2[%c1_340, %c0_341, %c0_342] : memref<5x8x8xf32, #tpu.memory_space<vmem>>, vector<1x8x8xf32>
    %383 = vector.shape_cast %382 : vector<1x8x8xf32> to vector<8x8xf32>
    %cst_343 = arith.constant dense<0.000000e+00> : vector<8x128xf32>
    %384 = tpu.matmul %383, %381, %cst_343 {dimension_numbers = #tpu.dot_dimension_numbers<[1], [0], [0], [1], [0, 0, 1, 1], [], []>} : vector<8x8xf32>, vector<8x128xf32>, vector<8x128xf32> -> vector<8x128xf32>
    %c16_344 = arith.constant 16 : index
    %c0_345 = arith.constant 0 : index
    %c0_346 = arith.constant 0 : index
    %385 = vector.load %arg6[%c16_344, %c0_345, %c0_346] : memref<30x1x128xf32, #tpu.memory_space<vmem>>, vector<1x1x128xf32>
    %386 = vector.shape_cast %385 : vector<1x1x128xf32> to vector<1x128xf32>
    %387 = vector.broadcast %386 : vector<1x128xf32> to vector<8x128xf32>
    %388 = arith.addf %384, %387 : vector<8x128xf32>
    %389 = arith.addf %378, %388 : vector<8x128xf32>
    %cst_347 = arith.constant 0.000000e+00 : f32
    %390 = vector.broadcast %cst_347 : f32 to vector<8x128xf32>
    %391 = arith.maximumf %389, %390 : vector<8x128xf32>
    %c8_348 = arith.constant 8 : index
    %c0_349 = arith.constant 0 : index
    %392 = vector.load %arg9[%c8_348, %c0_349] : memref<40x128xf32, #tpu.memory_space<vmem>>, vector<8x128xf32>
    tpu.vector_store %arg9[%c8_348, %c0_349], %391 {strides = array<i32>} : memref<40x128xf32, #tpu.memory_space<vmem>>, vector<8x128xf32>,
    %c16_350 = arith.constant 16 : index
    %c0_351 = arith.constant 0 : index
    %393 = vector.load %arg10[%c16_350, %c0_351] : memref<40x128xf32, #tpu.memory_space<vmem>>, vector<8x128xf32>
    %c17 = arith.constant 17 : index
    %c0_352 = arith.constant 0 : index
    %c0_353 = arith.constant 0 : index
    %394 = vector.load %arg5[%c17, %c0_352, %c0_353] : memref<30x128x128xf32, #tpu.memory_space<vmem>>, vector<1x128x128xf32>
    %395 = vector.shape_cast %394 : vector<1x128x128xf32> to vector<128x128xf32>
    %cst_354 = arith.constant dense<0.000000e+00> : vector<8x128xf32>
    %396 = tpu.matmul %393, %395, %cst_354 {dimension_numbers = #tpu.dot_dimension_numbers<[1], [0], [0], [1], [0, 0, 1, 1], [], []>} : vector<8x128xf32>, vector<128x128xf32>, vector<8x128xf32> -> vector<8x128xf32>
    %c2_355 = arith.constant 2 : index
    %c0_356 = arith.constant 0 : index
    %c0_357 = arith.constant 0 : index
    %397 = vector.load %arg2[%c2_355, %c0_356, %c0_357] : memref<5x8x8xf32, #tpu.memory_space<vmem>>, vector<1x8x8xf32>
    %398 = vector.shape_cast %397 : vector<1x8x8xf32> to vector<8x8xf32>
    %cst_358 = arith.constant dense<0.000000e+00> : vector<8x128xf32>
    %399 = tpu.matmul %398, %396, %cst_358 {dimension_numbers = #tpu.dot_dimension_numbers<[1], [0], [0], [1], [0, 0, 1, 1], [], []>} : vector<8x8xf32>, vector<8x128xf32>, vector<8x128xf32> -> vector<8x128xf32>
    %c17_359 = arith.constant 17 : index
    %c0_360 = arith.constant 0 : index
    %c0_361 = arith.constant 0 : index
    %400 = vector.load %arg6[%c17_359, %c0_360, %c0_361] : memref<30x1x128xf32, #tpu.memory_space<vmem>>, vector<1x1x128xf32>
    %401 = vector.shape_cast %400 : vector<1x1x128xf32> to vector<1x128xf32>
    %402 = vector.broadcast %401 : vector<1x128xf32> to vector<8x128xf32>
    %403 = arith.addf %399, %402 : vector<8x128xf32>
    %404 = arith.addf %393, %403 : vector<8x128xf32>
    %cst_362 = arith.constant 0.000000e+00 : f32
    %405 = vector.broadcast %cst_362 : f32 to vector<8x128xf32>
    %406 = arith.maximumf %404, %405 : vector<8x128xf32>
    %c16_363 = arith.constant 16 : index
    %c0_364 = arith.constant 0 : index
    %407 = vector.load %arg9[%c16_363, %c0_364] : memref<40x128xf32, #tpu.memory_space<vmem>>, vector<8x128xf32>
    tpu.vector_store %arg9[%c16_363, %c0_364], %406 {strides = array<i32>} : memref<40x128xf32, #tpu.memory_space<vmem>>, vector<8x128xf32>,
    %c24_365 = arith.constant 24 : index
    %c0_366 = arith.constant 0 : index
    %408 = vector.load %arg10[%c24_365, %c0_366] : memref<40x128xf32, #tpu.memory_space<vmem>>, vector<8x128xf32>
    %c18 = arith.constant 18 : index
    %c0_367 = arith.constant 0 : index
    %c0_368 = arith.constant 0 : index
    %409 = vector.load %arg5[%c18, %c0_367, %c0_368] : memref<30x128x128xf32, #tpu.memory_space<vmem>>, vector<1x128x128xf32>
    %410 = vector.shape_cast %409 : vector<1x128x128xf32> to vector<128x128xf32>
    %cst_369 = arith.constant dense<0.000000e+00> : vector<8x128xf32>
    %411 = tpu.matmul %408, %410, %cst_369 {dimension_numbers = #tpu.dot_dimension_numbers<[1], [0], [0], [1], [0, 0, 1, 1], [], []>} : vector<8x128xf32>, vector<128x128xf32>, vector<8x128xf32> -> vector<8x128xf32>
    %c3_370 = arith.constant 3 : index
    %c0_371 = arith.constant 0 : index
    %c0_372 = arith.constant 0 : index
    %412 = vector.load %arg2[%c3_370, %c0_371, %c0_372] : memref<5x8x8xf32, #tpu.memory_space<vmem>>, vector<1x8x8xf32>
    %413 = vector.shape_cast %412 : vector<1x8x8xf32> to vector<8x8xf32>
    %cst_373 = arith.constant dense<0.000000e+00> : vector<8x128xf32>
    %414 = tpu.matmul %413, %411, %cst_373 {dimension_numbers = #tpu.dot_dimension_numbers<[1], [0], [0], [1], [0, 0, 1, 1], [], []>} : vector<8x8xf32>, vector<8x128xf32>, vector<8x128xf32> -> vector<8x128xf32>
    %c18_374 = arith.constant 18 : index
    %c0_375 = arith.constant 0 : index
    %c0_376 = arith.constant 0 : index
    %415 = vector.load %arg6[%c18_374, %c0_375, %c0_376] : memref<30x1x128xf32, #tpu.memory_space<vmem>>, vector<1x1x128xf32>
    %416 = vector.shape_cast %415 : vector<1x1x128xf32> to vector<1x128xf32>
    %417 = vector.broadcast %416 : vector<1x128xf32> to vector<8x128xf32>
    %418 = arith.addf %414, %417 : vector<8x128xf32>
    %419 = arith.addf %408, %418 : vector<8x128xf32>
    %cst_377 = arith.constant 0.000000e+00 : f32
    %420 = vector.broadcast %cst_377 : f32 to vector<8x128xf32>
    %421 = arith.maximumf %419, %420 : vector<8x128xf32>
    %c24_378 = arith.constant 24 : index
    %c0_379 = arith.constant 0 : index
    %422 = vector.load %arg9[%c24_378, %c0_379] : memref<40x128xf32, #tpu.memory_space<vmem>>, vector<8x128xf32>
    tpu.vector_store %arg9[%c24_378, %c0_379], %421 {strides = array<i32>} : memref<40x128xf32, #tpu.memory_space<vmem>>, vector<8x128xf32>,
    %c32_380 = arith.constant 32 : index
    %c0_381 = arith.constant 0 : index
    %423 = vector.load %arg10[%c32_380, %c0_381] : memref<40x128xf32, #tpu.memory_space<vmem>>, vector<8x128xf32>
    %c19 = arith.constant 19 : index
    %c0_382 = arith.constant 0 : index
    %c0_383 = arith.constant 0 : index
    %424 = vector.load %arg5[%c19, %c0_382, %c0_383] : memref<30x128x128xf32, #tpu.memory_space<vmem>>, vector<1x128x128xf32>
    %425 = vector.shape_cast %424 : vector<1x128x128xf32> to vector<128x128xf32>
    %cst_384 = arith.constant dense<0.000000e+00> : vector<8x128xf32>
    %426 = tpu.matmul %423, %425, %cst_384 {dimension_numbers = #tpu.dot_dimension_numbers<[1], [0], [0], [1], [0, 0, 1, 1], [], []>} : vector<8x128xf32>, vector<128x128xf32>, vector<8x128xf32> -> vector<8x128xf32>
    %c4_385 = arith.constant 4 : index
    %c0_386 = arith.constant 0 : index
    %c0_387 = arith.constant 0 : index
    %427 = vector.load %arg2[%c4_385, %c0_386, %c0_387] : memref<5x8x8xf32, #tpu.memory_space<vmem>>, vector<1x8x8xf32>
    %428 = vector.shape_cast %427 : vector<1x8x8xf32> to vector<8x8xf32>
    %cst_388 = arith.constant dense<0.000000e+00> : vector<8x128xf32>
    %429 = tpu.matmul %428, %426, %cst_388 {dimension_numbers = #tpu.dot_dimension_numbers<[1], [0], [0], [1], [0, 0, 1, 1], [], []>} : vector<8x8xf32>, vector<8x128xf32>, vector<8x128xf32> -> vector<8x128xf32>
    %c19_389 = arith.constant 19 : index
    %c0_390 = arith.constant 0 : index
    %c0_391 = arith.constant 0 : index
    %430 = vector.load %arg6[%c19_389, %c0_390, %c0_391] : memref<30x1x128xf32, #tpu.memory_space<vmem>>, vector<1x1x128xf32>
    %431 = vector.shape_cast %430 : vector<1x1x128xf32> to vector<1x128xf32>
    %432 = vector.broadcast %431 : vector<1x128xf32> to vector<8x128xf32>
    %433 = arith.addf %429, %432 : vector<8x128xf32>
    %434 = arith.addf %423, %433 : vector<8x128xf32>
    %cst_392 = arith.constant 0.000000e+00 : f32
    %435 = vector.broadcast %cst_392 : f32 to vector<8x128xf32>
    %436 = arith.maximumf %434, %435 : vector<8x128xf32>
    %c32_393 = arith.constant 32 : index
    %c0_394 = arith.constant 0 : index
    %437 = vector.load %arg9[%c32_393, %c0_394] : memref<40x128xf32, #tpu.memory_space<vmem>>, vector<8x128xf32>
    tpu.vector_store %arg9[%c32_393, %c0_394], %436 {strides = array<i32>} : memref<40x128xf32, #tpu.memory_space<vmem>>, vector<8x128xf32>,
    %c0_395 = arith.constant 0 : index
    %c0_396 = arith.constant 0 : index
    %438 = vector.load %arg9[%c0_395, %c0_396] : memref<40x128xf32, #tpu.memory_space<vmem>>, vector<40x128xf32>
    %c4_397 = arith.constant 4 : index
    %c0_398 = arith.constant 0 : index
    %c0_399 = arith.constant 0 : index
    %439 = vector.load %arg3[%c4_397, %c0_398, %c0_399] : memref<6x128x128xf32, #tpu.memory_space<vmem>>, vector<1x128x128xf32>
    %440 = vector.shape_cast %439 : vector<1x128x128xf32> to vector<128x128xf32>
    %cst_400 = arith.constant dense<0.000000e+00> : vector<40x128xf32>
    %441 = tpu.matmul %438, %440, %cst_400 {dimension_numbers = #tpu.dot_dimension_numbers<[1], [0], [0], [1], [0, 0, 1, 1], [], []>} : vector<40x128xf32>, vector<128x128xf32>, vector<40x128xf32> -> vector<40x128xf32>
    %c4_401 = arith.constant 4 : index
    %c0_402 = arith.constant 0 : index
    %c0_403 = arith.constant 0 : index
    %442 = vector.load %arg4[%c4_401, %c0_402, %c0_403] : memref<6x1x128xf32, #tpu.memory_space<vmem>>, vector<1x1x128xf32>
    %443 = vector.shape_cast %442 : vector<1x1x128xf32> to vector<1x128xf32>
    %444 = vector.broadcast %443 : vector<1x128xf32> to vector<40x128xf32>
    %445 = arith.addf %441, %444 : vector<40x128xf32>
    %c0_404 = arith.constant 0 : index
    %c0_405 = arith.constant 0 : index
    %446 = vector.load %arg10[%c0_404, %c0_405] : memref<40x128xf32, #tpu.memory_space<vmem>>, vector<40x128xf32>
    tpu.vector_store %arg10[%c0_404, %c0_405], %445 {strides = array<i32>} : memref<40x128xf32, #tpu.memory_space<vmem>>, vector<40x128xf32>,
    %c0_406 = arith.constant 0 : index
    %c0_407 = arith.constant 0 : index
    %447 = vector.load %arg10[%c0_406, %c0_407] : memref<40x128xf32, #tpu.memory_space<vmem>>, vector<8x128xf32>
    %c20 = arith.constant 20 : index
    %c0_408 = arith.constant 0 : index
    %c0_409 = arith.constant 0 : index
    %448 = vector.load %arg5[%c20, %c0_408, %c0_409] : memref<30x128x128xf32, #tpu.memory_space<vmem>>, vector<1x128x128xf32>
    %449 = vector.shape_cast %448 : vector<1x128x128xf32> to vector<128x128xf32>
    %cst_410 = arith.constant dense<0.000000e+00> : vector<8x128xf32>
    %450 = tpu.matmul %447, %449, %cst_410 {dimension_numbers = #tpu.dot_dimension_numbers<[1], [0], [0], [1], [0, 0, 1, 1], [], []>} : vector<8x128xf32>, vector<128x128xf32>, vector<8x128xf32> -> vector<8x128xf32>
    %c0_411 = arith.constant 0 : index
    %c0_412 = arith.constant 0 : index
    %c0_413 = arith.constant 0 : index
    %451 = vector.load %arg2[%c0_411, %c0_412, %c0_413] : memref<5x8x8xf32, #tpu.memory_space<vmem>>, vector<1x8x8xf32>
    %452 = vector.shape_cast %451 : vector<1x8x8xf32> to vector<8x8xf32>
    %cst_414 = arith.constant dense<0.000000e+00> : vector<8x128xf32>
    %453 = tpu.matmul %452, %450, %cst_414 {dimension_numbers = #tpu.dot_dimension_numbers<[1], [0], [0], [1], [0, 0, 1, 1], [], []>} : vector<8x8xf32>, vector<8x128xf32>, vector<8x128xf32> -> vector<8x128xf32>
    %c20_415 = arith.constant 20 : index
    %c0_416 = arith.constant 0 : index
    %c0_417 = arith.constant 0 : index
    %454 = vector.load %arg6[%c20_415, %c0_416, %c0_417] : memref<30x1x128xf32, #tpu.memory_space<vmem>>, vector<1x1x128xf32>
    %455 = vector.shape_cast %454 : vector<1x1x128xf32> to vector<1x128xf32>
    %456 = vector.broadcast %455 : vector<1x128xf32> to vector<8x128xf32>
    %457 = arith.addf %453, %456 : vector<8x128xf32>
    %458 = arith.addf %447, %457 : vector<8x128xf32>
    %cst_418 = arith.constant 0.000000e+00 : f32
    %459 = vector.broadcast %cst_418 : f32 to vector<8x128xf32>
    %460 = arith.maximumf %458, %459 : vector<8x128xf32>
    %c0_419 = arith.constant 0 : index
    %c0_420 = arith.constant 0 : index
    %461 = vector.load %arg9[%c0_419, %c0_420] : memref<40x128xf32, #tpu.memory_space<vmem>>, vector<8x128xf32>
    tpu.vector_store %arg9[%c0_419, %c0_420], %460 {strides = array<i32>} : memref<40x128xf32, #tpu.memory_space<vmem>>, vector<8x128xf32>,
    %c8_421 = arith.constant 8 : index
    %c0_422 = arith.constant 0 : index
    %462 = vector.load %arg10[%c8_421, %c0_422] : memref<40x128xf32, #tpu.memory_space<vmem>>, vector<8x128xf32>
    %c21 = arith.constant 21 : index
    %c0_423 = arith.constant 0 : index
    %c0_424 = arith.constant 0 : index
    %463 = vector.load %arg5[%c21, %c0_423, %c0_424] : memref<30x128x128xf32, #tpu.memory_space<vmem>>, vector<1x128x128xf32>
    %464 = vector.shape_cast %463 : vector<1x128x128xf32> to vector<128x128xf32>
    %cst_425 = arith.constant dense<0.000000e+00> : vector<8x128xf32>
    %465 = tpu.matmul %462, %464, %cst_425 {dimension_numbers = #tpu.dot_dimension_numbers<[1], [0], [0], [1], [0, 0, 1, 1], [], []>} : vector<8x128xf32>, vector<128x128xf32>, vector<8x128xf32> -> vector<8x128xf32>
    %c1_426 = arith.constant 1 : index
    %c0_427 = arith.constant 0 : index
    %c0_428 = arith.constant 0 : index
    %466 = vector.load %arg2[%c1_426, %c0_427, %c0_428] : memref<5x8x8xf32, #tpu.memory_space<vmem>>, vector<1x8x8xf32>
    %467 = vector.shape_cast %466 : vector<1x8x8xf32> to vector<8x8xf32>
    %cst_429 = arith.constant dense<0.000000e+00> : vector<8x128xf32>
    %468 = tpu.matmul %467, %465, %cst_429 {dimension_numbers = #tpu.dot_dimension_numbers<[1], [0], [0], [1], [0, 0, 1, 1], [], []>} : vector<8x8xf32>, vector<8x128xf32>, vector<8x128xf32> -> vector<8x128xf32>
    %c21_430 = arith.constant 21 : index
    %c0_431 = arith.constant 0 : index
    %c0_432 = arith.constant 0 : index
    %469 = vector.load %arg6[%c21_430, %c0_431, %c0_432] : memref<30x1x128xf32, #tpu.memory_space<vmem>>, vector<1x1x128xf32>
    %470 = vector.shape_cast %469 : vector<1x1x128xf32> to vector<1x128xf32>
    %471 = vector.broadcast %470 : vector<1x128xf32> to vector<8x128xf32>
    %472 = arith.addf %468, %471 : vector<8x128xf32>
    %473 = arith.addf %462, %472 : vector<8x128xf32>
    %cst_433 = arith.constant 0.000000e+00 : f32
    %474 = vector.broadcast %cst_433 : f32 to vector<8x128xf32>
    %475 = arith.maximumf %473, %474 : vector<8x128xf32>
    %c8_434 = arith.constant 8 : index
    %c0_435 = arith.constant 0 : index
    %476 = vector.load %arg9[%c8_434, %c0_435] : memref<40x128xf32, #tpu.memory_space<vmem>>, vector<8x128xf32>
    tpu.vector_store %arg9[%c8_434, %c0_435], %475 {strides = array<i32>} : memref<40x128xf32, #tpu.memory_space<vmem>>, vector<8x128xf32>,
    %c16_436 = arith.constant 16 : index
    %c0_437 = arith.constant 0 : index
    %477 = vector.load %arg10[%c16_436, %c0_437] : memref<40x128xf32, #tpu.memory_space<vmem>>, vector<8x128xf32>
    %c22 = arith.constant 22 : index
    %c0_438 = arith.constant 0 : index
    %c0_439 = arith.constant 0 : index
    %478 = vector.load %arg5[%c22, %c0_438, %c0_439] : memref<30x128x128xf32, #tpu.memory_space<vmem>>, vector<1x128x128xf32>
    %479 = vector.shape_cast %478 : vector<1x128x128xf32> to vector<128x128xf32>
    %cst_440 = arith.constant dense<0.000000e+00> : vector<8x128xf32>
    %480 = tpu.matmul %477, %479, %cst_440 {dimension_numbers = #tpu.dot_dimension_numbers<[1], [0], [0], [1], [0, 0, 1, 1], [], []>} : vector<8x128xf32>, vector<128x128xf32>, vector<8x128xf32> -> vector<8x128xf32>
    %c2_441 = arith.constant 2 : index
    %c0_442 = arith.constant 0 : index
    %c0_443 = arith.constant 0 : index
    %481 = vector.load %arg2[%c2_441, %c0_442, %c0_443] : memref<5x8x8xf32, #tpu.memory_space<vmem>>, vector<1x8x8xf32>
    %482 = vector.shape_cast %481 : vector<1x8x8xf32> to vector<8x8xf32>
    %cst_444 = arith.constant dense<0.000000e+00> : vector<8x128xf32>
    %483 = tpu.matmul %482, %480, %cst_444 {dimension_numbers = #tpu.dot_dimension_numbers<[1], [0], [0], [1], [0, 0, 1, 1], [], []>} : vector<8x8xf32>, vector<8x128xf32>, vector<8x128xf32> -> vector<8x128xf32>
    %c22_445 = arith.constant 22 : index
    %c0_446 = arith.constant 0 : index
    %c0_447 = arith.constant 0 : index
    %484 = vector.load %arg6[%c22_445, %c0_446, %c0_447] : memref<30x1x128xf32, #tpu.memory_space<vmem>>, vector<1x1x128xf32>
    %485 = vector.shape_cast %484 : vector<1x1x128xf32> to vector<1x128xf32>
    %486 = vector.broadcast %485 : vector<1x128xf32> to vector<8x128xf32>
    %487 = arith.addf %483, %486 : vector<8x128xf32>
    %488 = arith.addf %477, %487 : vector<8x128xf32>
    %cst_448 = arith.constant 0.000000e+00 : f32
    %489 = vector.broadcast %cst_448 : f32 to vector<8x128xf32>
    %490 = arith.maximumf %488, %489 : vector<8x128xf32>
    %c16_449 = arith.constant 16 : index
    %c0_450 = arith.constant 0 : index
    %491 = vector.load %arg9[%c16_449, %c0_450] : memref<40x128xf32, #tpu.memory_space<vmem>>, vector<8x128xf32>
    tpu.vector_store %arg9[%c16_449, %c0_450], %490 {strides = array<i32>} : memref<40x128xf32, #tpu.memory_space<vmem>>, vector<8x128xf32>,
    %c24_451 = arith.constant 24 : index
    %c0_452 = arith.constant 0 : index
    %492 = vector.load %arg10[%c24_451, %c0_452] : memref<40x128xf32, #tpu.memory_space<vmem>>, vector<8x128xf32>
    %c23 = arith.constant 23 : index
    %c0_453 = arith.constant 0 : index
    %c0_454 = arith.constant 0 : index
    %493 = vector.load %arg5[%c23, %c0_453, %c0_454] : memref<30x128x128xf32, #tpu.memory_space<vmem>>, vector<1x128x128xf32>
    %494 = vector.shape_cast %493 : vector<1x128x128xf32> to vector<128x128xf32>
    %cst_455 = arith.constant dense<0.000000e+00> : vector<8x128xf32>
    %495 = tpu.matmul %492, %494, %cst_455 {dimension_numbers = #tpu.dot_dimension_numbers<[1], [0], [0], [1], [0, 0, 1, 1], [], []>} : vector<8x128xf32>, vector<128x128xf32>, vector<8x128xf32> -> vector<8x128xf32>
    %c3_456 = arith.constant 3 : index
    %c0_457 = arith.constant 0 : index
    %c0_458 = arith.constant 0 : index
    %496 = vector.load %arg2[%c3_456, %c0_457, %c0_458] : memref<5x8x8xf32, #tpu.memory_space<vmem>>, vector<1x8x8xf32>
    %497 = vector.shape_cast %496 : vector<1x8x8xf32> to vector<8x8xf32>
    %cst_459 = arith.constant dense<0.000000e+00> : vector<8x128xf32>
    %498 = tpu.matmul %497, %495, %cst_459 {dimension_numbers = #tpu.dot_dimension_numbers<[1], [0], [0], [1], [0, 0, 1, 1], [], []>} : vector<8x8xf32>, vector<8x128xf32>, vector<8x128xf32> -> vector<8x128xf32>
    %c23_460 = arith.constant 23 : index
    %c0_461 = arith.constant 0 : index
    %c0_462 = arith.constant 0 : index
    %499 = vector.load %arg6[%c23_460, %c0_461, %c0_462] : memref<30x1x128xf32, #tpu.memory_space<vmem>>, vector<1x1x128xf32>
    %500 = vector.shape_cast %499 : vector<1x1x128xf32> to vector<1x128xf32>
    %501 = vector.broadcast %500 : vector<1x128xf32> to vector<8x128xf32>
    %502 = arith.addf %498, %501 : vector<8x128xf32>
    %503 = arith.addf %492, %502 : vector<8x128xf32>
    %cst_463 = arith.constant 0.000000e+00 : f32
    %504 = vector.broadcast %cst_463 : f32 to vector<8x128xf32>
    %505 = arith.maximumf %503, %504 : vector<8x128xf32>
    %c24_464 = arith.constant 24 : index
    %c0_465 = arith.constant 0 : index
    %506 = vector.load %arg9[%c24_464, %c0_465] : memref<40x128xf32, #tpu.memory_space<vmem>>, vector<8x128xf32>
    tpu.vector_store %arg9[%c24_464, %c0_465], %505 {strides = array<i32>} : memref<40x128xf32, #tpu.memory_space<vmem>>, vector<8x128xf32>,
    %c32_466 = arith.constant 32 : index
    %c0_467 = arith.constant 0 : index
    %507 = vector.load %arg10[%c32_466, %c0_467] : memref<40x128xf32, #tpu.memory_space<vmem>>, vector<8x128xf32>
    %c24_468 = arith.constant 24 : index
    %c0_469 = arith.constant 0 : index
    %c0_470 = arith.constant 0 : index
    %508 = vector.load %arg5[%c24_468, %c0_469, %c0_470] : memref<30x128x128xf32, #tpu.memory_space<vmem>>, vector<1x128x128xf32>
    %509 = vector.shape_cast %508 : vector<1x128x128xf32> to vector<128x128xf32>
    %cst_471 = arith.constant dense<0.000000e+00> : vector<8x128xf32>
    %510 = tpu.matmul %507, %509, %cst_471 {dimension_numbers = #tpu.dot_dimension_numbers<[1], [0], [0], [1], [0, 0, 1, 1], [], []>} : vector<8x128xf32>, vector<128x128xf32>, vector<8x128xf32> -> vector<8x128xf32>
    %c4_472 = arith.constant 4 : index
    %c0_473 = arith.constant 0 : index
    %c0_474 = arith.constant 0 : index
    %511 = vector.load %arg2[%c4_472, %c0_473, %c0_474] : memref<5x8x8xf32, #tpu.memory_space<vmem>>, vector<1x8x8xf32>
    %512 = vector.shape_cast %511 : vector<1x8x8xf32> to vector<8x8xf32>
    %cst_475 = arith.constant dense<0.000000e+00> : vector<8x128xf32>
    %513 = tpu.matmul %512, %510, %cst_475 {dimension_numbers = #tpu.dot_dimension_numbers<[1], [0], [0], [1], [0, 0, 1, 1], [], []>} : vector<8x8xf32>, vector<8x128xf32>, vector<8x128xf32> -> vector<8x128xf32>
    %c24_476 = arith.constant 24 : index
    %c0_477 = arith.constant 0 : index
    %c0_478 = arith.constant 0 : index
    %514 = vector.load %arg6[%c24_476, %c0_477, %c0_478] : memref<30x1x128xf32, #tpu.memory_space<vmem>>, vector<1x1x128xf32>
    %515 = vector.shape_cast %514 : vector<1x1x128xf32> to vector<1x128xf32>
    %516 = vector.broadcast %515 : vector<1x128xf32> to vector<8x128xf32>
    %517 = arith.addf %513, %516 : vector<8x128xf32>
    %518 = arith.addf %507, %517 : vector<8x128xf32>
    %cst_479 = arith.constant 0.000000e+00 : f32
    %519 = vector.broadcast %cst_479 : f32 to vector<8x128xf32>
    %520 = arith.maximumf %518, %519 : vector<8x128xf32>
    %c32_480 = arith.constant 32 : index
    %c0_481 = arith.constant 0 : index
    %521 = vector.load %arg9[%c32_480, %c0_481] : memref<40x128xf32, #tpu.memory_space<vmem>>, vector<8x128xf32>
    tpu.vector_store %arg9[%c32_480, %c0_481], %520 {strides = array<i32>} : memref<40x128xf32, #tpu.memory_space<vmem>>, vector<8x128xf32>,
    %c0_482 = arith.constant 0 : index
    %c0_483 = arith.constant 0 : index
    %522 = vector.load %arg9[%c0_482, %c0_483] : memref<40x128xf32, #tpu.memory_space<vmem>>, vector<40x128xf32>
    %c5_484 = arith.constant 5 : index
    %c0_485 = arith.constant 0 : index
    %c0_486 = arith.constant 0 : index
    %523 = vector.load %arg3[%c5_484, %c0_485, %c0_486] : memref<6x128x128xf32, #tpu.memory_space<vmem>>, vector<1x128x128xf32>
    %524 = vector.shape_cast %523 : vector<1x128x128xf32> to vector<128x128xf32>
    %cst_487 = arith.constant dense<0.000000e+00> : vector<40x128xf32>
    %525 = tpu.matmul %522, %524, %cst_487 {dimension_numbers = #tpu.dot_dimension_numbers<[1], [0], [0], [1], [0, 0, 1, 1], [], []>} : vector<40x128xf32>, vector<128x128xf32>, vector<40x128xf32> -> vector<40x128xf32>
    %c5_488 = arith.constant 5 : index
    %c0_489 = arith.constant 0 : index
    %c0_490 = arith.constant 0 : index
    %526 = vector.load %arg4[%c5_488, %c0_489, %c0_490] : memref<6x1x128xf32, #tpu.memory_space<vmem>>, vector<1x1x128xf32>
    %527 = vector.shape_cast %526 : vector<1x1x128xf32> to vector<1x128xf32>
    %528 = vector.broadcast %527 : vector<1x128xf32> to vector<40x128xf32>
    %529 = arith.addf %525, %528 : vector<40x128xf32>
    %c0_491 = arith.constant 0 : index
    %c0_492 = arith.constant 0 : index
    %530 = vector.load %arg10[%c0_491, %c0_492] : memref<40x128xf32, #tpu.memory_space<vmem>>, vector<40x128xf32>
    tpu.vector_store %arg10[%c0_491, %c0_492], %529 {strides = array<i32>} : memref<40x128xf32, #tpu.memory_space<vmem>>, vector<40x128xf32>,
    %c0_493 = arith.constant 0 : index
    %c0_494 = arith.constant 0 : index
    %531 = vector.load %arg10[%c0_493, %c0_494] : memref<40x128xf32, #tpu.memory_space<vmem>>, vector<8x128xf32>
    %c25 = arith.constant 25 : index
    %c0_495 = arith.constant 0 : index
    %c0_496 = arith.constant 0 : index
    %532 = vector.load %arg5[%c25, %c0_495, %c0_496] : memref<30x128x128xf32, #tpu.memory_space<vmem>>, vector<1x128x128xf32>
    %533 = vector.shape_cast %532 : vector<1x128x128xf32> to vector<128x128xf32>
    %cst_497 = arith.constant dense<0.000000e+00> : vector<8x128xf32>
    %534 = tpu.matmul %531, %533, %cst_497 {dimension_numbers = #tpu.dot_dimension_numbers<[1], [0], [0], [1], [0, 0, 1, 1], [], []>} : vector<8x128xf32>, vector<128x128xf32>, vector<8x128xf32> -> vector<8x128xf32>
    %c0_498 = arith.constant 0 : index
    %c0_499 = arith.constant 0 : index
    %c0_500 = arith.constant 0 : index
    %535 = vector.load %arg2[%c0_498, %c0_499, %c0_500] : memref<5x8x8xf32, #tpu.memory_space<vmem>>, vector<1x8x8xf32>
    %536 = vector.shape_cast %535 : vector<1x8x8xf32> to vector<8x8xf32>
    %cst_501 = arith.constant dense<0.000000e+00> : vector<8x128xf32>
    %537 = tpu.matmul %536, %534, %cst_501 {dimension_numbers = #tpu.dot_dimension_numbers<[1], [0], [0], [1], [0, 0, 1, 1], [], []>} : vector<8x8xf32>, vector<8x128xf32>, vector<8x128xf32> -> vector<8x128xf32>
    %c25_502 = arith.constant 25 : index
    %c0_503 = arith.constant 0 : index
    %c0_504 = arith.constant 0 : index
    %538 = vector.load %arg6[%c25_502, %c0_503, %c0_504] : memref<30x1x128xf32, #tpu.memory_space<vmem>>, vector<1x1x128xf32>
    %539 = vector.shape_cast %538 : vector<1x1x128xf32> to vector<1x128xf32>
    %540 = vector.broadcast %539 : vector<1x128xf32> to vector<8x128xf32>
    %541 = arith.addf %537, %540 : vector<8x128xf32>
    %542 = arith.addf %531, %541 : vector<8x128xf32>
    %cst_505 = arith.constant 0.000000e+00 : f32
    %543 = vector.broadcast %cst_505 : f32 to vector<8x128xf32>
    %544 = arith.maximumf %542, %543 : vector<8x128xf32>
    %c8_506 = arith.constant 8 : index
    %c0_507 = arith.constant 0 : index
    %545 = vector.load %arg10[%c8_506, %c0_507] : memref<40x128xf32, #tpu.memory_space<vmem>>, vector<8x128xf32>
    %c26 = arith.constant 26 : index
    %c0_508 = arith.constant 0 : index
    %c0_509 = arith.constant 0 : index
    %546 = vector.load %arg5[%c26, %c0_508, %c0_509] : memref<30x128x128xf32, #tpu.memory_space<vmem>>, vector<1x128x128xf32>
    %547 = vector.shape_cast %546 : vector<1x128x128xf32> to vector<128x128xf32>
    %cst_510 = arith.constant dense<0.000000e+00> : vector<8x128xf32>
    %548 = tpu.matmul %545, %547, %cst_510 {dimension_numbers = #tpu.dot_dimension_numbers<[1], [0], [0], [1], [0, 0, 1, 1], [], []>} : vector<8x128xf32>, vector<128x128xf32>, vector<8x128xf32> -> vector<8x128xf32>
    %c1_511 = arith.constant 1 : index
    %c0_512 = arith.constant 0 : index
    %c0_513 = arith.constant 0 : index
    %549 = vector.load %arg2[%c1_511, %c0_512, %c0_513] : memref<5x8x8xf32, #tpu.memory_space<vmem>>, vector<1x8x8xf32>
    %550 = vector.shape_cast %549 : vector<1x8x8xf32> to vector<8x8xf32>
    %cst_514 = arith.constant dense<0.000000e+00> : vector<8x128xf32>
    %551 = tpu.matmul %550, %548, %cst_514 {dimension_numbers = #tpu.dot_dimension_numbers<[1], [0], [0], [1], [0, 0, 1, 1], [], []>} : vector<8x8xf32>, vector<8x128xf32>, vector<8x128xf32> -> vector<8x128xf32>
    %c26_515 = arith.constant 26 : index
    %c0_516 = arith.constant 0 : index
    %c0_517 = arith.constant 0 : index
    %552 = vector.load %arg6[%c26_515, %c0_516, %c0_517] : memref<30x1x128xf32, #tpu.memory_space<vmem>>, vector<1x1x128xf32>
    %553 = vector.shape_cast %552 : vector<1x1x128xf32> to vector<1x128xf32>
    %554 = vector.broadcast %553 : vector<1x128xf32> to vector<8x128xf32>
    %555 = arith.addf %551, %554 : vector<8x128xf32>
    %556 = arith.addf %545, %555 : vector<8x128xf32>
    %cst_518 = arith.constant 0.000000e+00 : f32
    %557 = vector.broadcast %cst_518 : f32 to vector<8x128xf32>
    %558 = arith.maximumf %556, %557 : vector<8x128xf32>
    %559 = arith.addf %544, %558 : vector<8x128xf32>
    %c16_519 = arith.constant 16 : index
    %c0_520 = arith.constant 0 : index
    %560 = vector.load %arg10[%c16_519, %c0_520] : memref<40x128xf32, #tpu.memory_space<vmem>>, vector<8x128xf32>
    %c27 = arith.constant 27 : index
    %c0_521 = arith.constant 0 : index
    %c0_522 = arith.constant 0 : index
    %561 = vector.load %arg5[%c27, %c0_521, %c0_522] : memref<30x128x128xf32, #tpu.memory_space<vmem>>, vector<1x128x128xf32>
    %562 = vector.shape_cast %561 : vector<1x128x128xf32> to vector<128x128xf32>
    %cst_523 = arith.constant dense<0.000000e+00> : vector<8x128xf32>
    %563 = tpu.matmul %560, %562, %cst_523 {dimension_numbers = #tpu.dot_dimension_numbers<[1], [0], [0], [1], [0, 0, 1, 1], [], []>} : vector<8x128xf32>, vector<128x128xf32>, vector<8x128xf32> -> vector<8x128xf32>
    %c2_524 = arith.constant 2 : index
    %c0_525 = arith.constant 0 : index
    %c0_526 = arith.constant 0 : index
    %564 = vector.load %arg2[%c2_524, %c0_525, %c0_526] : memref<5x8x8xf32, #tpu.memory_space<vmem>>, vector<1x8x8xf32>
    %565 = vector.shape_cast %564 : vector<1x8x8xf32> to vector<8x8xf32>
    %cst_527 = arith.constant dense<0.000000e+00> : vector<8x128xf32>
    %566 = tpu.matmul %565, %563, %cst_527 {dimension_numbers = #tpu.dot_dimension_numbers<[1], [0], [0], [1], [0, 0, 1, 1], [], []>} : vector<8x8xf32>, vector<8x128xf32>, vector<8x128xf32> -> vector<8x128xf32>
    %c27_528 = arith.constant 27 : index
    %c0_529 = arith.constant 0 : index
    %c0_530 = arith.constant 0 : index
    %567 = vector.load %arg6[%c27_528, %c0_529, %c0_530] : memref<30x1x128xf32, #tpu.memory_space<vmem>>, vector<1x1x128xf32>
    %568 = vector.shape_cast %567 : vector<1x1x128xf32> to vector<1x128xf32>
    %569 = vector.broadcast %568 : vector<1x128xf32> to vector<8x128xf32>
    %570 = arith.addf %566, %569 : vector<8x128xf32>
    %571 = arith.addf %560, %570 : vector<8x128xf32>
    %cst_531 = arith.constant 0.000000e+00 : f32
    %572 = vector.broadcast %cst_531 : f32 to vector<8x128xf32>
    %573 = arith.maximumf %571, %572 : vector<8x128xf32>
    %574 = arith.addf %559, %573 : vector<8x128xf32>
    %c24_532 = arith.constant 24 : index
    %c0_533 = arith.constant 0 : index
    %575 = vector.load %arg10[%c24_532, %c0_533] : memref<40x128xf32, #tpu.memory_space<vmem>>, vector<8x128xf32>
    %c28 = arith.constant 28 : index
    %c0_534 = arith.constant 0 : index
    %c0_535 = arith.constant 0 : index
    %576 = vector.load %arg5[%c28, %c0_534, %c0_535] : memref<30x128x128xf32, #tpu.memory_space<vmem>>, vector<1x128x128xf32>
    %577 = vector.shape_cast %576 : vector<1x128x128xf32> to vector<128x128xf32>
    %cst_536 = arith.constant dense<0.000000e+00> : vector<8x128xf32>
    %578 = tpu.matmul %575, %577, %cst_536 {dimension_numbers = #tpu.dot_dimension_numbers<[1], [0], [0], [1], [0, 0, 1, 1], [], []>} : vector<8x128xf32>, vector<128x128xf32>, vector<8x128xf32> -> vector<8x128xf32>
    %c3_537 = arith.constant 3 : index
    %c0_538 = arith.constant 0 : index
    %c0_539 = arith.constant 0 : index
    %579 = vector.load %arg2[%c3_537, %c0_538, %c0_539] : memref<5x8x8xf32, #tpu.memory_space<vmem>>, vector<1x8x8xf32>
    %580 = vector.shape_cast %579 : vector<1x8x8xf32> to vector<8x8xf32>
    %cst_540 = arith.constant dense<0.000000e+00> : vector<8x128xf32>
    %581 = tpu.matmul %580, %578, %cst_540 {dimension_numbers = #tpu.dot_dimension_numbers<[1], [0], [0], [1], [0, 0, 1, 1], [], []>} : vector<8x8xf32>, vector<8x128xf32>, vector<8x128xf32> -> vector<8x128xf32>
    %c28_541 = arith.constant 28 : index
    %c0_542 = arith.constant 0 : index
    %c0_543 = arith.constant 0 : index
    %582 = vector.load %arg6[%c28_541, %c0_542, %c0_543] : memref<30x1x128xf32, #tpu.memory_space<vmem>>, vector<1x1x128xf32>
    %583 = vector.shape_cast %582 : vector<1x1x128xf32> to vector<1x128xf32>
    %584 = vector.broadcast %583 : vector<1x128xf32> to vector<8x128xf32>
    %585 = arith.addf %581, %584 : vector<8x128xf32>
    %586 = arith.addf %575, %585 : vector<8x128xf32>
    %cst_544 = arith.constant 0.000000e+00 : f32
    %587 = vector.broadcast %cst_544 : f32 to vector<8x128xf32>
    %588 = arith.maximumf %586, %587 : vector<8x128xf32>
    %589 = arith.addf %574, %588 : vector<8x128xf32>
    %c32_545 = arith.constant 32 : index
    %c0_546 = arith.constant 0 : index
    %590 = vector.load %arg10[%c32_545, %c0_546] : memref<40x128xf32, #tpu.memory_space<vmem>>, vector<8x128xf32>
    %c29 = arith.constant 29 : index
    %c0_547 = arith.constant 0 : index
    %c0_548 = arith.constant 0 : index
    %591 = vector.load %arg5[%c29, %c0_547, %c0_548] : memref<30x128x128xf32, #tpu.memory_space<vmem>>, vector<1x128x128xf32>
    %592 = vector.shape_cast %591 : vector<1x128x128xf32> to vector<128x128xf32>
    %cst_549 = arith.constant dense<0.000000e+00> : vector<8x128xf32>
    %593 = tpu.matmul %590, %592, %cst_549 {dimension_numbers = #tpu.dot_dimension_numbers<[1], [0], [0], [1], [0, 0, 1, 1], [], []>} : vector<8x128xf32>, vector<128x128xf32>, vector<8x128xf32> -> vector<8x128xf32>
    %c4_550 = arith.constant 4 : index
    %c0_551 = arith.constant 0 : index
    %c0_552 = arith.constant 0 : index
    %594 = vector.load %arg2[%c4_550, %c0_551, %c0_552] : memref<5x8x8xf32, #tpu.memory_space<vmem>>, vector<1x8x8xf32>
    %595 = vector.shape_cast %594 : vector<1x8x8xf32> to vector<8x8xf32>
    %cst_553 = arith.constant dense<0.000000e+00> : vector<8x128xf32>
    %596 = tpu.matmul %595, %593, %cst_553 {dimension_numbers = #tpu.dot_dimension_numbers<[1], [0], [0], [1], [0, 0, 1, 1], [], []>} : vector<8x8xf32>, vector<8x128xf32>, vector<8x128xf32> -> vector<8x128xf32>
    %c29_554 = arith.constant 29 : index
    %c0_555 = arith.constant 0 : index
    %c0_556 = arith.constant 0 : index
    %597 = vector.load %arg6[%c29_554, %c0_555, %c0_556] : memref<30x1x128xf32, #tpu.memory_space<vmem>>, vector<1x1x128xf32>
    %598 = vector.shape_cast %597 : vector<1x1x128xf32> to vector<1x128xf32>
    %599 = vector.broadcast %598 : vector<1x128xf32> to vector<8x128xf32>
    %600 = arith.addf %596, %599 : vector<8x128xf32>
    %601 = arith.addf %590, %600 : vector<8x128xf32>
    %cst_557 = arith.constant 0.000000e+00 : f32
    %602 = vector.broadcast %cst_557 : f32 to vector<8x128xf32>
    %603 = arith.maximumf %601, %602 : vector<8x128xf32>
    %604 = arith.addf %589, %603 : vector<8x128xf32>
    %cst_558 = arith.constant 9.99999993E-9 : f32
    %605 = vector.broadcast %cst_558 : f32 to vector<8x128xf32>
    %606 = arith.addf %604, %605 : vector<8x128xf32>
    %c0_559 = arith.constant 0 : index
    %c0_560 = arith.constant 0 : index
    %607 = vector.load %arg8[%c0_559, %c0_560] : memref<8x128xf32, #tpu.memory_space<vmem>>, vector<8x128xf32>
    tpu.vector_store %arg8[%c0_559, %c0_560], %606 {strides = array<i32>} : memref<8x128xf32, #tpu.memory_space<vmem>>, vector<8x128xf32>,
    return
  }
}

</mosaic_0001>

<bundles_post_ra>
// kernel: forward.1
= control target key start
LH: loop header
LB: loop body
LE: loop exit
PB: predicated region body
PF: predicated region fallthrough
CT: control target
= control target key end

     0   :  { %13 = vsyncpa [#allocation6], 0  ;;  %s5651_s0 = inlined_call_operand.vmem [shape: f32[5], index: 0, kind: input, shape index: {}]   ;;  %s5652_s1 = inlined_call_operand.vmem [shape: f32[40,128], index: 1, kind: input, shape index: {}]   ;;  %s5653_s2 = inlined_call_operand.vmem [shape: f32[5,8,8], index: 2, kind: input, shape index: {}]   ;;  %s5654_s3 = inlined_call_operand.vmem [shape: f32[6,128,128], index: 3, kind: input, shape index: {}]   ;;  %s5655_s4 = inlined_call_operand.vmem [shape: f32[6,1,128], index: 4, kind: input, shape index: {}]   ;;  %s5656_s5 = inlined_call_operand.vmem [shape: f32[30,128,128], index: 5, kind: input, shape index: {}]   ;;  %s5657_s6 = inlined_call_operand.vmem [shape: f32[30,1,128], index: 6, kind: input, shape index: {}]   ;;  %s5658_s7 = inlined_call_operand.vmem [shape: f32[8,1], index: 7, kind: input, shape index: {}]   ;;  %s5659_s8 = inlined_call_operand.hbm [shape: f32[8,128], index: 8, kind: output, shape index: {}]  }
   0x1   :  { %14 = vsyncpa [#allocation5], 0  ;;  %s20_s29 = sshll.u32 %s5651_s0, 4  ;;  %s3375_s30 = smov [#allocation4]   ;;  %s21_s29 = int_to_ptr.vmem [resolvable:$true] %s20_s29 }
   0x2   :  { %23 = dma.vmem_to_smem %s21_s29, 16, %s3375_s30, [#allocation6]  }
   0x3   :  { %3371 = dma.done.wait [#allocation6], 16  }
   0x4   :  { %3372 = vsyncadd [#allocation6], 4294967280 }
   0x5   :  { %42 = sfence }
   0x6   :  { %v74_v0 = vld [vmem:[%s5654_s3 + $0x78] sm:$0xff]  ;;  %v73_v1 = vld [vmem:[%s5654_s3 + $0x70] sm:$0xff]  ;;  %v72_v2 = vld [vmem:[%s5654_s3 + $0x68] sm:$0xff]  ;;  %vm158_vm0 = vcmask 64512   ;;  %s3843_s18 = sld [smem:[#allocation4]]  ;;  %s3377_s14 = smov [#allocation7]  }
   0x7   :  { %79 = vmatpush.msra.mxu0 %v74_v0  ;;  %v71_v3 = vld [vmem:[%s5654_s3 + $0x60] sm:$0xff]  ;;  %v70_v4 = vld [vmem:[%s5654_s3 + $0x58] sm:$0xff]  ;;  %v69_v5 = vld [vmem:[%s5654_s3 + $0x50] sm:$0xff]  ;;  %s3845_s19 = sld [smem:[#allocation4 + $0x1]]  ;;  %s2639_s0 = sshll.u32 %s3377_s14, 4  ;;  %s2640_s0 = int_to_ptr.vmem [resolvable:$true] %s2639_s0 }
   0x8   :  { %v132_v6 = vld [vmem:[%s5656_s5 + $0x78] sm:$0xff]  ;;  %v131_v7 = vld [vmem:[%s5656_s5 + $0x70] sm:$0xff]  ;;  %v68_v9 = vld [vmem:[%s5654_s3 + $0x48] sm:$0xff]  ;;  %s3847_s20 = sld [smem:[#allocation4 + $0x2]]  ;;  %s2641_s16 = sshll.u32 %s5659_s8, 4  ;;  %s2642_s16 = int_to_ptr.hbm [resolvable:$true] %s2641_s16 }
   0x9   :  { %80 = vmatpush.msra.mxu0 %v73_v1  ;;  %133 = vmatpush.msra.mxu1 %v132_v6  ;;  %v2667_v8 = vld [vmem:[%s5656_s5 + $0xf8] sm:$0xff]  ;;  %v130_v10 = vld [vmem:[%s5656_s5 + $0x68] sm:$0xff]  ;;  %v2666_v11 = vld [vmem:[%s5656_s5 + $0xf0] sm:$0xff]  ;;  %s3858_s26 = sld [smem:[#allocation4 + $0x3]] }
   0xa   :  { %203 = vmatpush.msra.mxu3 %v2667_v8  ;;  %v2665_v12 = vld [vmem:[%s5656_s5 + $0xe8] sm:$0xff]  ;;  %v67_v13 = vld [vmem:[%s5654_s3 + $0x40] sm:$0xff]  ;;  %v66_v16 = vld [vmem:[%s5654_s3 + $0x38] sm:$0xff]  ;;  %s3860_s27 = sld [smem:[#allocation4 + $0x4]] }
   0xb   :  { %81 = vmatpush.msra.mxu0 %v72_v2  ;;  %134 = vmatpush.msra.mxu1 %v131_v7  ;;  %v129_v14 = vld [vmem:[%s5656_s5 + $0x60] sm:$0xff]  ;;  %v128_v17 = vld [vmem:[%s5656_s5 + $0x58] sm:$0xff]  ;;  %v65_v18 = vld [vmem:[%s5654_s3 + $0x30] sm:$0xff]  ;;  %s1078_s15 = sld [smem:[#allocation4]] }
   0xc   :  { %204 = vmatpush.msra.mxu3 %v2666_v11  ;;  %v2664_v15 = vld [vmem:[%s5656_s5 + $0xe0] sm:$0xff]  ;;  %v127_v19 = vld [vmem:[%s5656_s5 + $0x50] sm:$0xff]  ;;  %v2663_v20 = vld [vmem:[%s5656_s5 + $0xd8] sm:$0xff]  ;;  %s2921_s11 = sld [smem:[#allocation4 + $0x2]] }
   0xd   :  { %82 = vmatpush.msra.mxu0 %v71_v3  ;;  %135 = vmatpush.msra.mxu1 %v130_v10  ;;  %v64_v21 = vld [vmem:[%s5654_s3 + $0x28] sm:$0xff]  ;;  %v2662_v23 = vld [vmem:[%s5656_s5 + $0xd0] sm:$0xff]  ;;  %v63_v25 = vld [vmem:[%s5654_s3 + $0x20] sm:$0xff]  ;;  %s2941_s12 = sld [smem:[#allocation4 + $0x3]] }
   0xe   :  { %205 = vmatpush.msra.mxu3 %v2665_v12  ;;  %v126_v22 = vld [vmem:[%s5656_s5 + $0x48] sm:$0xff]  ;;  %v125_v26 = vld [vmem:[%s5656_s5 + $0x40] sm:$0xff]  ;;  %v62_v28 = vld [vmem:[%s5654_s3 + $0x18] sm:$0xff] }
   0xf   :  { %83 = vmatpush.msra.mxu0 %v70_v4  ;;  %136 = vmatpush.msra.mxu1 %v129_v14  ;;  %v2661_v24 = vld [vmem:[%s5656_s5 + $0xc8] sm:$0xff]  ;;  %v2660_v27 = vld [vmem:[%s5656_s5 + $0xc0] sm:$0xff]  ;;  %v124_v29 = vld [vmem:[%s5656_s5 + $0x38] sm:$0xff] }
  0x10   :  { %206 = vmatpush.msra.mxu3 %v2664_v15  ;;  %v2659_v30 = vld [vmem:[%s5656_s5 + $0xb8] sm:$0xff]  ;;  %v61_v31 = vld [vmem:[%s5654_s3 + $0x10] sm:$0xff]  ;;  %v60_v34 = vld [vmem:[%s5654_s3 + $0x8] sm:$0xff] }
  0x11   :  { %84 = vmatpush.msra.mxu0 %v69_v5  ;;  %137 = vmatpush.msra.mxu1 %v128_v17  ;;  %v123_v32 = vld [vmem:[%s5656_s5 + $0x30] sm:$0xff]  ;;  %v122_v35 = vld [vmem:[%s5656_s5 + $0x28] sm:$0xff]  ;;  %v59_v36 = vld [vmem:[%s5654_s3] sm:$0xff] }
  0x12   :  { %207 = vmatpush.msra.mxu3 %v2663_v20  ;;  %v2658_v33 = vld [vmem:[%s5656_s5 + $0xb0] sm:$0xff]  ;;  %v121_v37 = vld [vmem:[%s5656_s5 + $0x20] sm:$0xff]  ;;  %v120_v39 = vld [vmem:[%s5656_s5 + $0x18] sm:$0xff] }
  0x13   :  { %85 = vmatpush.msra.mxu0 %v68_v9  ;;  %138 = vmatpush.msra.mxu1 %v127_v19  ;;  %v43_v38 = vld [vmem:[%s5652_s1] sm:$0xff]  ;;  %v119_v40 = vld [vmem:[%s5656_s5 + $0x10] sm:$0xff]  ;;  %v44_v41 = vld [vmem:[%s5652_s1 + $0x8] sm:$0xff] }
  0x14   :  { %208 = vmatpush.msra.mxu3 %v2662_v23  ;;  %v118_v42 = vld [vmem:[%s5656_s5 + $0x8] sm:$0xff]  ;;  %v117_v44 = vld [vmem:[%s5656_s5] sm:$0xff]  ;;  %v2655_v46 = vld [vmem:[%s5656_s5 + $0x98] sm:$0xff] }
  0x15   :  { %86 = vmatpush.msra.mxu0 %v67_v13  ;;  %139 = vmatpush.msra.mxu1 %v126_v22  ;;  %v2657_v43 = vld [vmem:[%s5656_s5 + $0xa8] sm:$0xff]  ;;  %v2656_v45 = vld [vmem:[%s5656_s5 + $0xa0] sm:$0xff]  ;;  %v2654_v47 = vld [vmem:[%s5656_s5 + $0x90] sm:$0xff] }
  0x16   :  { %209 = vmatpush.msra.mxu3 %v2661_v24  ;;  %v2653_v48 = vld [vmem:[%s5656_s5 + $0x88] sm:$0xff]  ;;  %v2652_v49 = vld [vmem:[%s5656_s5 + $0x80] sm:$0xff]  ;;  %v45_v50 = vld [vmem:[%s5652_s1 + $0x10] sm:$0xff] }
  0x17   :  { %87 = vmatpush.msra.mxu0 %v66_v16  ;;  %140 = vmatpush.msra.mxu1 %v125_v26  ;;  %v46_v51 = vld [vmem:[%s5652_s1 + $0x18] sm:$0xff]  ;;  %v47_v52 = vld [vmem:[%s5652_s1 + $0x20] sm:$0xff]  ;;  %v2706_v59 = vld [vmem:[%s5656_s5 + $0x1f0] sm:$0xff] }
  0x18   :  { %210 = vmatpush.msra.mxu3 %v2660_v27  ;;  %v3588_v53 = vld [vmem:[%s5655_s4] ss:$0 sm:$0xff]  ;;  %v2707_v58 = vld [vmem:[%s5656_s5 + $0x1f8] sm:$0xff]  ;;  %v2705_v60 = vld [vmem:[%s5656_s5 + $0x1e8] sm:$0xff] }
  0x19   :  { %88 = vmatpush.msra.mxu0 %v65_v18  ;;  %141 = vmatpush.msra.mxu1 %v124_v29  ;;  %v2704_v61 = vld [vmem:[%s5656_s5 + $0x1e0] sm:$0xff]  ;;  %v2703_v62 = vld [vmem:[%s5656_s5 + $0x1d8] sm:$0xff]  ;;  %v2702_v1 = vld [vmem:[%s5656_s5 + $0x1d0] sm:$0xff] }
  0x1a   :  { %211 = vmatpush.msra.mxu3 %v2659_v30  ;;  %v2727_v63 = vld [vmem:[%s5656_s5 + $0x278] sm:$0xff]  ;;  %v2726_v2 = vld [vmem:[%s5656_s5 + $0x270] sm:$0xff]  ;;  %v2701_v3 = vld [vmem:[%s5656_s5 + $0x1c8] sm:$0xff] }
  0x1b   :  { %89 = vmatpush.msra.mxu0 %v64_v21  ;;  %142 = vmatpush.msra.mxu1 %v123_v32  ;;  %v2725_v4 = vld [vmem:[%s5656_s5 + $0x268] sm:$0xff]  ;;  %v2700_v5 = vld [vmem:[%s5656_s5 + $0x1c0] sm:$0xff]  ;;  %v2699_v7 = vld [vmem:[%s5656_s5 + $0x1b8] sm:$0xff] }
  0x1c   :  { %212 = vmatpush.msra.mxu3 %v2658_v33  ;;  %v2724_v6 = vld [vmem:[%s5656_s5 + $0x260] sm:$0xff]  ;;  %v2723_v8 = vld [vmem:[%s5656_s5 + $0x258] sm:$0xff]  ;;  %v2698_v9 = vld [vmem:[%s5656_s5 + $0x1b0] sm:$0xff] }
  0x1d   :  { %90 = vmatpush.msra.mxu0 %v63_v25  ;;  %143 = vmatpush.msra.mxu1 %v122_v35  ;;  %v2722_v10 = vld [vmem:[%s5656_s5 + $0x250] sm:$0xff]  ;;  %v2697_v12 = vld [vmem:[%s5656_s5 + $0x1a8] sm:$0xff]  ;;  %v3657_v14 = vld [vmem:[%s5653_s2] sm:$0xff] }
  0x1e   :  { %213 = vmatpush.msra.mxu3 %v2657_v43  ;;  %v2721_v13 = vld [vmem:[%s5656_s5 + $0x248] sm:$0xff]  ;;  %v2687_v15 = vld [vmem:[%s5656_s5 + $0x178] sm:$0xff]  ;;  %v2696_v16 = vld [vmem:[%s5656_s5 + $0x1a0] sm:$0xff] }
  0x1f   :  { %91 = vmatpush.msra.mxu0 %v62_v28  ;;  %144 = vmatpush.msra.mxu1 %v121_v37  ;;  %v2720_v17 = vld [vmem:[%s5656_s5 + $0x240] sm:$0xff]  ;;  %v2686_v19 = vld [vmem:[%s5656_s5 + $0x170] sm:$0xff]  ;;  %v3676_v20 = vld [vmem:[%s5653_s2 + $0x8] sm:$0xff] }
  0x20   :  { %214 = vmatpush.msra.mxu3 %v2656_v45  ;;  %v2695_v21 = vld [vmem:[%s5656_s5 + $0x198] sm:$0xff]  ;;  %v2694_v23 = vld [vmem:[%s5656_s5 + $0x190] sm:$0xff]  ;;  %v2685_v25 = vld [vmem:[%s5656_s5 + $0x168] sm:$0xff] }
  0x21   :  { %92 = vmatpush.msra.mxu0 %v61_v31  ;;  %145 = vmatpush.msra.mxu1 %v120_v39  ;;  %v2719_v22 = vld [vmem:[%s5656_s5 + $0x238] sm:$0xff]  ;;  %v2718_v24 = vld [vmem:[%s5656_s5 + $0x230] sm:$0xff]  ;;  %v2693_v26 = vld [vmem:[%s5656_s5 + $0x188] sm:$0xff] }
  0x22   :  { %215 = vmatpush.msra.mxu3 %v2655_v46  ;;  %v2717_v28 = vld [vmem:[%s5656_s5 + $0x228] sm:$0xff]  ;;  %v2684_v29 = vld [vmem:[%s5656_s5 + $0x160] sm:$0xff]  ;;  %v2683_v33 = vld [vmem:[%s5656_s5 + $0x158] sm:$0xff] }
  0x23   :  { %93 = vmatpush.msra.mxu0 %v60_v34  ;;  %146 = vmatpush.msra.mxu1 %v119_v40  ;;  %v2692_v31 = vld [vmem:[%s5656_s5 + $0x180] sm:$0xff]  ;;  %v2715_v34 = vld [vmem:[%s5656_s5 + $0x218] sm:$0xff]  ;;  %v2682_v35 = vld [vmem:[%s5656_s5 + $0x150] sm:$0xff] }
  0x24   :  { %216 = vmatpush.msra.mxu3 %v2654_v47  ;;  %v2716_v32 = vld [vmem:[%s5656_s5 + $0x220] sm:$0xff]  ;;  %v2681_v37 = vld [vmem:[%s5656_s5 + $0x148] sm:$0xff]  ;;  %v2679_v43 = vld [vmem:[%s5656_s5 + $0x138] sm:$0xff] }
  0x25   :  { %94 = vmatpush.msra.mxu0 %v59_v36  ;;  %147 = vmatpush.msra.mxu1 %v118_v42  ;;  %v2714_v36 = vld [vmem:[%s5656_s5 + $0x210] sm:$0xff]  ;;  %v2713_v39 = vld [vmem:[%s5656_s5 + $0x208] sm:$0xff]  ;;  %v2680_v40 = vld [vmem:[%s5656_s5 + $0x140] sm:$0xff] }
  0x26   :  { %95 = vmatmul.f32.vlgmr.msra.gmra.mxu0 %v43_v38  ;;  %217 = vmatpush.msra.mxu3 %v2653_v48  ;;  %v2712_v42 = vld [vmem:[%s5656_s5 + $0x200] sm:$0xff]  ;;  %v2677_v45 = vld [vmem:[%s5656_s5 + $0x128] sm:$0xff]  ;;  %v2675_v47 = vld [vmem:[%s5656_s5 + $0x118] sm:$0xff] }
  0x27   :  { %148 = vmatpush.msra.mxu1 %v117_v44  ;;  %419 = vmatpush.msrb.mxu0 %v2727_v63  ;;  %v2678_v44 = vld [vmem:[%s5656_s5 + $0x130] sm:$0xff]  ;;  %v2676_v46 = vld [vmem:[%s5656_s5 + $0x120] sm:$0xff] }
  0x28   :  { %218 = vmatpush.msra.mxu3 %v2652_v49  ;;  %v2674_v48 = vld [vmem:[%s5656_s5 + $0x110] sm:$0xff]  ;;  %v2673_v49 = vld [vmem:[%s5656_s5 + $0x108] sm:$0xff] }
  0x29   :  { %420 = vmatpush.msrb.mxu0 %v2726_v2  ;;  %v2746_v63 = vld [vmem:[%s5654_s3 + $0xf0] sm:$0xff]  ;;  %v2744_v2 = vld [vmem:[%s5654_s3 + $0xe0] sm:$0xff] }
  0x2a   :  { %347 = vmatpush.msrb.mxu3 %v2707_v58 }
  0x2b   :  { %421 = vmatpush.msrb.mxu0 %v2725_v4  ;;  %v2742_v4 = vld [vmem:[%s5654_s3 + $0xd0] sm:$0xff] }
  0x2c   :  { %348 = vmatpush.msrb.mxu3 %v2706_v59  ;;  %v3784_v59 = vld [vmem:[%s5653_s2 + $0x10] sm:$0xff] }
  0x2d   :  { %422 = vmatpush.msrb.mxu0 %v2724_v6  ;;  %v2740_v6 = vld [vmem:[%s5654_s3 + $0xc0] sm:$0xff] }
  0x2e   :  { %98 = vmatmul.f32.gmra.mxu0 %v44_v41  ;;  %349 = vmatpush.msrb.mxu3 %v2705_v60 }
  0x2f   :  { %423 = vmatpush.msrb.mxu0 %v2723_v8  ;;  %v2738_v8 = vld [vmem:[%s5654_s3 + $0xb0] sm:$0xff] }
  0x30   :  { %350 = vmatpush.msrb.mxu3 %v2704_v61 }
  0x31   :  { %424 = vmatpush.msrb.mxu0 %v2722_v10  ;;  %v2736_v10 = vld [vmem:[%s5654_s3 + $0xa0] sm:$0xff] }
  0x32   :  { %351 = vmatpush.msrb.mxu3 %v2703_v62  ;;  %v2747_v62 = vld [vmem:[%s5654_s3 + $0xf8] sm:$0xff] }
  0x33   :  { %425 = vmatpush.msrb.mxu0 %v2721_v13  ;;  %v2733_v13 = vld [vmem:[%s5654_s3 + $0x88] sm:$0xff] }
  0x34   :  { %352 = vmatpush.msrb.mxu3 %v2702_v1  ;;  %v3800_v1 = vld [vmem:[%s5653_s2 + $0x18] sm:$0xff] }
  0x35   :  { %426 = vmatpush.msrb.mxu0 %v2720_v17  ;;  %v3300_v17 = vld [vmem:[%s5657_s6] ss:$0 sm:$0xff] }
  0x36   :  { %101 = vmatmul.f32.gmra.mxu0 %v45_v50  ;;  %353 = vmatpush.msrb.mxu3 %v2701_v3  ;;  %v2743_v3 = vld [vmem:[%s5654_s3 + $0xd8] sm:$0xff] }
  0x37   :  { %427 = vmatpush.msrb.mxu0 %v2719_v22 }
  0x38   :  { %354 = vmatpush.msrb.mxu3 %v2700_v5  ;;  %v2741_v5 = vld [vmem:[%s5654_s3 + $0xc8] sm:$0xff] }
  0x39   :  { %428 = vmatpush.msrb.mxu0 %v2718_v24  ;;  %v183_v24 = vstv %s3843_s18 }
  0x3a   :  { %355 = vmatpush.msrb.mxu3 %v2699_v7  ;;  %v2739_v7 = vld [vmem:[%s5654_s3 + $0xb8] sm:$0xff] }
  0x3b   :  { %429 = vmatpush.msrb.mxu0 %v2717_v28  ;;  %v326_v28 = vstv %s3847_s20  ;;  %s2901_s20 = sld [smem:[#allocation4 + $0x1]] }
  0x3c   :  { %356 = vmatpush.msrb.mxu3 %v2698_v9  ;;  %v2737_v9 = vld [vmem:[%s5654_s3 + $0xa8] sm:$0xff] }
  0x3d   :  { %430 = vmatpush.msrb.mxu0 %v2716_v32 }
  0x3e   :  { %104 = vmatmul.f32.gmra.mxu0 %v46_v51  ;;  %357 = vmatpush.msrb.mxu3 %v2697_v12  ;;  %v2672_v51 = vld [vmem:[%s5656_s5 + $0x100] sm:$0xff]  ;;  %v2734_v12 = vld [vmem:[%s5654_s3 + $0x90] sm:$0xff] }
  0x3f   :  { %431 = vmatpush.msrb.mxu0 %v2715_v34 }
  0x40   :  { %358 = vmatpush.msrb.mxu3 %v2696_v16 }
  0x41   :  { %432 = vmatpush.msrb.mxu0 %v2714_v36 }
  0x42   :  { %359 = vmatpush.msrb.mxu3 %v2695_v21 }
  0x43   :  { %433 = vmatpush.msrb.mxu0 %v2713_v39 }
  0x44   :  { %360 = vmatpush.msrb.mxu3 %v2694_v23 }
  0x45   :  { %434 = vmatpush.msrb.mxu0 %v2712_v42 }
  0x46   :  { %107 = vmatmul.f32.gmra.mxu0 %v47_v52  ;;  %361 = vmatpush.msrb.mxu3 %v2693_v26  ;;  %v3774_v52 = vld [vmem:[%s5653_s2 + $0x20] sm:$0xff] }
  0x48   :  { %362 = vmatpush.msrb.mxu3 %v2692_v31 }
  0xa3   :  { %v96_v54 = vpop.f32.mrf.mxu0 }
  0xa4   :  { %v3591_v55 = vadd.f32 %v3588_v53, %v96_v54  ;;  %v53_v54 = vld [vmem:[%s5658_s7] sm:$0xff] }
  0xa6   :  { %149 = vmatmul.f32.vlgmr.msra.gmra.mxu1 %v3591_v55 }
  0xab   :  { %v99_v56 = vpop.f32.mrf.mxu0 }
  0xac   :  { %v3595_v57 = vadd.f32 %v3588_v53, %v99_v56 }
  0xae   :  { %219 = vmatmul.f32.vlgmr.msra.gmra.mxu3 %v3595_v57 }
  0xb3   :  { %v3646_v11 = vpop.f32.mrf.mxu0 }
  0xb4   :  { %v3765_v50 = vadd.f32 %v3588_v53, %v3646_v11  ;;  %v2735_v11 = vld [vmem:[%s5654_s3 + $0x98] sm:$0xff] }
  0xbb   :  { %v105_v27 = vpop.f32.mrf.mxu0 }
  0xbc   :  { %v3705_v30 = vadd.f32 %v3588_v53, %v105_v27  ;;  %v3304_v27 = vld [vmem:[%s5657_s6 + $0x4] ss:$0 sm:$0xff] }
  0xbe   :  { %363 = vmatmul.f32.vlgmr.msrb.gmra.mxu3 %v3705_v30 }
  0xc3   :  { %v108_v38 = vpop.f32.mrf.mxu0 }
  0xc4   :  { %v3736_v41 = vadd.f32 %v3588_v53, %v108_v38  ;;  %v3376_v53 = vmov 0   ;;  %v470_v38 = vstv %s3860_s27 }
  0xc5   :  { %3298 = vset.pattern.permute.xlu0 %v3376_v53  ;;  %v2764_v53 = vld [vmem:[%s5656_s5 + $0x2f8] sm:$0xff] }
  0xc6   :  { %435 = vmatmul.f32.vlgmr.msrb.gmra.mxu0 %v3736_v41  ;;  %475 = vperm.xlu0 %3298, %v53_v54  }
 0x123   :  { %v150_v0 = vpop.f32.mrf.mxu1 }
 0x124   :  { %177 = vmatpush.msrb.mxu1 %v150_v0  ;;  %v2745_v0 = vld [vmem:[%s5654_s3 + $0xe8] sm:$0xff] }
 0x125   :  { %2651 = vmatmul.msk.f32.vlgmr.msrb.gmra.mxu1 %vm158_vm0, %v3657_v14 }
 0x131   :  { %v220_v18 = vpop.f32.mrf.mxu3 }
 0x132   :  { %248 = vmatpush.msra.mxu2 %v220_v18  ;;  %v3301_v18 = vld [vmem:[%s5657_s6 + $0x1] ss:$0 sm:$0xff] }
 0x133   :  { %2670 = vmatmul.msk.f32.vlgmr.msra.gmra.mxu2 %vm158_vm0, %v3676_v20 }
 0x134   :  { %275 = vmatpush.msrb.mxu2 %v2687_v15  ;;  %v2732_v15 = vld [vmem:[%s5654_s3 + $0x80] sm:$0xff] }
 0x136   :  { %276 = vmatpush.msrb.mxu2 %v2686_v19  ;;  %v3302_v19 = vld [vmem:[%s5657_s6 + $0x2] ss:$0 sm:$0xff] }
 0x138   :  { %277 = vmatpush.msrb.mxu2 %v2685_v25  ;;  %v254_v25 = vstv %s3845_s19 }
 0x13a   :  { %278 = vmatpush.msrb.mxu2 %v2684_v29 }
 0x13c   :  { %279 = vmatpush.msrb.mxu2 %v2683_v33  ;;  %v3303_v33 = vld [vmem:[%s5657_s6 + $0x3] ss:$0 sm:$0xff] }
 0x13e   :  { %280 = vmatpush.msrb.mxu2 %v2682_v35 }
 0x140   :  { %281 = vmatpush.msrb.mxu2 %v2681_v37  ;;  %v398_v37 = vstv %s3858_s26 }
 0x141   :  { %v364_v61 = vpop.f32.mrf.mxu3 }
 0x142   :  { %282 = vmatpush.msrb.mxu2 %v2680_v40 }
 0x143   :  { %v436_v56 = vpop.f32.mrf.mxu0 }
 0x144   :  { %283 = vmatpush.msrb.mxu2 %v2679_v43  ;;  %464 = vmatpush.msra.mxu0 %v436_v56 }
 0x145   :  { %2730 = vmatmul.msk.f32.vlgmr.msra.gmra.mxu0 %vm158_vm0, %v3774_v52 }
 0x146   :  { %284 = vmatpush.msrb.mxu2 %v2678_v44 }
 0x148   :  { %285 = vmatpush.msrb.mxu2 %v2677_v45 }
 0x14a   :  { %286 = vmatpush.msrb.mxu2 %v2676_v46  ;;  %v3883_v46 = vpop.permute.xlu0 %475 }
 0x14c   :  { %287 = vmatpush.msrb.mxu2 %v2675_v47 }
 0x14e   :  { %288 = vmatpush.msrb.mxu2 %v2674_v48 }
 0x150   :  { %289 = vmatpush.msrb.mxu2 %v2673_v49 }
 0x152   :  { %290 = vmatpush.msrb.mxu2 %v2672_v51 }
 0x153   :  { %291 = vmatmul.f32.vlgmr.msrb.gmra.mxu2 %v3765_v50 }
 0x154   :  { %585 = vmatpush.msra.mxu2 %v2764_v53  ;;  %v2812_v53 = vld [vmem:[%s5656_s5 + $0x428] sm:$0xff] }
 0x1a2   :  { %v179_v16 = vpop.f32.mrf.mxu1 }
 0x1a3   :  { %v180_v22 = vadd.f32 %v3300_v17, %v179_v16  ;;  %v2756_v17 = vld [vmem:[%s5656_s5 + $0x2b8] sm:$0xff] }
 0x1a5   :  { %v184_v31 = vmul.f32 %v183_v24, %v180_v22 }
 0x1b6   :  { %v250_v58 = vpop.f32.mrf.mxu2 }
 0x1b7   :  { %v251_v23 = vadd.f32 %v3301_v18, %v250_v58  ;;  %v2763_v58 = vld [vmem:[%s5656_s5 + $0x2f0] sm:$0xff]  ;;  %v2774_v18 = vld [vmem:[%s5656_s5 + $0x338] sm:$0xff] }
 0x1b8   :  { %586 = vmatpush.msra.mxu2 %v2763_v58  ;;  %v2811_v58 = vld [vmem:[%s5656_s5 + $0x420] sm:$0xff] }
 0x1b9   :  { %v255_v32 = vmul.f32 %v254_v25, %v251_v23  ;;  %v2754_v23 = vld [vmem:[%s5656_s5 + $0x2a8] sm:$0xff] }
 0x1bb   :  { %v256_v39 = vadd.f32 %v255_v32, %v184_v31  ;;  %v2751_v31 = vld [vmem:[%s5656_s5 + $0x290] sm:$0xff] }
 0x1c2   :  { %v466_v29 = vpop.f32.mrf.mxu0 }
 0x1c3   :  { %v467_v35 = vadd.f32 %v3304_v27, %v466_v29 }
 0x1c5   :  { %v471_v44 = vmul.f32 %v470_v38, %v467_v35  ;;  %v2772_v35 = vld [vmem:[%s5656_s5 + $0x328] sm:$0xff] }
 0x1d6   :  { %v292_v60 = vpop.f32.mrf.mxu2 }
 0x1d7   :  { %320 = vmatpush.msra.mxu1 %v292_v60  ;;  %v2782_v60 = vld [vmem:[%s5656_s5 + $0x378] sm:$0xff] }
 0x1d8   :  { %2690 = vmatmul.msk.f32.vlgmr.msra.gmra.mxu1 %vm158_vm0, %v3784_v59  ;;  %655 = vmatpush.msrb.mxu0 %v2782_v60  ;;  %v2810_v60 = vld [vmem:[%s5656_s5 + $0x418] sm:$0xff] }
 0x1d9   :  { %392 = vmatpush.msrb.mxu1 %v364_v61  ;;  %v2762_v61 = vld [vmem:[%s5656_s5 + $0x2e8] sm:$0xff] }
 0x1da   :  { %587 = vmatpush.msra.mxu2 %v2762_v61  ;;  %v2808_v61 = vld [vmem:[%s5656_s5 + $0x408] sm:$0xff] }
 0x1db   :  { %530 = vmatpush.msra.mxu1 %v2747_v62  ;;  %v2781_v62 = vld [vmem:[%s5656_s5 + $0x370] sm:$0xff] }
 0x1dc   :  { %656 = vmatpush.msrb.mxu0 %v2781_v62  ;;  %v2807_v62 = vld [vmem:[%s5656_s5 + $0x400] sm:$0xff] }
 0x1dd   :  { %531 = vmatpush.msra.mxu1 %v2746_v63  ;;  %v2780_v63 = vld [vmem:[%s5656_s5 + $0x368] sm:$0xff] }
 0x1de   :  { %657 = vmatpush.msrb.mxu0 %v2780_v63  ;;  %v4050_v63 = vld [vmem:[%s5655_s4 + $0x1] ss:$0 sm:$0xff] }
 0x1df   :  { %532 = vmatpush.msra.mxu1 %v2745_v0  ;;  %v2761_v0 = vld [vmem:[%s5656_s5 + $0x2e0] sm:$0xff] }
 0x1e0   :  { %2710 = vmatmul.msk.f32.vlgmr.msrb.gmra.mxu1 %vm158_vm0, %v3800_v1  ;;  %588 = vmatpush.msra.mxu2 %v2761_v0 }
 0x1e1   :  { %533 = vmatpush.msra.mxu1 %v2744_v2 }
 0x1e3   :  { %534 = vmatpush.msra.mxu1 %v2743_v3 }
 0x1e5   :  { %535 = vmatpush.msra.mxu1 %v2742_v4  ;;  %v2760_v4 = vld [vmem:[%s5656_s5 + $0x2d8] sm:$0xff] }
 0x1e6   :  { %589 = vmatpush.msra.mxu2 %v2760_v4 }
 0x1e7   :  { %536 = vmatpush.msra.mxu1 %v2741_v5  ;;  %v2778_v5 = vld [vmem:[%s5656_s5 + $0x358] sm:$0xff] }
 0x1e9   :  { %537 = vmatpush.msra.mxu1 %v2740_v6  ;;  %v2822_v6 = vld [vmem:[%s5656_s5 + $0x478] sm:$0xff] }
 0x1eb   :  { %538 = vmatpush.msra.mxu1 %v2739_v7  ;;  %v2759_v7 = vld [vmem:[%s5656_s5 + $0x2d0] sm:$0xff] }
 0x1ec   :  { %590 = vmatpush.msra.mxu2 %v2759_v7 }
 0x1ed   :  { %539 = vmatpush.msra.mxu1 %v2738_v8  ;;  %v2821_v8 = vld [vmem:[%s5656_s5 + $0x470] sm:$0xff] }
 0x1ef   :  { %540 = vmatpush.msra.mxu1 %v2737_v9  ;;  %v2777_v9 = vld [vmem:[%s5656_s5 + $0x350] sm:$0xff] }
 0x1f1   :  { %541 = vmatpush.msra.mxu1 %v2736_v10 }
 0x1f3   :  { %542 = vmatpush.msra.mxu1 %v2735_v11  ;;  %v2758_v11 = vld [vmem:[%s5656_s5 + $0x2c8] sm:$0xff] }
 0x1f4   :  { %591 = vmatpush.msra.mxu2 %v2758_v11  ;;  %v2801_v11 = vld [vmem:[%s5656_s5 + $0x3f0] sm:$0xff] }
 0x1f5   :  { %543 = vmatpush.msra.mxu1 %v2734_v12  ;;  %v2776_v12 = vld [vmem:[%s5656_s5 + $0x348] sm:$0xff] }
 0x1f7   :  { %544 = vmatpush.msra.mxu1 %v2733_v13  ;;  %v2757_v13 = vld [vmem:[%s5656_s5 + $0x2c0] sm:$0xff] }
 0x1f8   :  { %592 = vmatpush.msra.mxu2 %v2757_v13  ;;  %v2799_v13 = vld [vmem:[%s5656_s5 + $0x3e0] sm:$0xff] }
 0x1f9   :  { %545 = vmatpush.msra.mxu1 %v2732_v15 }
 0x1fa   :  { %593 = vmatpush.msra.mxu2 %v2756_v17  ;;  %v2793_v17 = vld [vmem:[%s5656_s5 + $0x3b0] sm:$0xff] }
 0x1fb   :  { %797 = vmatpush.msrb.mxu1 %v2822_v6 }
 0x1fd   :  { %798 = vmatpush.msrb.mxu1 %v2821_v8 }
 0x255   :  { %v322_v21 = vpop.f32.mrf.mxu1 }
 0x256   :  { %v323_v26 = vadd.f32 %v3302_v19, %v322_v21  ;;  %v2755_v19 = vld [vmem:[%s5656_s5 + $0x2b0] sm:$0xff] }
 0x257   :  { %v2773_v21 = vld [vmem:[%s5656_s5 + $0x330] sm:$0xff]  ;;  %594 = vmatpush.msra.mxu2 %v2755_v19  ;;  %v2791_v19 = vld [vmem:[%s5656_s5 + $0x3a0] sm:$0xff] }
 0x258   :  { %v327_v34 = vmul.f32 %v326_v28, %v323_v26  ;;  %v2753_v26 = vld [vmem:[%s5656_s5 + $0x2a0] sm:$0xff] }
 0x259   :  { %595 = vmatpush.msra.mxu2 %v2754_v23  ;;  %v2788_v23 = vld [vmem:[%s5656_s5 + $0x388] sm:$0xff] }
 0x25a   :  { %v328_v42 = vadd.f32 %v327_v34, %v256_v39  ;;  %v2750_v34 = vld [vmem:[%s5656_s5 + $0x288] sm:$0xff]  ;;  %v2771_v39 = vld [vmem:[%s5656_s5 + $0x320] sm:$0xff] }
 0x25b   :  { %596 = vmatpush.msra.mxu2 %v2753_v26  ;;  %v2787_v26 = vld [vmem:[%s5656_s5 + $0x380] sm:$0xff] }
 0x25d   :  { %v394_v36 = vpop.f32.mrf.mxu1 }
 0x25e   :  { %v395_v40 = vadd.f32 %v3303_v33, %v394_v36  ;;  %v2820_v36 = vld [vmem:[%s5656_s5 + $0x468] sm:$0xff] }
 0x25f   :  { %799 = vmatpush.msrb.mxu1 %v2820_v36 }
 0x260   :  { %v399_v43 = vmul.f32 %v398_v37, %v395_v40  ;;  %v2819_v40 = vld [vmem:[%s5656_s5 + $0x460] sm:$0xff] }
 0x261   :  { %800 = vmatpush.msrb.mxu1 %v2819_v40  ;;  %v2842_v40 = vld [vmem:[%s5656_s5 + $0x4f8] sm:$0xff] }
 0x262   :  { %v400_v45 = vadd.f32 %v399_v43, %v328_v42  ;;  %v2770_v42 = vld [vmem:[%s5656_s5 + $0x318] sm:$0xff] }
 0x263   :  { %v2818_v43 = vld [vmem:[%s5656_s5 + $0x458] sm:$0xff] }
 0x264   :  { %v472_v47 = vadd.f32 %v471_v44, %v400_v45  ;;  %v2769_v44 = vld [vmem:[%s5656_s5 + $0x310] sm:$0xff]  ;;  %801 = vmatpush.msrb.mxu1 %v2818_v43 }
 0x265   :  { %v2817_v45 = vld [vmem:[%s5656_s5 + $0x450] sm:$0xff] }
 0x266   :  { %v3886_v48 = vmul.f32 %v3883_v46, %v472_v47  ;;  %802 = vmatpush.msrb.mxu1 %v2817_v45  ;;  %v2768_v47 = vld [vmem:[%s5656_s5 + $0x308] sm:$0xff]  ;;  %v2841_v43 = vld [vmem:[%s5656_s5 + $0x4f0] sm:$0xff] }
 0x267   :  { %v2836_v45 = vld [vmem:[%s5656_s5 + $0x4c8] sm:$0xff] }
 0x268   :  { %v479_v49 = vadd.f32 %v3886_v48, %v3591_v55  ;;  %v484_v56 = vadd.f32 %v3886_v48, %v3595_v57  ;;  %v489_v3 = vadd.f32 %v3886_v48, %v3765_v50  ;;  %v494_v16 = vadd.f32 %v3886_v48, %v3705_v30 }
 0x269   :  { %v499_v29 = vadd.f32 %v3886_v48, %v3736_v41  ;;  %v2816_v48 = vld [vmem:[%s5656_s5 + $0x448] sm:$0xff] }
 0x26a   :  { %v480_v51 = vadd.f32 %v479_v49, %v3591_v55  ;;  %v485_v55 = vadd.f32 %v484_v56, %v3595_v57  ;;  %v2779_v57 = vld [vmem:[%s5656_s5 + $0x360] sm:$0xff]  ;;  %v490_v10 = vadd.f32 %v489_v3, %v3765_v50  ;;  %v495_v22 = vadd.f32 %v494_v16, %v3705_v30  ;;  %v2752_v30 = vld [vmem:[%s5656_s5 + $0x298] sm:$0xff]  ;;  %803 = vmatpush.msrb.mxu1 %v2816_v48  ;;  %v2813_v56 = vld [vmem:[%s5656_s5 + $0x430] sm:$0xff] }
 0x26b   :  { %658 = vmatpush.msrb.mxu0 %v2779_v57  ;;  %v2775_v50 = vld [vmem:[%s5656_s5 + $0x340] sm:$0xff]  ;;  %597 = vmatpush.msra.mxu2 %v2752_v30  ;;  %v500_v32 = vadd.f32 %v499_v29, %v3736_v41  ;;  %v2834_v48 = vld [vmem:[%s5656_s5 + $0x4b8] sm:$0xff] }
 0x26c   :  { %v481_v54 = vmax.f32 %v480_v51, 0.0  ;;  %v486_v2 = vmax.f32 %v485_v55, 0.0  ;;  %v491_v15 = vmax.f32 %v490_v10, 0.0  ;;  %v496_v27 = vmax.f32 %v495_v22, 0.0  ;;  %v2749_v41 = vld [vmem:[%s5656_s5 + $0x280] sm:$0xff]  ;;  %v2809_v55 = vld [vmem:[%s5656_s5 + $0x410] sm:$0xff] }
 0x26d   :  { %659 = vmatpush.msrb.mxu0 %v2778_v5  ;;  %598 = vmatpush.msra.mxu2 %v2751_v31  ;;  %v501_v33 = vmax.f32 %v500_v32, 0.0  ;;  %v2767_v49 = vld [vmem:[%s5656_s5 + $0x300] sm:$0xff]  ;;  %v2789_v22 = vld [vmem:[%s5656_s5 + $0x390] sm:$0xff] }
 0x26e   :  { %546 = vmatmul.f32.vlgmr.msra.gmra.mxu1 %v481_v54  ;;  %v2815_v51 = vld [vmem:[%s5656_s5 + $0x440] sm:$0xff]  ;;  %v2814_v54 = vld [vmem:[%s5656_s5 + $0x438] sm:$0xff] }
 0x26f   :  { %660 = vmatpush.msrb.mxu0 %v2777_v9  ;;  %599 = vmatpush.msra.mxu2 %v2750_v34  ;;  %v2802_v9 = vld [vmem:[%s5656_s5 + $0x3f8] sm:$0xff]  ;;  %v2795_v16 = vld [vmem:[%s5656_s5 + $0x3c0] sm:$0xff] }
 0x270   :  { %804 = vmatpush.msrb.mxu1 %v2815_v51  ;;  %v3306_v29 = vld [vmem:[%s5657_s6 + $0x5] ss:$0 sm:$0xff]  ;;  %v3307_v30 = vld [vmem:[%s5657_s6 + $0x6] ss:$0 sm:$0xff] }
 0x271   :  { %661 = vmatpush.msrb.mxu0 %v2776_v12  ;;  %600 = vmatpush.msra.mxu2 %v2749_v41  ;;  %v2800_v12 = vld [vmem:[%s5656_s5 + $0x3e8] sm:$0xff]  ;;  %v2831_v51 = vld [vmem:[%s5656_s5 + $0x4a0] sm:$0xff] }
 0x272   :  { %805 = vmatpush.msrb.mxu1 %v2814_v54  ;;  %v2830_v54 = vld [vmem:[%s5656_s5 + $0x498] sm:$0xff] }
 0x273   :  { %662 = vmatpush.msrb.mxu0 %v2775_v50  ;;  %v2797_v50 = vld [vmem:[%s5656_s5 + $0x3d0] sm:$0xff] }
 0x274   :  { %806 = vmatpush.msrb.mxu1 %v2813_v56  ;;  %v2829_v56 = vld [vmem:[%s5656_s5 + $0x490] sm:$0xff] }
 0x275   :  { %663 = vmatpush.msrb.mxu0 %v2774_v18  ;;  %v2792_v18 = vld [vmem:[%s5656_s5 + $0x3a8] sm:$0xff] }
 0x276   :  { %549 = vmatmul.f32.gmra.mxu1 %v486_v2 }
 0x277   :  { %664 = vmatpush.msrb.mxu0 %v2773_v21  ;;  %807 = vmatpush.msrb.mxu1 %v2812_v53  ;;  %v2790_v21 = vld [vmem:[%s5656_s5 + $0x398] sm:$0xff]  ;;  %v2828_v53 = vld [vmem:[%s5656_s5 + $0x488] sm:$0xff] }
 0x279   :  { %665 = vmatpush.msrb.mxu0 %v2772_v35  ;;  %808 = vmatpush.msrb.mxu1 %v2811_v58  ;;  %v2827_v58 = vld [vmem:[%s5656_s5 + $0x480] sm:$0xff] }
 0x27b   :  { %666 = vmatpush.msrb.mxu0 %v2771_v39  ;;  %809 = vmatpush.msrb.mxu1 %v2810_v60 }
 0x27d   :  { %667 = vmatpush.msrb.mxu0 %v2770_v42  ;;  %810 = vmatpush.msrb.mxu1 %v2809_v55  ;;  %v3308_v55 = vld [vmem:[%s5657_s6 + $0x7] ss:$0 sm:$0xff] }
 0x27e   :  { %552 = vmatmul.f32.gmra.mxu1 %v491_v15  ;;  %v2796_v15 = vld [vmem:[%s5656_s5 + $0x3c8] sm:$0xff] }
 0x27f   :  { %668 = vmatpush.msrb.mxu0 %v2769_v44  ;;  %811 = vmatpush.msrb.mxu1 %v2808_v61  ;;  %v2837_v44 = vld [vmem:[%s5656_s5 + $0x4d0] sm:$0xff] }
 0x281   :  { %669 = vmatpush.msrb.mxu0 %v2768_v47  ;;  %812 = vmatpush.msrb.mxu1 %v2807_v62  ;;  %v2835_v47 = vld [vmem:[%s5656_s5 + $0x4c0] sm:$0xff] }
 0x283   :  { %670 = vmatpush.msrb.mxu0 %v2767_v49  ;;  %v2832_v49 = vld [vmem:[%s5656_s5 + $0x4a8] sm:$0xff] }
 0x286   :  { %555 = vmatmul.f32.gmra.mxu1 %v496_v27 }
 0x28e   :  { %558 = vmatmul.f32.gmra.mxu1 %v501_v33 }
 0x2eb   :  { %v547_v0 = vpop.f32.mrf.mxu1 }
 0x2ec   :  { %v4053_v57 = vadd.f32 %v4050_v63, %v547_v0 }
 0x2ee   :  { %601 = vmatmul.f32.vlgmr.msra.gmra.mxu2 %v4053_v57 }
 0x2f3   :  { %v550_v2 = vpop.f32.mrf.mxu1 }
 0x2f4   :  { %v4057_v3 = vadd.f32 %v4050_v63, %v550_v2 }
 0x2f6   :  { %671 = vmatmul.f32.vlgmr.msrb.gmra.mxu0 %v4057_v3 }
 0x2fb   :  { %v553_v4 = vpop.f32.mrf.mxu1 }
 0x2fc   :  { %v4061_v5 = vadd.f32 %v4050_v63, %v553_v4  ;;  %v3309_v4 = vld [vmem:[%s5657_s6 + $0x8] ss:$0 sm:$0xff] }
 0x303   :  { %v556_v6 = vpop.f32.mrf.mxu1 }
 0x304   :  { %v4064_v7 = vadd.f32 %v4050_v63, %v556_v6 }
 0x306   :  { %813 = vmatmul.f32.vlgmr.msrb.gmra.mxu1 %v4064_v7 }
 0x30b   :  { %v559_v41 = vpop.f32.mrf.mxu1 }
 0x30c   :  { %v4183_v60 = vadd.f32 %v4050_v63, %v559_v41  ;;  %v2879_v41 = vld [vmem:[%s5656_s5 + $0x578] sm:$0xff] }
 0x371   :  { %v602_v8 = vpop.f32.mrf.mxu2 }
 0x372   :  { %629 = vmatpush.msra.mxu3 %v602_v8 }
 0x373   :  { %2766 = vmatmul.msk.f32.vlgmr.msra.gmra.mxu3 %vm158_vm0, %v3657_v14  ;;  %v672_v10 = vpop.f32.mrf.mxu0  ;;  %v2798_v14 = vld [vmem:[%s5656_s5 + $0x3d8] sm:$0xff] }
 0x374   :  { %699 = vmatpush.msrb.mxu3 %v672_v10 }
 0x376   :  { %726 = vmatpush.msra.mxu3 %v2802_v9 }
 0x378   :  { %727 = vmatpush.msra.mxu3 %v2801_v11  ;;  %v2862_v11 = vld [vmem:[%s5654_s3 + $0x178] sm:$0xff] }
 0x37a   :  { %728 = vmatpush.msra.mxu3 %v2800_v12  ;;  %v2860_v12 = vld [vmem:[%s5654_s3 + $0x168] sm:$0xff] }
 0x37b   :  { %2785 = vmatmul.msk.f32.vlgmr.msrb.gmra.mxu3 %vm158_vm0, %v3676_v20  ;;  %v2794_v20 = vld [vmem:[%s5656_s5 + $0x3b8] sm:$0xff] }
 0x37c   :  { %729 = vmatpush.msra.mxu3 %v2799_v13  ;;  %v2858_v13 = vld [vmem:[%s5654_s3 + $0x158] sm:$0xff] }
 0x37e   :  { %730 = vmatpush.msra.mxu3 %v2798_v14  ;;  %v2856_v14 = vld [vmem:[%s5654_s3 + $0x148] sm:$0xff] }
 0x380   :  { %731 = vmatpush.msra.mxu3 %v2797_v50  ;;  %v2855_v50 = vld [vmem:[%s5654_s3 + $0x140] sm:$0xff] }
 0x382   :  { %732 = vmatpush.msra.mxu3 %v2796_v15  ;;  %v2854_v15 = vld [vmem:[%s5654_s3 + $0x138] sm:$0xff] }
 0x383   :  { %v814_v42 = vpop.f32.mrf.mxu1 }
 0x384   :  { %733 = vmatpush.msra.mxu3 %v2795_v16  ;;  %v2853_v16 = vld [vmem:[%s5654_s3 + $0x130] sm:$0xff] }
 0x386   :  { %734 = vmatpush.msra.mxu3 %v2794_v20  ;;  %v2852_v20 = vld [vmem:[%s5654_s3 + $0x128] sm:$0xff] }
 0x388   :  { %735 = vmatpush.msra.mxu3 %v2793_v17  ;;  %v2851_v17 = vld [vmem:[%s5654_s3 + $0x120] sm:$0xff] }
 0x38a   :  { %736 = vmatpush.msra.mxu3 %v2792_v18  ;;  %v2850_v18 = vld [vmem:[%s5654_s3 + $0x118] sm:$0xff] }
 0x38c   :  { %737 = vmatpush.msra.mxu3 %v2791_v19  ;;  %v2849_v19 = vld [vmem:[%s5654_s3 + $0x110] sm:$0xff] }
 0x38e   :  { %738 = vmatpush.msra.mxu3 %v2790_v21  ;;  %v2848_v21 = vld [vmem:[%s5654_s3 + $0x108] sm:$0xff] }
 0x390   :  { %739 = vmatpush.msra.mxu3 %v2789_v22  ;;  %v2847_v22 = vld [vmem:[%s5654_s3 + $0x100] sm:$0xff] }
 0x392   :  { %740 = vmatpush.msra.mxu3 %v2788_v23  ;;  %v3310_v23 = vld [vmem:[%s5657_s6 + $0x9] ss:$0 sm:$0xff] }
 0x394   :  { %741 = vmatpush.msra.mxu3 %v2787_v26 }
 0x395   :  { %742 = vmatmul.f32.vlgmr.msra.gmra.mxu3 %v4061_v5 }
 0x396   :  { %1029 = vmatpush.msrb.mxu3 %v2879_v41  ;;  %v2888_v41 = vld [vmem:[%s5656_s5 + $0x5b0] sm:$0xff] }
 0x3f6   :  { %v631_v27 = vpop.f32.mrf.mxu3 }
 0x3f7   :  { %v632_v31 = vadd.f32 %v3306_v29, %v631_v27 }
 0x3f9   :  { %v636_v34 = vmul.f32 %v632_v31, %v183_v24  ;;  %v2840_v24 = vld [vmem:[%s5656_s5 + $0x4e8] sm:$0xff] }
 0x3fe   :  { %v701_v32 = vpop.f32.mrf.mxu3 }
 0x3ff   :  { %v702_v33 = vadd.f32 %v3307_v30, %v701_v32 }
 0x401   :  { %v706_v35 = vmul.f32 %v702_v33, %v254_v25  ;;  %v2839_v25 = vld [vmem:[%s5656_s5 + $0x4e0] sm:$0xff] }
 0x403   :  { %v707_v36 = vadd.f32 %v706_v35, %v636_v34 }
 0x418   :  { %v743_v39 = vpop.f32.mrf.mxu3 }
 0x419   :  { %770 = vmatpush.msrb.mxu2 %v743_v39 }
 0x41a   :  { %2805 = vmatmul.msk.f32.vlgmr.msrb.gmra.mxu2 %vm158_vm0, %v3784_v59  ;;  %v2838_v59 = vld [vmem:[%s5656_s5 + $0x4d8] sm:$0xff] }
 0x41b   :  { %841 = vmatpush.msra.mxu2 %v814_v42  ;;  %v2937_v42 = vld [vmem:[%s5656_s5 + $0x6f8] sm:$0xff] }
 0x41d   :  { %868 = vmatpush.msrb.mxu2 %v2842_v40  ;;  %v2877_v40 = vld [vmem:[%s5656_s5 + $0x568] sm:$0xff] }
 0x41f   :  { %869 = vmatpush.msrb.mxu2 %v2841_v43  ;;  %v2936_v43 = vld [vmem:[%s5656_s5 + $0x6f0] sm:$0xff] }
 0x421   :  { %870 = vmatpush.msrb.mxu2 %v2840_v24 }
 0x422   :  { %2825 = vmatmul.msk.f32.vlgmr.msra.gmra.mxu2 %vm158_vm0, %v3800_v1  ;;  %v2833_v1 = vld [vmem:[%s5656_s5 + $0x4b0] sm:$0xff] }
 0x423   :  { %871 = vmatpush.msrb.mxu2 %v2839_v25  ;;  %v2875_v25 = vld [vmem:[%s5656_s5 + $0x558] sm:$0xff] }
 0x425   :  { %872 = vmatpush.msrb.mxu2 %v2838_v59  ;;  %v2874_v59 = vld [vmem:[%s5656_s5 + $0x550] sm:$0xff] }
 0x427   :  { %873 = vmatpush.msrb.mxu2 %v2837_v44 }
 0x429   :  { %874 = vmatpush.msrb.mxu2 %v2836_v45  ;;  %v2873_v45 = vld [vmem:[%s5656_s5 + $0x548] sm:$0xff] }
 0x42b   :  { %875 = vmatpush.msrb.mxu2 %v2835_v47  ;;  %v2872_v47 = vld [vmem:[%s5656_s5 + $0x540] sm:$0xff] }
 0x42d   :  { %876 = vmatpush.msrb.mxu2 %v2834_v48 }
 0x42f   :  { %877 = vmatpush.msrb.mxu2 %v2833_v1 }
 0x431   :  { %878 = vmatpush.msrb.mxu2 %v2832_v49  ;;  %v2871_v49 = vld [vmem:[%s5656_s5 + $0x538] sm:$0xff] }
 0x433   :  { %879 = vmatpush.msrb.mxu2 %v2831_v51 }
 0x435   :  { %880 = vmatpush.msrb.mxu2 %v2830_v54  ;;  %v2869_v54 = vld [vmem:[%s5656_s5 + $0x528] sm:$0xff] }
 0x437   :  { %881 = vmatpush.msrb.mxu2 %v2829_v56  ;;  %v2868_v56 = vld [vmem:[%s5656_s5 + $0x520] sm:$0xff] }
 0x439   :  { %882 = vmatpush.msrb.mxu2 %v2828_v53 }
 0x43b   :  { %883 = vmatpush.msrb.mxu2 %v2827_v58 }
 0x43c   :  { %884 = vmatmul.f32.vlgmr.msrb.gmra.mxu2 %v4183_v60 }
 0x49d   :  { %v772_v61 = vpop.f32.mrf.mxu2 }
 0x49e   :  { %v773_v62 = vadd.f32 %v3308_v55, %v772_v61  ;;  %v2867_v55 = vld [vmem:[%s5656_s5 + $0x518] sm:$0xff] }
 0x4a0   :  { %v777_v0 = vmul.f32 %v773_v62, %v326_v28  ;;  %v2861_v28 = vld [vmem:[%s5654_s3 + $0x170] sm:$0xff] }
 0x4a2   :  { %v778_v2 = vadd.f32 %v777_v0, %v707_v36  ;;  %v2865_v0 = vld [vmem:[%s5656_s5 + $0x508] sm:$0xff] }
 0x4a5   :  { %v843_v6 = vpop.f32.mrf.mxu2 }
 0x4a6   :  { %v844_v8 = vadd.f32 %v3309_v4, %v843_v6  ;;  %v2864_v4 = vld [vmem:[%s5656_s5 + $0x500] sm:$0xff]  ;;  %v2933_v6 = vld [vmem:[%s5656_s5 + $0x6d8] sm:$0xff] }
 0x4a8   :  { %v848_v63 = vmul.f32 %v844_v8, %v398_v37  ;;  %v2859_v37 = vld [vmem:[%s5654_s3 + $0x160] sm:$0xff]  ;;  %v2932_v8 = vld [vmem:[%s5656_s5 + $0x6d0] sm:$0xff] }
 0x4aa   :  { %v849_v9 = vadd.f32 %v848_v63, %v778_v2  ;;  %v2935_v2 = vld [vmem:[%s5656_s5 + $0x6e8] sm:$0xff] }
 0x4ab   :  { %v2931_v63 = vld [vmem:[%s5656_s5 + $0x6c8] sm:$0xff] }
 0x4bf   :  { %v885_v10 = vpop.f32.mrf.mxu2 }
 0x4c0   :  { %912 = vmatpush.msra.mxu0 %v885_v10  ;;  %v2929_v10 = vld [vmem:[%s5656_s5 + $0x6b8] sm:$0xff] }
 0x4c1   :  { %2845 = vmatmul.msk.f32.vlgmr.msra.gmra.mxu0 %vm158_vm0, %v3774_v52  ;;  %v2857_v52 = vld [vmem:[%s5654_s3 + $0x150] sm:$0xff] }
 0x4c2   :  { %974 = vmatpush.msrb.mxu0 %v2862_v11  ;;  %v2928_v11 = vld [vmem:[%s5656_s5 + $0x6b0] sm:$0xff] }
 0x4c4   :  { %975 = vmatpush.msrb.mxu0 %v2861_v28  ;;  %v2927_v28 = vld [vmem:[%s5656_s5 + $0x6a8] sm:$0xff] }
 0x4c6   :  { %976 = vmatpush.msrb.mxu0 %v2860_v12  ;;  %v2926_v12 = vld [vmem:[%s5656_s5 + $0x6a0] sm:$0xff] }
 0x4c8   :  { %977 = vmatpush.msrb.mxu0 %v2859_v37  ;;  %v2925_v37 = vld [vmem:[%s5656_s5 + $0x698] sm:$0xff] }
 0x4ca   :  { %978 = vmatpush.msrb.mxu0 %v2858_v13  ;;  %v2924_v13 = vld [vmem:[%s5656_s5 + $0x690] sm:$0xff] }
 0x4cc   :  { %979 = vmatpush.msrb.mxu0 %v2857_v52  ;;  %v2923_v52 = vld [vmem:[%s5656_s5 + $0x688] sm:$0xff] }
 0x4ce   :  { %980 = vmatpush.msrb.mxu0 %v2856_v14  ;;  %v2922_v14 = vld [vmem:[%s5656_s5 + $0x680] sm:$0xff] }
 0x4d0   :  { %981 = vmatpush.msrb.mxu0 %v2855_v50  ;;  %v4361_v50 = vld [vmem:[%s5655_s4 + $0x2] ss:$0 sm:$0xff] }
 0x4d2   :  { %982 = vmatpush.msrb.mxu0 %v2854_v15 }
 0x4d4   :  { %983 = vmatpush.msrb.mxu0 %v2853_v16 }
 0x4d6   :  { %984 = vmatpush.msrb.mxu0 %v2852_v20 }
 0x4d8   :  { %985 = vmatpush.msrb.mxu0 %v2851_v17 }
 0x4da   :  { %986 = vmatpush.msrb.mxu0 %v2850_v18 }
 0x4dc   :  { %987 = vmatpush.msrb.mxu0 %v2849_v19 }
 0x4de   :  { %988 = vmatpush.msrb.mxu0 %v2848_v21 }
 0x4e0   :  { %989 = vmatpush.msrb.mxu0 %v2847_v22 }
 0x4e2   :  { %1241 = vmatpush.msra.mxu0 %v2937_v42  ;;  %v2883_v42 = vld [vmem:[%s5656_s5 + $0x588] sm:$0xff] }
 0x4e4   :  { %1242 = vmatpush.msra.mxu0 %v2936_v43  ;;  %v2882_v43 = vld [vmem:[%s5656_s5 + $0x580] sm:$0xff] }
 0x4e6   :  { %1243 = vmatpush.msra.mxu0 %v2935_v2  ;;  %v2917_v2 = vld [vmem:[%s5656_s5 + $0x678] sm:$0xff] }
 0x53e   :  { %v914_v26 = vpop.f32.mrf.mxu0 }
 0x53f   :  { %v915_v27 = vadd.f32 %v3310_v23, %v914_v26  ;;  %v2897_v23 = vld [vmem:[%s5656_s5 + $0x5f8] sm:$0xff] }
 0x541   :  { %v919_v29 = vmul.f32 %v915_v27, %v470_v38  ;;  %v2878_v38 = vld [vmem:[%s5656_s5 + $0x570] sm:$0xff]  ;;  %v4383_v27 = vld [vmem:[%s5653_s2] sm:$0xff] }
 0x542   :  { %1030 = vmatpush.msrb.mxu3 %v2878_v38  ;;  %v2887_v38 = vld [vmem:[%s5656_s5 + $0x5a8] sm:$0xff] }
 0x543   :  { %v920_v30 = vadd.f32 %v919_v29, %v849_v9  ;;  %v2930_v9 = vld [vmem:[%s5656_s5 + $0x6c0] sm:$0xff]  ;;  %v2896_v29 = vld [vmem:[%s5656_s5 + $0x5f0] sm:$0xff] }
 0x544   :  { %1031 = vmatpush.msrb.mxu3 %v2877_v40  ;;  %v2885_v40 = vld [vmem:[%s5656_s5 + $0x598] sm:$0xff] }
 0x545   :  { %v921_v31 = vmul.f32 0.36787945, %v920_v30  ;;  %v2895_v30 = vld [vmem:[%s5656_s5 + $0x5e8] sm:$0xff] }
 0x547   :  { %v922_v32 = vmul.f32 %v921_v31, %v3883_v46  ;;  %v2894_v31 = vld [vmem:[%s5656_s5 + $0x5e0] sm:$0xff] }
 0x549   :  { %v923_v33 = vadd.f32 %v922_v32, %v4053_v57  ;;  %v928_v36 = vadd.f32 %v922_v32, %v4057_v3  ;;  %v933_v24 = vadd.f32 %v922_v32, %v4061_v5  ;;  %v938_v1 = vadd.f32 %v922_v32, %v4064_v7 }
 0x54a   :  { %v943_v58 = vadd.f32 %v922_v32, %v4183_v60  ;;  %v2893_v32 = vld [vmem:[%s5656_s5 + $0x5d8] sm:$0xff] }
 0x54b   :  { %v924_v34 = vadd.f32 %v923_v33, %v4053_v57  ;;  %v929_v39 = vadd.f32 %v928_v36, %v4057_v3  ;;  %v2876_v57 = vld [vmem:[%s5656_s5 + $0x560] sm:$0xff]  ;;  %v934_v44 = vadd.f32 %v933_v24, %v4061_v5  ;;  %v2870_v5 = vld [vmem:[%s5656_s5 + $0x530] sm:$0xff]  ;;  %v939_v51 = vadd.f32 %v938_v1, %v4064_v7  ;;  %v2889_v36 = vld [vmem:[%s5656_s5 + $0x5b8] sm:$0xff] }
 0x54c   :  { %1032 = vmatpush.msrb.mxu3 %v2876_v57  ;;  %v2866_v7 = vld [vmem:[%s5656_s5 + $0x510] sm:$0xff]  ;;  %v944_v61 = vadd.f32 %v943_v58, %v4183_v60  ;;  %v2934_v60 = vld [vmem:[%s5656_s5 + $0x6e0] sm:$0xff]  ;;  %v2949_v1 = vld [vmem:[%s5656_s5 + $0x738] sm:$0xff] }
 0x54d   :  { %v925_v35 = vmax.f32 %v924_v34, 0.0  ;;  %v930_v3 = vmax.f32 %v929_v39, 0.0  ;;  %v935_v48 = vmax.f32 %v934_v44, 0.0  ;;  %v940_v53 = vmax.f32 %v939_v51, 0.0  ;;  %1244 = vmatpush.msra.mxu0 %v2934_v60  ;;  %v2892_v33 = vld [vmem:[%s5656_s5 + $0x5d0] sm:$0xff]  ;;  %v2891_v34 = vld [vmem:[%s5656_s5 + $0x5c8] sm:$0xff] }
 0x54e   :  { %1033 = vmatpush.msrb.mxu3 %v2875_v25  ;;  %v945_v62 = vmax.f32 %v944_v61, 0.0  ;;  %v2886_v39 = vld [vmem:[%s5656_s5 + $0x5a0] sm:$0xff]  ;;  %v2884_v57 = vld [vmem:[%s5656_s5 + $0x590] sm:$0xff]  ;;  %v2955_v25 = vld [vmem:[%s5656_s5 + $0x768] sm:$0xff] }
 0x54f   :  { %990 = vmatmul.f32.vlgmr.msrb.gmra.mxu0 %v925_v35  ;;  %v2890_v35 = vld [vmem:[%s5656_s5 + $0x5c0] sm:$0xff]  ;;  %v2956_v24 = vld [vmem:[%s5656_s5 + $0x770] sm:$0xff]  ;;  %v2953_v44 = vld [vmem:[%s5656_s5 + $0x758] sm:$0xff] }
 0x550   :  { %1034 = vmatpush.msrb.mxu3 %v2874_v59  ;;  %1245 = vmatpush.msra.mxu0 %v2933_v6  ;;  %v2954_v59 = vld [vmem:[%s5656_s5 + $0x760] sm:$0xff]  ;;  %v2915_v60 = vld [vmem:[%s5656_s5 + $0x668] sm:$0xff] }
 0x551   :  { %v2946_v51 = vld [vmem:[%s5656_s5 + $0x720] sm:$0xff] }
 0x552   :  { %1035 = vmatpush.msrb.mxu3 %v2873_v45  ;;  %1246 = vmatpush.msra.mxu0 %v2932_v8  ;;  %v2952_v45 = vld [vmem:[%s5656_s5 + $0x750] sm:$0xff]  ;;  %v2914_v6 = vld [vmem:[%s5656_s5 + $0x660] sm:$0xff]  ;;  %v2913_v8 = vld [vmem:[%s5656_s5 + $0x658] sm:$0xff] }
 0x554   :  { %1036 = vmatpush.msrb.mxu3 %v2872_v47  ;;  %1247 = vmatpush.msra.mxu0 %v2931_v63  ;;  %v2951_v47 = vld [vmem:[%s5656_s5 + $0x748] sm:$0xff]  ;;  %v2912_v63 = vld [vmem:[%s5656_s5 + $0x650] sm:$0xff] }
 0x556   :  { %1037 = vmatpush.msrb.mxu3 %v2871_v49  ;;  %1248 = vmatpush.msra.mxu0 %v2930_v9  ;;  %v2948_v49 = vld [vmem:[%s5656_s5 + $0x730] sm:$0xff]  ;;  %v2911_v9 = vld [vmem:[%s5656_s5 + $0x648] sm:$0xff] }
 0x557   :  { %993 = vmatmul.f32.gmra.mxu0 %v930_v3  ;;  %v2957_v3 = vld [vmem:[%s5656_s5 + $0x778] sm:$0xff] }
 0x558   :  { %1038 = vmatpush.msrb.mxu3 %v2870_v5  ;;  %1249 = vmatpush.msra.mxu0 %v2929_v10  ;;  %v2947_v5 = vld [vmem:[%s5656_s5 + $0x728] sm:$0xff]  ;;  %v2910_v10 = vld [vmem:[%s5656_s5 + $0x640] sm:$0xff] }
 0x55a   :  { %1039 = vmatpush.msrb.mxu3 %v2869_v54  ;;  %1250 = vmatpush.msra.mxu0 %v2928_v11  ;;  %v2945_v54 = vld [vmem:[%s5656_s5 + $0x718] sm:$0xff] }
 0x55b   :  { %v2909_v11 = vld [vmem:[%s5656_s5 + $0x638] sm:$0xff] }
 0x55c   :  { %1040 = vmatpush.msrb.mxu3 %v2868_v56  ;;  %1251 = vmatpush.msra.mxu0 %v2927_v28  ;;  %v2944_v56 = vld [vmem:[%s5656_s5 + $0x710] sm:$0xff] }
 0x55d   :  { %v2908_v28 = vld [vmem:[%s5656_s5 + $0x630] sm:$0xff] }
 0x55e   :  { %1041 = vmatpush.msrb.mxu3 %v2867_v55  ;;  %1252 = vmatpush.msra.mxu0 %v2926_v12  ;;  %v2942_v55 = vld [vmem:[%s5656_s5 + $0x700] sm:$0xff]  ;;  %v2907_v12 = vld [vmem:[%s5656_s5 + $0x628] sm:$0xff] }
 0x55f   :  { %996 = vmatmul.f32.gmra.mxu0 %v935_v48  ;;  %v2950_v48 = vld [vmem:[%s5656_s5 + $0x740] sm:$0xff] }
 0x560   :  { %1042 = vmatpush.msrb.mxu3 %v2866_v7  ;;  %1253 = vmatpush.msra.mxu0 %v2925_v37  ;;  %v2906_v37 = vld [vmem:[%s5656_s5 + $0x620] sm:$0xff] }
 0x562   :  { %1043 = vmatpush.msrb.mxu3 %v2865_v0  ;;  %1254 = vmatpush.msra.mxu0 %v2924_v13  ;;  %v2905_v13 = vld [vmem:[%s5656_s5 + $0x618] sm:$0xff] }
 0x564   :  { %1044 = vmatpush.msrb.mxu3 %v2864_v4  ;;  %1255 = vmatpush.msra.mxu0 %v2923_v52  ;;  %v2916_v4 = vld [vmem:[%s5656_s5 + $0x670] sm:$0xff] }
 0x565   :  { %v2904_v52 = vld [vmem:[%s5656_s5 + $0x610] sm:$0xff] }
 0x566   :  { %1256 = vmatpush.msra.mxu0 %v2922_v14  ;;  %v2903_v14 = vld [vmem:[%s5656_s5 + $0x608] sm:$0xff] }
 0x567   :  { %999 = vmatmul.f32.gmra.mxu0 %v940_v53  ;;  %v2943_v53 = vld [vmem:[%s5656_s5 + $0x708] sm:$0xff] }
 0x56f   :  { %1002 = vmatmul.f32.gmra.mxu0 %v945_v62  ;;  %v4488_v62 = vld [vmem:[%s5653_s2 + $0x8] sm:$0xff] }
 0x5cc   :  { %v991_v15 = vpop.f32.mrf.mxu0 }
 0x5cd   :  { %v4364_v16 = vadd.f32 %v4361_v50, %v991_v15  ;;  %v3312_v15 = vld [vmem:[%s5657_s6 + $0xa] ss:$0 sm:$0xff] }
 0x5cf   :  { %1045 = vmatmul.f32.vlgmr.msrb.gmra.mxu3 %v4364_v16 }
 0x5d4   :  { %v994_v20 = vpop.f32.mrf.mxu0 }
 0x5d5   :  { %v4368_v17 = vadd.f32 %v4361_v50, %v994_v20  ;;  %v3313_v20 = vld [vmem:[%s5657_s6 + $0xb] ss:$0 sm:$0xff] }
 0x5dc   :  { %v997_v18 = vpop.f32.mrf.mxu0 }
 0x5dd   :  { %v4371_v19 = vadd.f32 %v4361_v50, %v997_v18 }
 0x5e4   :  { %v1000_v21 = vpop.f32.mrf.mxu0 }
 0x5e5   :  { %v4374_v22 = vadd.f32 %v4361_v50, %v1000_v21  ;;  %v1079_v21 = vstv %s1078_s15  ;;  %s2961_s15 = sld [smem:[#allocation4 + $0x4]] }
 0x5e7   :  { %1257 = vmatmul.f32.vlgmr.msra.gmra.mxu0 %v4374_v22 }
 0x5ec   :  { %v1003_v58 = vpop.f32.mrf.mxu0 }
 0x5ed   :  { %v4482_v7 = vadd.f32 %v4361_v50, %v1003_v58  ;;  %v2902_v50 = vld [vmem:[%s5656_s5 + $0x600] sm:$0xff] }
 0x652   :  { %v1046_v26 = vpop.f32.mrf.mxu3 }
 0x653   :  { %1073 = vmatpush.msra.mxu1 %v1046_v26  ;;  %v1149_v26 = vstv %s2901_s20 }
 0x654   :  { %2881 = vmatmul.msk.f32.vlgmr.msra.gmra.mxu1 %vm158_vm0, %v4383_v27 }
 0x655   :  { %1099 = vmatpush.msrb.mxu1 %v2897_v23 }
 0x657   :  { %1100 = vmatpush.msrb.mxu1 %v2896_v29 }
 0x659   :  { %1101 = vmatpush.msrb.mxu1 %v2895_v30 }
 0x65b   :  { %1102 = vmatpush.msrb.mxu1 %v2894_v31 }
 0x65d   :  { %1103 = vmatpush.msrb.mxu1 %v2893_v32 }
 0x65f   :  { %1104 = vmatpush.msrb.mxu1 %v2892_v33  ;;  %v4550_v33 = vld [vmem:[%s5653_s2 + $0x10] sm:$0xff] }
 0x661   :  { %1105 = vmatpush.msrb.mxu1 %v2891_v34 }
 0x663   :  { %1106 = vmatpush.msrb.mxu1 %v2890_v35 }
 0x664   :  { %v1258_v35 = vpop.f32.mrf.mxu0 }
 0x665   :  { %1107 = vmatpush.msrb.mxu1 %v2889_v36 }
 0x667   :  { %1108 = vmatpush.msrb.mxu1 %v2888_v41  ;;  %v4557_v41 = vld [vmem:[%s5653_s2 + $0x18] sm:$0xff] }
 0x669   :  { %1109 = vmatpush.msrb.mxu1 %v2887_v38  ;;  %v4564_v38 = vld [vmem:[%s5653_s2 + $0x20] sm:$0xff] }
 0x66b   :  { %1110 = vmatpush.msrb.mxu1 %v2886_v39  ;;  %v2977_v39 = vld [vmem:[%s5654_s3 + $0x1f8] sm:$0xff] }
 0x66d   :  { %1111 = vmatpush.msrb.mxu1 %v2885_v40  ;;  %v2976_v40 = vld [vmem:[%s5654_s3 + $0x1f0] sm:$0xff] }
 0x66f   :  { %1112 = vmatpush.msrb.mxu1 %v2884_v57  ;;  %v2975_v57 = vld [vmem:[%s5654_s3 + $0x1e8] sm:$0xff] }
 0x671   :  { %1113 = vmatpush.msrb.mxu1 %v2883_v42  ;;  %v2974_v42 = vld [vmem:[%s5654_s3 + $0x1e0] sm:$0xff] }
 0x673   :  { %1114 = vmatpush.msrb.mxu1 %v2882_v43  ;;  %v2973_v43 = vld [vmem:[%s5654_s3 + $0x1d8] sm:$0xff] }
 0x674   :  { %1115 = vmatmul.f32.vlgmr.msrb.gmra.mxu1 %v4368_v17 }
 0x675   :  { %1312 = vmatpush.msra.mxu1 %v2957_v3  ;;  %v2972_v3 = vld [vmem:[%s5654_s3 + $0x1d0] sm:$0xff] }
 0x677   :  { %1313 = vmatpush.msra.mxu1 %v2956_v24  ;;  %v2971_v24 = vld [vmem:[%s5654_s3 + $0x1c8] sm:$0xff] }
 0x679   :  { %1314 = vmatpush.msra.mxu1 %v2955_v25  ;;  %v2970_v25 = vld [vmem:[%s5654_s3 + $0x1c0] sm:$0xff] }
 0x67b   :  { %1315 = vmatpush.msra.mxu1 %v2954_v59  ;;  %v2969_v59 = vld [vmem:[%s5654_s3 + $0x1b8] sm:$0xff] }
 0x67d   :  { %1316 = vmatpush.msra.mxu1 %v2953_v44  ;;  %v2968_v44 = vld [vmem:[%s5654_s3 + $0x1b0] sm:$0xff] }
 0x67f   :  { %1317 = vmatpush.msra.mxu1 %v2952_v45  ;;  %v2967_v45 = vld [vmem:[%s5654_s3 + $0x1a8] sm:$0xff] }
 0x681   :  { %1318 = vmatpush.msra.mxu1 %v2951_v47  ;;  %v2966_v47 = vld [vmem:[%s5654_s3 + $0x1a0] sm:$0xff] }
 0x683   :  { %1319 = vmatpush.msra.mxu1 %v2950_v48  ;;  %v2965_v48 = vld [vmem:[%s5654_s3 + $0x198] sm:$0xff] }
 0x685   :  { %1320 = vmatpush.msra.mxu1 %v2949_v1  ;;  %v2964_v1 = vld [vmem:[%s5654_s3 + $0x190] sm:$0xff] }
 0x687   :  { %1321 = vmatpush.msra.mxu1 %v2948_v49  ;;  %v2963_v49 = vld [vmem:[%s5654_s3 + $0x188] sm:$0xff] }
 0x689   :  { %1322 = vmatpush.msra.mxu1 %v2947_v5  ;;  %v2962_v5 = vld [vmem:[%s5654_s3 + $0x180] sm:$0xff] }
 0x68b   :  { %1323 = vmatpush.msra.mxu1 %v2946_v51 }
 0x68d   :  { %1324 = vmatpush.msra.mxu1 %v2945_v54  ;;  %v3314_v54 = vld [vmem:[%s5657_s6 + $0xc] ss:$0 sm:$0xff] }
 0x68f   :  { %1325 = vmatpush.msra.mxu1 %v2944_v56  ;;  %v3315_v56 = vld [vmem:[%s5657_s6 + $0xd] ss:$0 sm:$0xff] }
 0x691   :  { %1326 = vmatpush.msra.mxu1 %v2943_v53 }
 0x693   :  { %1327 = vmatpush.msra.mxu1 %v2942_v55  ;;  %v1220_v55 = vstv %s2921_s11 }
 0x694   :  { %1328 = vmatmul.f32.vlgmr.msra.gmra.mxu1 %v4482_v7 }
 0x6d1   :  { %v1075_v61 = vpop.f32.mrf.mxu1 }
 0x6d2   :  { %v1076_v18 = vadd.f32 %v3312_v15, %v1075_v61  ;;  %v2994_v15 = vld [vmem:[%s5656_s5 + $0x7f8] sm:$0xff] }
 0x6d4   :  { %v1080_v30 = vmul.f32 %v1079_v21, %v1076_v18  ;;  %v3050_v21 = vld [vmem:[%s5656_s5 + $0x978] sm:$0xff] }
 0x6f1   :  { %v1116_v0 = vpop.f32.mrf.mxu1 }
 0x6f2   :  { %1143 = vmatpush.msra.mxu2 %v1116_v0  ;;  %v1291_v0 = vstv %s2941_s12 }
 0x6f3   :  { %2900 = vmatmul.msk.f32.vlgmr.msra.gmra.mxu2 %vm158_vm0, %v4488_v62 }
 0x6f4   :  { %1170 = vmatpush.msrb.mxu2 %v2917_v2 }
 0x6f6   :  { %1171 = vmatpush.msrb.mxu2 %v2916_v4  ;;  %v3316_v4 = vld [vmem:[%s5657_s6 + $0xe] ss:$0 sm:$0xff] }
 0x6f8   :  { %1172 = vmatpush.msrb.mxu2 %v2915_v60 }
 0x6fa   :  { %1173 = vmatpush.msrb.mxu2 %v2914_v6 }
 0x6fc   :  { %1174 = vmatpush.msrb.mxu2 %v2913_v8  ;;  %v1362_v8 = vstv %s2961_s15 }
 0x6fe   :  { %1175 = vmatpush.msrb.mxu2 %v2912_v63 }
 0x700   :  { %1176 = vmatpush.msrb.mxu2 %v2911_v9 }
 0x702   :  { %1177 = vmatpush.msrb.mxu2 %v2910_v10 }
 0x704   :  { %1178 = vmatpush.msrb.mxu2 %v2909_v11 }
 0x706   :  { %1179 = vmatpush.msrb.mxu2 %v2908_v28 }
 0x708   :  { %1180 = vmatpush.msrb.mxu2 %v2907_v12 }
 0x70a   :  { %1181 = vmatpush.msrb.mxu2 %v2906_v37 }
 0x70c   :  { %1182 = vmatpush.msrb.mxu2 %v2905_v13 }
 0x70e   :  { %1183 = vmatpush.msrb.mxu2 %v2904_v52 }
 0x710   :  { %1184 = vmatpush.msrb.mxu2 %v2903_v14 }
 0x711   :  { %v1329_v36 = vpop.f32.mrf.mxu1 }
 0x712   :  { %1185 = vmatpush.msrb.mxu2 %v2902_v50 }
 0x713   :  { %1186 = vmatmul.f32.vlgmr.msrb.gmra.mxu2 %v4371_v19 }
 0x714   :  { %1473 = vmatpush.msra.mxu2 %v2994_v15  ;;  %v3005_v15 = vld [vmem:[%s5656_s5 + $0x840] sm:$0xff] }
 0x776   :  { %v1145_v23 = vpop.f32.mrf.mxu2 }
 0x777   :  { %v1146_v29 = vadd.f32 %v3313_v20, %v1145_v23  ;;  %v2993_v20 = vld [vmem:[%s5656_s5 + $0x7f0] sm:$0xff] }
 0x778   :  { %1474 = vmatpush.msra.mxu2 %v2993_v20  ;;  %v3049_v23 = vld [vmem:[%s5656_s5 + $0x970] sm:$0xff]  ;;  %v3004_v20 = vld [vmem:[%s5656_s5 + $0x838] sm:$0xff] }
 0x779   :  { %v1150_v31 = vmul.f32 %v1149_v26, %v1146_v29  ;;  %v2990_v29 = vld [vmem:[%s5656_s5 + $0x7d8] sm:$0xff] }
 0x77b   :  { %v1151_v32 = vadd.f32 %v1150_v31, %v1080_v30  ;;  %v2989_v30 = vld [vmem:[%s5656_s5 + $0x7d0] sm:$0xff] }
 0x796   :  { %v1187_v34 = vpop.f32.mrf.mxu2 }
 0x797   :  { %1214 = vmatpush.msra.mxu3 %v1187_v34  ;;  %v2987_v34 = vld [vmem:[%s5656_s5 + $0x7c0] sm:$0xff] }
 0x798   :  { %2920 = vmatmul.msk.f32.vlgmr.msra.gmra.mxu3 %vm158_vm0, %v4550_v33 }
 0x799   :  { %1285 = vmatpush.msrb.mxu3 %v1258_v35 }
 0x79b   :  { %1356 = vmatpush.msra.mxu3 %v1329_v36 }
 0x7a0   :  { %2940 = vmatmul.msk.f32.vlgmr.msrb.gmra.mxu3 %vm158_vm0, %v4557_v41 }
 0x7a1   :  { %1418 = vmatpush.msrb.mxu3 %v2977_v39  ;;  %v2986_v39 = vld [vmem:[%s5656_s5 + $0x7b8] sm:$0xff] }
 0x7a3   :  { %1419 = vmatpush.msrb.mxu3 %v2976_v40 }
 0x7a5   :  { %1420 = vmatpush.msrb.mxu3 %v2975_v57  ;;  %v2984_v57 = vld [vmem:[%s5656_s5 + $0x7a8] sm:$0xff] }
 0x7a7   :  { %1421 = vmatpush.msrb.mxu3 %v2974_v42  ;;  %v2983_v42 = vld [vmem:[%s5656_s5 + $0x7a0] sm:$0xff] }
 0x7a8   :  { %2960 = vmatmul.msk.f32.vlgmr.msra.gmra.mxu3 %vm158_vm0, %v4564_v38 }
 0x7a9   :  { %1422 = vmatpush.msrb.mxu3 %v2973_v43 }
 0x7ab   :  { %1423 = vmatpush.msrb.mxu3 %v2972_v3 }
 0x7ad   :  { %1424 = vmatpush.msrb.mxu3 %v2971_v24  ;;  %v2982_v24 = vld [vmem:[%s5656_s5 + $0x798] sm:$0xff] }
 0x7af   :  { %1425 = vmatpush.msrb.mxu3 %v2970_v25 }
 0x7b1   :  { %1426 = vmatpush.msrb.mxu3 %v2969_v59 }
 0x7b3   :  { %1427 = vmatpush.msrb.mxu3 %v2968_v44  ;;  %v2980_v44 = vld [vmem:[%s5656_s5 + $0x788] sm:$0xff] }
 0x7b5   :  { %1428 = vmatpush.msrb.mxu3 %v2967_v45  ;;  %v3048_v45 = vld [vmem:[%s5656_s5 + $0x968] sm:$0xff] }
 0x7b7   :  { %1429 = vmatpush.msrb.mxu3 %v2966_v47  ;;  %v2979_v47 = vld [vmem:[%s5656_s5 + $0x780] sm:$0xff] }
 0x7b9   :  { %1430 = vmatpush.msrb.mxu3 %v2965_v48  ;;  %v3046_v48 = vld [vmem:[%s5656_s5 + $0x958] sm:$0xff] }
 0x7bb   :  { %1431 = vmatpush.msrb.mxu3 %v2964_v1  ;;  %v3045_v1 = vld [vmem:[%s5656_s5 + $0x950] sm:$0xff] }
 0x7bd   :  { %1432 = vmatpush.msrb.mxu3 %v2963_v49  ;;  %v3044_v49 = vld [vmem:[%s5656_s5 + $0x948] sm:$0xff] }
 0x7bf   :  { %1433 = vmatpush.msrb.mxu3 %v2962_v5  ;;  %v3043_v5 = vld [vmem:[%s5656_s5 + $0x940] sm:$0xff] }
 0x7c1   :  { %1683 = vmatpush.msra.mxu3 %v3050_v21  ;;  %v3000_v21 = vld [vmem:[%s5656_s5 + $0x818] sm:$0xff] }
 0x7c3   :  { %1684 = vmatpush.msra.mxu3 %v3049_v23  ;;  %v2999_v23 = vld [vmem:[%s5656_s5 + $0x810] sm:$0xff] }
 0x7c5   :  { %1685 = vmatpush.msra.mxu3 %v3048_v45 }
 0x81b   :  { %v1216_v51 = vpop.f32.mrf.mxu3 }
 0x81c   :  { %v1217_v58 = vadd.f32 %v3314_v54, %v1216_v51  ;;  %v3042_v51 = vld [vmem:[%s5656_s5 + $0x938] sm:$0xff]  ;;  %v3041_v54 = vld [vmem:[%s5656_s5 + $0x930] sm:$0xff] }
 0x81e   :  { %v1221_v2 = vmul.f32 %v1220_v55, %v1217_v58  ;;  %v3038_v58 = vld [vmem:[%s5656_s5 + $0x918] sm:$0xff]  ;;  %v3037_v55 = vld [vmem:[%s5656_s5 + $0x910] sm:$0xff] }
 0x820   :  { %v1222_v63 = vadd.f32 %v1221_v2, %v1151_v32  ;;  %v2988_v32 = vld [vmem:[%s5656_s5 + $0x7c8] sm:$0xff]  ;;  %v4735_v2 = vld [vmem:[%s5655_s4 + $0x3] ss:$0 sm:$0xff] }
 0x823   :  { %v1287_v53 = vpop.f32.mrf.mxu3 }
 0x824   :  { %v1288_v61 = vadd.f32 %v3315_v56, %v1287_v53  ;;  %v3040_v56 = vld [vmem:[%s5656_s5 + $0x928] sm:$0xff]  ;;  %v3039_v53 = vld [vmem:[%s5656_s5 + $0x920] sm:$0xff] }
 0x826   :  { %v1292_v60 = vmul.f32 %v1291_v0, %v1288_v61  ;;  %v3036_v61 = vld [vmem:[%s5656_s5 + $0x908] sm:$0xff]  ;;  %v3035_v0 = vld [vmem:[%s5656_s5 + $0x900] sm:$0xff] }
 0x828   :  { %v1293_v10 = vadd.f32 %v1292_v60, %v1222_v63 }
 0x82b   :  { %v1358_v6 = vpop.f32.mrf.mxu3 }
 0x82c   :  { %v1359_v9 = vadd.f32 %v3316_v4, %v1358_v6 }
 0x82e   :  { %v1363_v11 = vmul.f32 %v1362_v8, %v1359_v9 }
 0x830   :  { %v1364_v28 = vadd.f32 %v1363_v11, %v1293_v10 }
 0x832   :  { %v1365_v12 = vmul.f32 0.13533528, %v1364_v28 }
 0x834   :  { %v1366_v37 = vmul.f32 %v1365_v12, %v3883_v46  ;;  %v2992_v46 = vld [vmem:[%s5656_s5 + $0x7e8] sm:$0xff]  ;;  %v3012_v12 = vld [vmem:[%s5656_s5 + $0x878] sm:$0xff] }
 0x835   :  { %1475 = vmatpush.msra.mxu2 %v2992_v46  ;;  %v3002_v46 = vld [vmem:[%s5656_s5 + $0x828] sm:$0xff] }
 0x836   :  { %v1367_v13 = vadd.f32 %v1366_v37, %v4364_v16  ;;  %v1372_v50 = vadd.f32 %v1366_v37, %v4368_v17  ;;  %v1377_v26 = vadd.f32 %v1366_v37, %v4371_v19  ;;  %v1382_v36 = vadd.f32 %v1366_v37, %v4374_v22 }
 0x837   :  { %v1387_v3 = vadd.f32 %v1366_v37, %v4482_v7  ;;  %v3011_v37 = vld [vmem:[%s5656_s5 + $0x870] sm:$0xff] }
 0x838   :  { %v1368_v52 = vadd.f32 %v1367_v13, %v4364_v16  ;;  %v1373_v18 = vadd.f32 %v1372_v50, %v4368_v17  ;;  %v2991_v16 = vld [vmem:[%s5656_s5 + $0x7e0] sm:$0xff]  ;;  %v1378_v31 = vadd.f32 %v1377_v26, %v4371_v19  ;;  %v2985_v19 = vld [vmem:[%s5656_s5 + $0x7b0] sm:$0xff]  ;;  %v1383_v40 = vadd.f32 %v1382_v36, %v4374_v22  ;;  %v3010_v13 = vld [vmem:[%s5656_s5 + $0x868] sm:$0xff] }
 0x839   :  { %1476 = vmatpush.msra.mxu2 %v2991_v16  ;;  %v2981_v22 = vld [vmem:[%s5656_s5 + $0x790] sm:$0xff]  ;;  %v1388_v25 = vadd.f32 %v1387_v3, %v4482_v7  ;;  %v3047_v7 = vld [vmem:[%s5656_s5 + $0x960] sm:$0xff]  ;;  %v3006_v50 = vld [vmem:[%s5656_s5 + $0x848] sm:$0xff] }
 0x83a   :  { %v1369_v14 = vmax.f32 %v1368_v52, 0.0  ;;  %v1374_v17 = vmax.f32 %v1373_v18, 0.0  ;;  %v1379_v35 = vmax.f32 %v1378_v31, 0.0  ;;  %v1384_v43 = vmax.f32 %v1383_v40, 0.0  ;;  %1686 = vmatpush.msra.mxu3 %v3047_v7  ;;  %v3009_v52 = vld [vmem:[%s5656_s5 + $0x860] sm:$0xff]  ;;  %v3003_v18 = vld [vmem:[%s5656_s5 + $0x830] sm:$0xff] }
 0x83b   :  { %1477 = vmatpush.msra.mxu2 %v2990_v29  ;;  %v1389_v59 = vmax.f32 %v1388_v25, 0.0  ;;  %v3001_v16 = vld [vmem:[%s5656_s5 + $0x820] sm:$0xff]  ;;  %v3031_v31 = vld [vmem:[%s5656_s5 + $0x8f8] sm:$0xff] }
 0x83c   :  { %1434 = vmatmul.f32.vlgmr.msrb.gmra.mxu3 %v1369_v14  ;;  %v3008_v14 = vld [vmem:[%s5656_s5 + $0x858] sm:$0xff]  ;;  %v2997_v26 = vld [vmem:[%s5656_s5 + $0x800] sm:$0xff] }
 0x83d   :  { %1478 = vmatpush.msra.mxu2 %v2989_v30  ;;  %1687 = vmatpush.msra.mxu3 %v3046_v48  ;;  %v3027_v36 = vld [vmem:[%s5656_s5 + $0x8d8] sm:$0xff]  ;;  %v3016_v25 = vld [vmem:[%s5656_s5 + $0x880] sm:$0xff]  ;;  %v3068_v48 = vld [vmem:[%s5656_s5 + $0x9f0] sm:$0xff] }
 0x83e   :  { %v3023_v40 = vld [vmem:[%s5656_s5 + $0x8b8] sm:$0xff] }
 0x83f   :  { %1479 = vmatpush.msra.mxu2 %v2988_v32  ;;  %1688 = vmatpush.msra.mxu3 %v3045_v1  ;;  %v3030_v32 = vld [vmem:[%s5656_s5 + $0x8f0] sm:$0xff]  ;;  %v3019_v3 = vld [vmem:[%s5656_s5 + $0x898] sm:$0xff]  ;;  %v3067_v1 = vld [vmem:[%s5656_s5 + $0x9e8] sm:$0xff] }
 0x841   :  { %1480 = vmatpush.msra.mxu2 %v2987_v34  ;;  %1689 = vmatpush.msra.mxu3 %v3044_v49  ;;  %v3029_v34 = vld [vmem:[%s5656_s5 + $0x8e8] sm:$0xff]  ;;  %v3066_v49 = vld [vmem:[%s5656_s5 + $0x9e0] sm:$0xff] }
 0x843   :  { %1481 = vmatpush.msra.mxu2 %v2986_v39  ;;  %1690 = vmatpush.msra.mxu3 %v3043_v5  ;;  %v3025_v39 = vld [vmem:[%s5656_s5 + $0x8c8] sm:$0xff]  ;;  %v3064_v5 = vld [vmem:[%s5656_s5 + $0x9d0] sm:$0xff] }
 0x844   :  { %1437 = vmatmul.f32.gmra.mxu3 %v1374_v17  ;;  %v2998_v17 = vld [vmem:[%s5656_s5 + $0x808] sm:$0xff] }
 0x845   :  { %1482 = vmatpush.msra.mxu2 %v2985_v19  ;;  %1691 = vmatpush.msra.mxu3 %v3042_v51  ;;  %v3024_v19 = vld [vmem:[%s5656_s5 + $0x8c0] sm:$0xff]  ;;  %v3063_v51 = vld [vmem:[%s5656_s5 + $0x9c8] sm:$0xff] }
 0x847   :  { %1483 = vmatpush.msra.mxu2 %v2984_v57  ;;  %1692 = vmatpush.msra.mxu3 %v3041_v54  ;;  %v3022_v57 = vld [vmem:[%s5656_s5 + $0x8b0] sm:$0xff]  ;;  %v3062_v54 = vld [vmem:[%s5656_s5 + $0x9c0] sm:$0xff] }
 0x849   :  { %1484 = vmatpush.msra.mxu2 %v2983_v42  ;;  %1693 = vmatpush.msra.mxu3 %v3040_v56  ;;  %v3021_v42 = vld [vmem:[%s5656_s5 + $0x8a8] sm:$0xff]  ;;  %v3061_v56 = vld [vmem:[%s5656_s5 + $0x9b8] sm:$0xff] }
 0x84b   :  { %1485 = vmatpush.msra.mxu2 %v2982_v24  ;;  %1694 = vmatpush.msra.mxu3 %v3039_v53  ;;  %v3018_v24 = vld [vmem:[%s5656_s5 + $0x890] sm:$0xff]  ;;  %v3059_v53 = vld [vmem:[%s5656_s5 + $0x9a8] sm:$0xff] }
 0x84c   :  { %1440 = vmatmul.f32.gmra.mxu3 %v1379_v35  ;;  %v3028_v35 = vld [vmem:[%s5656_s5 + $0x8e0] sm:$0xff] }
 0x84d   :  { %1486 = vmatpush.msra.mxu2 %v2981_v22  ;;  %1695 = vmatpush.msra.mxu3 %v3038_v58  ;;  %v3017_v22 = vld [vmem:[%s5656_s5 + $0x888] sm:$0xff]  ;;  %v3058_v58 = vld [vmem:[%s5656_s5 + $0x9a0] sm:$0xff] }
 0x84f   :  { %1487 = vmatpush.msra.mxu2 %v2980_v44  ;;  %1696 = vmatpush.msra.mxu3 %v3037_v55  ;;  %v3057_v55 = vld [vmem:[%s5656_s5 + $0x998] sm:$0xff] }
 0x851   :  { %1488 = vmatpush.msra.mxu2 %v2979_v47  ;;  %1697 = vmatpush.msra.mxu3 %v3036_v61  ;;  %v3069_v47 = vld [vmem:[%s5656_s5 + $0x9f8] sm:$0xff]  ;;  %v3056_v61 = vld [vmem:[%s5656_s5 + $0x990] sm:$0xff] }
 0x853   :  { %1698 = vmatpush.msra.mxu3 %v3035_v0  ;;  %v3055_v0 = vld [vmem:[%s5656_s5 + $0x988] sm:$0xff] }
 0x854   :  { %1443 = vmatmul.f32.gmra.mxu3 %v1384_v43  ;;  %v3020_v43 = vld [vmem:[%s5656_s5 + $0x8a0] sm:$0xff] }
 0x85c   :  { %1446 = vmatmul.f32.gmra.mxu3 %v1389_v59 }
 0x8bf   :  { %v1435_v4 = vpop.f32.mrf.mxu3 }
 0x8c0   :  { %v4738_v60 = vadd.f32 %v4735_v2, %v1435_v4  ;;  %v3054_v4 = vld [vmem:[%s5656_s5 + $0x980] sm:$0xff] }
 0x8c2   :  { %1489 = vmatmul.f32.vlgmr.msra.gmra.mxu2 %v4738_v60 }
 0x8c7   :  { %v1438_v6 = vpop.f32.mrf.mxu3 }
 0x8c8   :  { %v4742_v8 = vadd.f32 %v4735_v2, %v1438_v6 }
 0x8cf   :  { %v1441_v63 = vpop.f32.mrf.mxu3 }
 0x8d0   :  { %v4745_v9 = vadd.f32 %v4735_v2, %v1441_v63 }
 0x8d7   :  { %v1444_v10 = vpop.f32.mrf.mxu3 }
 0x8d8   :  { %v4748_v11 = vadd.f32 %v4735_v2, %v1444_v10 }
 0x8da   :  { %1699 = vmatmul.f32.vlgmr.msra.gmra.mxu3 %v4748_v11 }
 0x8df   :  { %v1447_v44 = vpop.f32.mrf.mxu3 }
 0x8e0   :  { %v4910_v6 = vadd.f32 %v4735_v2, %v1447_v44  ;;  %v3086_v2 = vld [vmem:[%s5654_s3 + $0x268] sm:$0xff]  ;;  %v3098_v44 = vld [vmem:[%s5656_s5 + $0xa40] sm:$0xff] }
 0x945   :  { %v1490_v28 = vpop.f32.mrf.mxu2 }
 0x946   :  { %1517 = vmatpush.msrb.mxu0 %v1490_v28 }
 0x947   :  { %2996 = vmatmul.msk.f32.vlgmr.msrb.gmra.mxu0 %vm158_vm0, %v4383_v27  ;;  %v3007_v27 = vld [vmem:[%s5656_s5 + $0x850] sm:$0xff] }
 0x948   :  { %1543 = vmatpush.msra.mxu0 %v3012_v12  ;;  %v3088_v12 = vld [vmem:[%s5654_s3 + $0x278] sm:$0xff] }
 0x94a   :  { %1544 = vmatpush.msra.mxu0 %v3011_v37  ;;  %v3087_v37 = vld [vmem:[%s5654_s3 + $0x270] sm:$0xff] }
 0x94c   :  { %1545 = vmatpush.msra.mxu0 %v3010_v13  ;;  %v3085_v13 = vld [vmem:[%s5654_s3 + $0x260] sm:$0xff] }
 0x94e   :  { %1546 = vmatpush.msra.mxu0 %v3009_v52  ;;  %v3084_v52 = vld [vmem:[%s5654_s3 + $0x258] sm:$0xff] }
 0x950   :  { %1547 = vmatpush.msra.mxu0 %v3008_v14  ;;  %v3082_v14 = vld [vmem:[%s5654_s3 + $0x248] sm:$0xff] }
 0x952   :  { %1548 = vmatpush.msra.mxu0 %v3007_v27  ;;  %v3081_v27 = vld [vmem:[%s5654_s3 + $0x240] sm:$0xff] }
 0x954   :  { %1549 = vmatpush.msra.mxu0 %v3006_v50  ;;  %v3080_v50 = vld [vmem:[%s5654_s3 + $0x238] sm:$0xff] }
 0x956   :  { %1550 = vmatpush.msra.mxu0 %v3005_v15  ;;  %v3079_v15 = vld [vmem:[%s5654_s3 + $0x230] sm:$0xff] }
 0x958   :  { %1551 = vmatpush.msra.mxu0 %v3004_v20  ;;  %v3318_v20 = vld [vmem:[%s5657_s6 + $0xf] ss:$0 sm:$0xff] }
 0x95a   :  { %1552 = vmatpush.msra.mxu0 %v3003_v18  ;;  %v3078_v18 = vld [vmem:[%s5654_s3 + $0x228] sm:$0xff] }
 0x95c   :  { %1553 = vmatpush.msra.mxu0 %v3002_v46  ;;  %v3077_v46 = vld [vmem:[%s5654_s3 + $0x220] sm:$0xff] }
 0x95d   :  { %v1700_v7 = vpop.f32.mrf.mxu3 }
 0x95e   :  { %1554 = vmatpush.msra.mxu0 %v3001_v16 }
 0x960   :  { %1555 = vmatpush.msra.mxu0 %v3000_v21  ;;  %v3076_v21 = vld [vmem:[%s5654_s3 + $0x218] sm:$0xff] }
 0x962   :  { %1556 = vmatpush.msra.mxu0 %v2999_v23  ;;  %v3075_v23 = vld [vmem:[%s5654_s3 + $0x210] sm:$0xff] }
 0x964   :  { %1557 = vmatpush.msra.mxu0 %v2998_v17 }
 0x966   :  { %1558 = vmatpush.msra.mxu0 %v2997_v26  ;;  %v3319_v26 = vld [vmem:[%s5657_s6 + $0x10] ss:$0 sm:$0xff] }
 0x967   :  { %1559 = vmatmul.f32.vlgmr.msra.gmra.mxu0 %v4742_v8 }
 0x9c4   :  { %v4802_v29 = vpop.f32.mrf.mxu0 }
 0x9c5   :  { %v1520_v16 = vadd.f32 %v3318_v20, %v4802_v29  ;;  %v3074_v29 = vld [vmem:[%s5654_s3 + $0x208] sm:$0xff] }
 0x9c7   :  { %v1522_v17 = vadd.f32 %v1520_v16, %v4738_v60  ;;  %v3320_v60 = vld [vmem:[%s5657_s6 + $0x11] ss:$0 sm:$0xff] }
 0x9e4   :  { %v1560_v30 = vpop.f32.mrf.mxu0 }
 0x9e5   :  { %1587 = vmatpush.msrb.mxu1 %v1560_v30  ;;  %v3073_v30 = vld [vmem:[%s5654_s3 + $0x200] sm:$0xff] }
 0x9e6   :  { %3015 = vmatmul.msk.f32.vlgmr.msrb.gmra.mxu1 %vm158_vm0, %v4488_v62  ;;  %v3026_v62 = vld [vmem:[%s5656_s5 + $0x8d0] sm:$0xff] }
 0x9e7   :  { %1613 = vmatpush.msra.mxu1 %v3031_v31  ;;  %v1523_v31 = vmax.f32 %v1522_v17, 0.0  ;;  %v3121_v17 = vld [vmem:[%s5656_s5 + $0xae8] sm:$0xff] }
 0x9e9   :  { %1614 = vmatpush.msra.mxu1 %v3030_v32 }
 0x9eb   :  { %1615 = vmatpush.msra.mxu1 %v3029_v34 }
 0x9ed   :  { %1616 = vmatpush.msra.mxu1 %v3028_v35 }
 0x9ef   :  { %1617 = vmatpush.msra.mxu1 %v3027_v36 }
 0x9f1   :  { %1618 = vmatpush.msra.mxu1 %v3026_v62  ;;  %v3321_v62 = vld [vmem:[%s5657_s6 + $0x12] ss:$0 sm:$0xff] }
 0x9f3   :  { %1619 = vmatpush.msra.mxu1 %v3025_v39 }
 0x9f5   :  { %1620 = vmatpush.msra.mxu1 %v3024_v19 }
 0x9f7   :  { %1621 = vmatpush.msra.mxu1 %v3023_v40 }
 0x9f9   :  { %1622 = vmatpush.msra.mxu1 %v3022_v57 }
 0x9fb   :  { %1623 = vmatpush.msra.mxu1 %v3021_v42 }
 0x9fd   :  { %1624 = vmatpush.msra.mxu1 %v3020_v43  ;;  %v3104_v43 = vld [vmem:[%s5656_s5 + $0xa70] sm:$0xff] }
 0x9ff   :  { %1625 = vmatpush.msra.mxu1 %v3019_v3  ;;  %v3101_v3 = vld [vmem:[%s5656_s5 + $0xa58] sm:$0xff] }
 0xa01   :  { %1626 = vmatpush.msra.mxu1 %v3018_v24  ;;  %v3161_v24 = vld [vmem:[%s5656_s5 + $0xbf8] sm:$0xff] }
 0xa03   :  { %1627 = vmatpush.msra.mxu1 %v3017_v22  ;;  %v3100_v22 = vld [vmem:[%s5656_s5 + $0xa50] sm:$0xff] }
 0xa05   :  { %1628 = vmatpush.msra.mxu1 %v3016_v25  ;;  %v3160_v25 = vld [vmem:[%s5656_s5 + $0xbf0] sm:$0xff] }
 0xa06   :  { %1629 = vmatmul.f32.vlgmr.msra.gmra.mxu1 %v4745_v9 }
 0xa63   :  { %v4855_v59 = vpop.f32.mrf.mxu1 }
 0xa64   :  { %v1590_v32 = vadd.f32 %v3319_v26, %v4855_v59  ;;  %v3099_v59 = vld [vmem:[%s5656_s5 + $0xa48] sm:$0xff]  ;;  %v3120_v26 = vld [vmem:[%s5656_s5 + $0xae0] sm:$0xff] }
 0xa66   :  { %v1592_v34 = vadd.f32 %v1590_v32, %v4742_v8  ;;  %v3105_v8 = vld [vmem:[%s5656_s5 + $0xa78] sm:$0xff]  ;;  %v3116_v32 = vld [vmem:[%s5656_s5 + $0xac0] sm:$0xff] }
 0xa67   :  { %1887 = vmatpush.msrb.mxu1 %v3105_v8  ;;  %v5160_v8 = vld [vmem:[%s5653_s2 + $0x8] sm:$0xff] }
 0xa68   :  { %v1593_v36 = vmax.f32 %v1592_v34, 0.0  ;;  %v3114_v34 = vld [vmem:[%s5656_s5 + $0xab0] sm:$0xff] }
 0xa69   :  { %1888 = vmatpush.msrb.mxu1 %v3104_v43 }
 0xa83   :  { %v1630_v45 = vpop.f32.mrf.mxu1 }
 0xa84   :  { %1657 = vmatpush.msrb.mxu2 %v1630_v45  ;;  %v3097_v45 = vld [vmem:[%s5656_s5 + $0xa38] sm:$0xff] }
 0xa85   :  { %3034 = vmatmul.msk.f32.vlgmr.msrb.gmra.mxu2 %vm158_vm0, %v4550_v33  ;;  %v3065_v33 = vld [vmem:[%s5656_s5 + $0x9d8] sm:$0xff] }
 0xa86   :  { %1727 = vmatpush.msra.mxu2 %v1700_v7  ;;  %v3095_v7 = vld [vmem:[%s5656_s5 + $0xa28] sm:$0xff] }
 0xa88   :  { %1753 = vmatpush.msrb.mxu2 %v3069_v47  ;;  %v3096_v47 = vld [vmem:[%s5656_s5 + $0xa30] sm:$0xff] }
 0xa8a   :  { %1754 = vmatpush.msrb.mxu2 %v3068_v48  ;;  %v3094_v48 = vld [vmem:[%s5656_s5 + $0xa20] sm:$0xff] }
 0xa8c   :  { %1755 = vmatpush.msrb.mxu2 %v3067_v1  ;;  %v3093_v1 = vld [vmem:[%s5656_s5 + $0xa18] sm:$0xff] }
 0xa8d   :  { %3053 = vmatmul.msk.f32.vlgmr.msra.gmra.mxu2 %vm158_vm0, %v4557_v41  ;;  %v3060_v41 = vld [vmem:[%s5656_s5 + $0x9b0] sm:$0xff] }
 0xa8e   :  { %1756 = vmatpush.msrb.mxu2 %v3066_v49  ;;  %v3092_v49 = vld [vmem:[%s5656_s5 + $0xa10] sm:$0xff] }
 0xa90   :  { %1757 = vmatpush.msrb.mxu2 %v3065_v33  ;;  %v3322_v33 = vld [vmem:[%s5657_s6 + $0x13] ss:$0 sm:$0xff] }
 0xa92   :  { %1758 = vmatpush.msrb.mxu2 %v3064_v5  ;;  %v3091_v5 = vld [vmem:[%s5656_s5 + $0xa08] sm:$0xff] }
 0xa94   :  { %1759 = vmatpush.msrb.mxu2 %v3063_v51  ;;  %v3159_v51 = vld [vmem:[%s5656_s5 + $0xbe8] sm:$0xff] }
 0xa96   :  { %1760 = vmatpush.msrb.mxu2 %v3062_v54 }
 0xa98   :  { %1761 = vmatpush.msrb.mxu2 %v3061_v56 }
 0xa9a   :  { %1762 = vmatpush.msrb.mxu2 %v3060_v41  ;;  %v3090_v41 = vld [vmem:[%s5656_s5 + $0xa00] sm:$0xff] }
 0xa9c   :  { %1763 = vmatpush.msrb.mxu2 %v3059_v53  ;;  %v3158_v53 = vld [vmem:[%s5656_s5 + $0xbe0] sm:$0xff] }
 0xa9e   :  { %1764 = vmatpush.msrb.mxu2 %v3058_v58 }
 0xaa0   :  { %1765 = vmatpush.msrb.mxu2 %v3057_v55  ;;  %v3157_v55 = vld [vmem:[%s5656_s5 + $0xbd8] sm:$0xff] }
 0xaa2   :  { %1766 = vmatpush.msrb.mxu2 %v3056_v61  ;;  %v3156_v61 = vld [vmem:[%s5656_s5 + $0xbd0] sm:$0xff] }
 0xaa4   :  { %1767 = vmatpush.msrb.mxu2 %v3055_v0 }
 0xaa6   :  { %1768 = vmatpush.msrb.mxu2 %v3054_v4  ;;  %v3155_v4 = vld [vmem:[%s5656_s5 + $0xbc8] sm:$0xff] }
 0xaa7   :  { %1769 = vmatmul.f32.vlgmr.msrb.gmra.mxu2 %v4910_v6 }
 0xb08   :  { %v1659_v63 = vpop.f32.mrf.mxu2 }
 0xb09   :  { %v1660_v35 = vadd.f32 %v3320_v60, %v1659_v63  ;;  %v3153_v63 = vld [vmem:[%s5656_s5 + $0xbb8] sm:$0xff] }
 0xb0a   :  { %v3115_v60 = vld [vmem:[%s5656_s5 + $0xab8] sm:$0xff] }
 0xb0b   :  { %v1662_v39 = vadd.f32 %v1660_v35, %v4745_v9  ;;  %v3103_v9 = vld [vmem:[%s5656_s5 + $0xa68] sm:$0xff] }
 0xb0c   :  { %1889 = vmatpush.msrb.mxu1 %v3103_v9  ;;  %v3113_v35 = vld [vmem:[%s5656_s5 + $0xaa8] sm:$0xff]  ;;  %v3142_v9 = vld [vmem:[%s5656_s5 + $0xb78] sm:$0xff] }
 0xb0d   :  { %v1663_v40 = vmax.f32 %v1662_v39, 0.0  ;;  %v3110_v39 = vld [vmem:[%s5656_s5 + $0xa90] sm:$0xff] }
 0xb10   :  { %v1729_v10 = vpop.f32.mrf.mxu2 }
 0xb11   :  { %v1730_v19 = vadd.f32 %v3321_v62, %v1729_v10  ;;  %v3152_v10 = vld [vmem:[%s5656_s5 + $0xbb0] sm:$0xff]  ;;  %v3111_v62 = vld [vmem:[%s5656_s5 + $0xa98] sm:$0xff] }
 0xb13   :  { %v1732_v57 = vadd.f32 %v1730_v19, %v4748_v11  ;;  %v3102_v11 = vld [vmem:[%s5656_s5 + $0xa60] sm:$0xff]  ;;  %v3109_v19 = vld [vmem:[%s5656_s5 + $0xa88] sm:$0xff] }
 0xb14   :  { %1890 = vmatpush.msrb.mxu1 %v3102_v11  ;;  %v3141_v11 = vld [vmem:[%s5656_s5 + $0xb70] sm:$0xff] }
 0xb15   :  { %v1733_v42 = vmax.f32 %v1732_v57, 0.0 }
 0xb16   :  { %1891 = vmatpush.msrb.mxu1 %v3101_v3  ;;  %v3140_v3 = vld [vmem:[%s5656_s5 + $0xb68] sm:$0xff] }
 0xb18   :  { %1892 = vmatpush.msrb.mxu1 %v3100_v22  ;;  %v3138_v22 = vld [vmem:[%s5656_s5 + $0xb58] sm:$0xff] }
 0xb1a   :  { %1893 = vmatpush.msrb.mxu1 %v3099_v59  ;;  %v3136_v59 = vld [vmem:[%s5656_s5 + $0xb48] sm:$0xff] }
 0xb1c   :  { %1894 = vmatpush.msrb.mxu1 %v3098_v44  ;;  %v3135_v44 = vld [vmem:[%s5656_s5 + $0xb40] sm:$0xff] }
 0xb1e   :  { %1895 = vmatpush.msrb.mxu1 %v3097_v45  ;;  %v3134_v45 = vld [vmem:[%s5656_s5 + $0xb38] sm:$0xff] }
 0xb20   :  { %1896 = vmatpush.msrb.mxu1 %v3096_v47  ;;  %v3133_v47 = vld [vmem:[%s5656_s5 + $0xb30] sm:$0xff] }
 0xb22   :  { %1897 = vmatpush.msrb.mxu1 %v3095_v7  ;;  %v3132_v7 = vld [vmem:[%s5656_s5 + $0xb28] sm:$0xff] }
 0xb24   :  { %1898 = vmatpush.msrb.mxu1 %v3094_v48  ;;  %v3131_v48 = vld [vmem:[%s5656_s5 + $0xb20] sm:$0xff] }
 0xb26   :  { %1899 = vmatpush.msrb.mxu1 %v3093_v1  ;;  %v3130_v1 = vld [vmem:[%s5656_s5 + $0xb18] sm:$0xff] }
 0xb28   :  { %1900 = vmatpush.msrb.mxu1 %v3092_v49  ;;  %v3129_v49 = vld [vmem:[%s5656_s5 + $0xb10] sm:$0xff] }
 0xb2a   :  { %v1770_v28 = vpop.f32.mrf.mxu2  ;;  %1901 = vmatpush.msrb.mxu1 %v3091_v5  ;;  %v3127_v5 = vld [vmem:[%s5656_s5 + $0xb00] sm:$0xff] }
 0xb2b   :  { %1797 = vmatpush.msrb.mxu0 %v1770_v28  ;;  %v3151_v28 = vld [vmem:[%s5656_s5 + $0xba8] sm:$0xff] }
 0xb2c   :  { %3072 = vmatmul.msk.f32.vlgmr.msrb.gmra.mxu0 %vm158_vm0, %v4564_v38  ;;  %v3083_v38 = vld [vmem:[%s5654_s3 + $0x250] sm:$0xff]  ;;  %1902 = vmatpush.msrb.mxu1 %v3090_v41 }
 0xb2d   :  { %1832 = vmatpush.msra.mxu0 %v3088_v12  ;;  %v3150_v12 = vld [vmem:[%s5656_s5 + $0xba0] sm:$0xff]  ;;  %v5222_v41 = vld [vmem:[%s5653_s2 + $0x10] sm:$0xff] }
 0xb2f   :  { %1833 = vmatpush.msra.mxu0 %v3087_v37  ;;  %v3149_v37 = vld [vmem:[%s5656_s5 + $0xb98] sm:$0xff] }
 0xb31   :  { %1834 = vmatpush.msra.mxu0 %v3086_v2  ;;  %v3148_v2 = vld [vmem:[%s5656_s5 + $0xb90] sm:$0xff] }
 0xb33   :  { %1835 = vmatpush.msra.mxu0 %v3085_v13  ;;  %v3147_v13 = vld [vmem:[%s5656_s5 + $0xb88] sm:$0xff] }
 0xb35   :  { %1836 = vmatpush.msra.mxu0 %v3084_v52  ;;  %v3146_v52 = vld [vmem:[%s5656_s5 + $0xb80] sm:$0xff] }
 0xb37   :  { %1837 = vmatpush.msra.mxu0 %v3083_v38  ;;  %v5084_v38 = vld [vmem:[%s5655_s4 + $0x4] ss:$0 sm:$0xff] }
 0xb39   :  { %1838 = vmatpush.msra.mxu0 %v3082_v14 }
 0xb3b   :  { %1839 = vmatpush.msra.mxu0 %v3081_v27 }
 0xb3d   :  { %1840 = vmatpush.msra.mxu0 %v3080_v50 }
 0xb3f   :  { %1841 = vmatpush.msra.mxu0 %v3079_v15 }
 0xb41   :  { %1842 = vmatpush.msra.mxu0 %v3078_v18 }
 0xb43   :  { %1843 = vmatpush.msra.mxu0 %v3077_v46  ;;  %v5099_v46 = vld [vmem:[%s5653_s2] sm:$0xff] }
 0xb45   :  { %1844 = vmatpush.msra.mxu0 %v3076_v21  ;;  %v3123_v21 = vld [vmem:[%s5656_s5 + $0xaf8] sm:$0xff] }
 0xb47   :  { %1845 = vmatpush.msra.mxu0 %v3075_v23  ;;  %v3122_v23 = vld [vmem:[%s5656_s5 + $0xaf0] sm:$0xff] }
 0xb49   :  { %1846 = vmatpush.msra.mxu0 %v3074_v29  ;;  %v3119_v29 = vld [vmem:[%s5656_s5 + $0xad8] sm:$0xff] }
 0xb4b   :  { %1847 = vmatpush.msra.mxu0 %v3073_v30  ;;  %v3118_v30 = vld [vmem:[%s5656_s5 + $0xad0] sm:$0xff] }
 0xb4c   :  { %1848 = vmatmul.f32.vlgmr.msra.gmra.mxu0 %v1523_v31  ;;  %v3117_v31 = vld [vmem:[%s5656_s5 + $0xac8] sm:$0xff] }
 0xb4d   :  { %2097 = vmatpush.msrb.mxu0 %v3161_v24  ;;  %v3139_v24 = vld [vmem:[%s5656_s5 + $0xb60] sm:$0xff] }
 0xb4f   :  { %2098 = vmatpush.msrb.mxu0 %v3160_v25  ;;  %v3137_v25 = vld [vmem:[%s5656_s5 + $0xb50] sm:$0xff] }
 0xb51   :  { %2099 = vmatpush.msrb.mxu0 %v3159_v51 }
 0xb53   :  { %2100 = vmatpush.msrb.mxu0 %v3158_v53 }
 0xb54   :  { %1851 = vmatmul.f32.gmra.mxu0 %v1593_v36  ;;  %v3112_v36 = vld [vmem:[%s5656_s5 + $0xaa0] sm:$0xff] }
 0xb55   :  { %2101 = vmatpush.msrb.mxu0 %v3157_v55 }
 0xb57   :  { %2102 = vmatpush.msrb.mxu0 %v3156_v61  ;;  %v3179_v61 = vld [vmem:[%s5656_s5 + $0xc70] sm:$0xff] }
 0xb59   :  { %2103 = vmatpush.msrb.mxu0 %v3155_v4  ;;  %v3177_v4 = vld [vmem:[%s5656_s5 + $0xc60] sm:$0xff] }
 0xb5c   :  { %1854 = vmatmul.f32.gmra.mxu0 %v1663_v40  ;;  %v3108_v40 = vld [vmem:[%s5656_s5 + $0xa80] sm:$0xff] }
 0xb64   :  { %1857 = vmatmul.f32.gmra.mxu0 %v1733_v42 }
 0xba9   :  { %v1799_v54 = vpop.f32.mrf.mxu0 }
 0xbaa   :  { %v1800_v56 = vadd.f32 %v3322_v33, %v1799_v54  ;;  %v3128_v33 = vld [vmem:[%s5656_s5 + $0xb08] sm:$0xff] }
 0xbac   :  { %v1802_v58 = vadd.f32 %v1800_v56, %v4910_v6  ;;  %v3154_v6 = vld [vmem:[%s5656_s5 + $0xbc0] sm:$0xff] }
 0xbad   :  { %2104 = vmatpush.msrb.mxu0 %v3154_v6  ;;  %v5241_v6 = vld [vmem:[%s5653_s2 + $0x18] sm:$0xff] }
 0xbae   :  { %v1803_v0 = vmax.f32 %v1802_v58, 0.0  ;;  %v3180_v58 = vld [vmem:[%s5656_s5 + $0xc78] sm:$0xff] }
 0xbaf   :  { %2105 = vmatpush.msrb.mxu0 %v3153_v63  ;;  %v3176_v63 = vld [vmem:[%s5656_s5 + $0xc58] sm:$0xff] }
 0xbb0   :  { %1860 = vmatmul.f32.gmra.mxu0 %v1803_v0  ;;  %v3178_v0 = vld [vmem:[%s5656_s5 + $0xc68] sm:$0xff] }
 0xbb1   :  { %2106 = vmatpush.msrb.mxu0 %v3152_v10  ;;  %v3175_v10 = vld [vmem:[%s5656_s5 + $0xc50] sm:$0xff] }
 0xbb3   :  { %2107 = vmatpush.msrb.mxu0 %v3151_v28  ;;  %v3174_v28 = vld [vmem:[%s5656_s5 + $0xc48] sm:$0xff] }
 0xbb5   :  { %2108 = vmatpush.msrb.mxu0 %v3150_v12  ;;  %v3173_v12 = vld [vmem:[%s5656_s5 + $0xc40] sm:$0xff] }
 0xbb7   :  { %2109 = vmatpush.msrb.mxu0 %v3149_v37  ;;  %v3172_v37 = vld [vmem:[%s5656_s5 + $0xc38] sm:$0xff] }
 0xbb9   :  { %2110 = vmatpush.msrb.mxu0 %v3148_v2  ;;  %v3171_v2 = vld [vmem:[%s5656_s5 + $0xc30] sm:$0xff] }
 0xbbb   :  { %2111 = vmatpush.msrb.mxu0 %v3147_v13  ;;  %v3170_v13 = vld [vmem:[%s5656_s5 + $0xc28] sm:$0xff] }
 0xbbd   :  { %2112 = vmatpush.msrb.mxu0 %v3146_v52  ;;  %v3169_v52 = vld [vmem:[%s5656_s5 + $0xc20] sm:$0xff] }
 0xbc9   :  { %v1849_v14 = vpop.f32.mrf.mxu0 }
 0xbca   :  { %v5087_v27 = vadd.f32 %v5084_v38, %v1849_v14  ;;  %v3168_v14 = vld [vmem:[%s5656_s5 + $0xc18] sm:$0xff] }
 0xbcc   :  { %1903 = vmatmul.f32.vlgmr.msrb.gmra.mxu1 %v5087_v27 }
 0xbd1   :  { %v1852_v50 = vpop.f32.mrf.mxu0 }
 0xbd2   :  { %v5152_v57 = vadd.f32 %v5084_v38, %v1852_v50  ;;  %v3167_v50 = vld [vmem:[%s5656_s5 + $0xc10] sm:$0xff] }
 0xbd9   :  { %v5090_v15 = vpop.f32.mrf.mxu0 }
 0xbda   :  { %v5214_v51 = vadd.f32 %v5084_v38, %v5090_v15  ;;  %v3166_v15 = vld [vmem:[%s5656_s5 + $0xc08] sm:$0xff] }
 0xbe1   :  { %v1858_v20 = vpop.f32.mrf.mxu0 }
 0xbe2   :  { %v5093_v18 = vadd.f32 %v5084_v38, %v1858_v20  ;;  %v3165_v20 = vld [vmem:[%s5656_s5 + $0xc00] sm:$0xff] }
 0xbe4   :  { %2113 = vmatmul.f32.vlgmr.msrb.gmra.mxu0 %v5093_v18 }
 0xc2d   :  { %v1861_v56 = vpop.f32.mrf.mxu0 }
 0xc49   :  { %v1904_v16 = vpop.f32.mrf.mxu1 }
 0xc4a   :  { %1931 = vmatpush.msrb.mxu3 %v1904_v16  ;;  %v5282_v16 = vadd.f32 %v5084_v38, %v1861_v56  ;;  %v3198_v38 = vld [vmem:[%s5654_s3 + $0x2f0] sm:$0xff]  ;;  %v3212_v56 = vld [vmem:[%s5656_s5 + $0xcd8] sm:$0xff] }
 0xc4b   :  { %3107 = vmatmul.msk.f32.vlgmr.msrb.gmra.mxu3 %vm158_vm0, %v5099_v46 }
 0xc4c   :  { %1957 = vmatpush.msra.mxu3 %v3123_v21 }
 0xc4e   :  { %1958 = vmatpush.msra.mxu3 %v3122_v23 }
 0xc50   :  { %1959 = vmatpush.msra.mxu3 %v3121_v17  ;;  %v5288_v17 = vld [vmem:[%s5653_s2 + $0x20] sm:$0xff] }
 0xc52   :  { %1960 = vmatpush.msra.mxu3 %v3120_v26 }
 0xc54   :  { %1961 = vmatpush.msra.mxu3 %v3119_v29  ;;  %v3199_v29 = vld [vmem:[%s5654_s3 + $0x2f8] sm:$0xff] }
 0xc56   :  { %1962 = vmatpush.msra.mxu3 %v3118_v30  ;;  %v3197_v30 = vld [vmem:[%s5654_s3 + $0x2e8] sm:$0xff] }
 0xc58   :  { %1963 = vmatpush.msra.mxu3 %v3117_v31  ;;  %v3196_v31 = vld [vmem:[%s5654_s3 + $0x2e0] sm:$0xff] }
 0xc5a   :  { %1964 = vmatpush.msra.mxu3 %v3116_v32  ;;  %v3195_v32 = vld [vmem:[%s5654_s3 + $0x2d8] sm:$0xff] }
 0xc5c   :  { %1965 = vmatpush.msra.mxu3 %v3115_v60  ;;  %v3194_v60 = vld [vmem:[%s5654_s3 + $0x2d0] sm:$0xff] }
 0xc5e   :  { %1966 = vmatpush.msra.mxu3 %v3114_v34  ;;  %v3193_v34 = vld [vmem:[%s5654_s3 + $0x2c8] sm:$0xff] }
 0xc60   :  { %1967 = vmatpush.msra.mxu3 %v3113_v35  ;;  %v3192_v35 = vld [vmem:[%s5654_s3 + $0x2c0] sm:$0xff] }
 0xc61   :  { %v2114_v55 = vpop.f32.mrf.mxu0 }
 0xc62   :  { %1968 = vmatpush.msra.mxu3 %v3112_v36  ;;  %v3191_v36 = vld [vmem:[%s5654_s3 + $0x2b8] sm:$0xff] }
 0xc64   :  { %1969 = vmatpush.msra.mxu3 %v3111_v62  ;;  %v3190_v62 = vld [vmem:[%s5654_s3 + $0x2b0] sm:$0xff] }
 0xc66   :  { %1970 = vmatpush.msra.mxu3 %v3110_v39  ;;  %v3324_v39 = vld [vmem:[%s5657_s6 + $0x14] ss:$0 sm:$0xff] }
 0xc68   :  { %1971 = vmatpush.msra.mxu3 %v3109_v19  ;;  %v3189_v19 = vld [vmem:[%s5654_s3 + $0x2a8] sm:$0xff] }
 0xc6a   :  { %1972 = vmatpush.msra.mxu3 %v3108_v40  ;;  %v3188_v40 = vld [vmem:[%s5654_s3 + $0x2a0] sm:$0xff] }
 0xc6b   :  { %1973 = vmatmul.f32.vlgmr.msra.gmra.mxu3 %v5152_v57 }
 0xcce   :  { %v5155_v42 = vpop.f32.mrf.mxu3 }
 0xcee   :  { %v1974_v43 = vpop.f32.mrf.mxu3 }
 0xcef   :  { %2001 = vmatpush.msra.mxu2 %v1974_v43  ;;  %v1934_v43 = vadd.f32 %v3324_v39, %v5155_v42  ;;  %v3185_v42 = vld [vmem:[%s5654_s3 + $0x288] sm:$0xff]  ;;  %v5461_v39 = vld [vmem:[%s5655_s4 + $0x5] ss:$0 sm:$0xff] }
 0xcf0   :  { %3126 = vmatmul.msk.f32.vlgmr.msra.gmra.mxu2 %vm158_vm0, %v5160_v8 }
 0xcf1   :  { %2027 = vmatpush.msrb.mxu2 %v3142_v9  ;;  %v3187_v9 = vld [vmem:[%s5654_s3 + $0x298] sm:$0xff] }
 0xcf3   :  { %2028 = vmatpush.msrb.mxu2 %v3141_v11  ;;  %v3186_v11 = vld [vmem:[%s5654_s3 + $0x290] sm:$0xff] }
 0xcf5   :  { %2029 = vmatpush.msrb.mxu2 %v3140_v3  ;;  %v1936_v3 = vadd.f32 %v1934_v43, %v5087_v27  ;;  %v3326_v27 = vld [vmem:[%s5657_s6 + $0x16] ss:$0 sm:$0xff] }
 0xcf7   :  { %2030 = vmatpush.msrb.mxu2 %v3139_v24  ;;  %v3325_v24 = vld [vmem:[%s5657_s6 + $0x15] ss:$0 sm:$0xff] }
 0xcf9   :  { %2031 = vmatpush.msrb.mxu2 %v3138_v22  ;;  %v3184_v22 = vld [vmem:[%s5654_s3 + $0x280] sm:$0xff] }
 0xcfb   :  { %2032 = vmatpush.msrb.mxu2 %v3137_v25  ;;  %v1937_v25 = vmax.f32 %v1936_v3, 0.0 }
 0xcfd   :  { %2033 = vmatpush.msrb.mxu2 %v3136_v59 }
 0xcff   :  { %2034 = vmatpush.msrb.mxu2 %v3135_v44 }
 0xd01   :  { %2035 = vmatpush.msrb.mxu2 %v3134_v45 }
 0xd03   :  { %2036 = vmatpush.msrb.mxu2 %v3133_v47 }
 0xd05   :  { %2037 = vmatpush.msrb.mxu2 %v3132_v7  ;;  %v3327_v7 = vld [vmem:[%s5657_s6 + $0x17] ss:$0 sm:$0xff] }
 0xd07   :  { %2038 = vmatpush.msrb.mxu2 %v3131_v48 }
 0xd09   :  { %2039 = vmatpush.msrb.mxu2 %v3130_v1 }
 0xd0b   :  { %2040 = vmatpush.msrb.mxu2 %v3129_v49 }
 0xd0d   :  { %2041 = vmatpush.msrb.mxu2 %v3128_v33 }
 0xd0f   :  { %2042 = vmatpush.msrb.mxu2 %v3127_v5 }
 0xd10   :  { %2043 = vmatmul.f32.vlgmr.msrb.gmra.mxu2 %v5214_v51 }
 0xd73   :  { %v5217_v54 = vpop.f32.mrf.mxu2 }
 0xd74   :  { %v2004_v59 = vadd.f32 %v3325_v24, %v5217_v54  ;;  %v3215_v54 = vld [vmem:[%s5656_s5 + $0xcf0] sm:$0xff] }
 0xd76   :  { %v2006_v44 = vadd.f32 %v2004_v59, %v5152_v57  ;;  %v3216_v57 = vld [vmem:[%s5656_s5 + $0xcf8] sm:$0xff]  ;;  %v3231_v59 = vld [vmem:[%s5656_s5 + $0xd60] sm:$0xff] }
 0xd77   :  { %2301 = vmatpush.msra.mxu2 %v3216_v57  ;;  %v3219_v57 = vld [vmem:[%s5656_s5 + $0xd00] sm:$0xff] }
 0xd78   :  { %v2007_v47 = vmax.f32 %v2006_v44, 0.0  ;;  %v3228_v44 = vld [vmem:[%s5656_s5 + $0xd48] sm:$0xff] }
 0xd79   :  { %2302 = vmatpush.msra.mxu2 %v3215_v54 }
 0xd93   :  { %v2044_v53 = vpop.f32.mrf.mxu2 }
 0xd94   :  { %2071 = vmatpush.msra.mxu1 %v2044_v53  ;;  %v3272_v53 = vld [vmem:[%s5656_s5 + $0xe78] sm:$0xff] }
 0xd95   :  { %3145 = vmatmul.msk.f32.vlgmr.msra.gmra.mxu1 %vm158_vm0, %v5222_v41 }
 0xd96   :  { %2141 = vmatpush.msrb.mxu1 %v2114_v55  ;;  %v3271_v55 = vld [vmem:[%s5656_s5 + $0xe70] sm:$0xff] }
 0xd98   :  { %2167 = vmatpush.msra.mxu1 %v3180_v58  ;;  %v3211_v58 = vld [vmem:[%s5656_s5 + $0xcd0] sm:$0xff] }
 0xd9a   :  { %2168 = vmatpush.msra.mxu1 %v3179_v61  ;;  %v3210_v61 = vld [vmem:[%s5656_s5 + $0xcc8] sm:$0xff] }
 0xd9c   :  { %2169 = vmatpush.msra.mxu1 %v3178_v0  ;;  %v3209_v0 = vld [vmem:[%s5656_s5 + $0xcc0] sm:$0xff] }
 0xd9d   :  { %3164 = vmatmul.msk.f32.vlgmr.msrb.gmra.mxu1 %vm158_vm0, %v5241_v6 }
 0xd9e   :  { %2170 = vmatpush.msra.mxu1 %v3177_v4  ;;  %v3208_v4 = vld [vmem:[%s5656_s5 + $0xcb8] sm:$0xff] }
 0xda0   :  { %2171 = vmatpush.msra.mxu1 %v3176_v63  ;;  %v3207_v63 = vld [vmem:[%s5656_s5 + $0xcb0] sm:$0xff] }
 0xda2   :  { %2172 = vmatpush.msra.mxu1 %v3175_v10  ;;  %v3206_v10 = vld [vmem:[%s5656_s5 + $0xca8] sm:$0xff] }
 0xda4   :  { %2173 = vmatpush.msra.mxu1 %v3174_v28  ;;  %v3205_v28 = vld [vmem:[%s5656_s5 + $0xca0] sm:$0xff] }
 0xda6   :  { %2174 = vmatpush.msra.mxu1 %v3173_v12  ;;  %v3204_v12 = vld [vmem:[%s5656_s5 + $0xc98] sm:$0xff] }
 0xda8   :  { %2175 = vmatpush.msra.mxu1 %v3172_v37  ;;  %v3203_v37 = vld [vmem:[%s5656_s5 + $0xc90] sm:$0xff] }
 0xdaa   :  { %2176 = vmatpush.msra.mxu1 %v3171_v2  ;;  %v3328_v2 = vld [vmem:[%s5657_s6 + $0x18] ss:$0 sm:$0xff] }
 0xdac   :  { %2177 = vmatpush.msra.mxu1 %v3170_v13  ;;  %v3202_v13 = vld [vmem:[%s5656_s5 + $0xc88] sm:$0xff] }
 0xdae   :  { %2178 = vmatpush.msra.mxu1 %v3169_v52  ;;  %v3270_v52 = vld [vmem:[%s5656_s5 + $0xe68] sm:$0xff] }
 0xdb0   :  { %2179 = vmatpush.msra.mxu1 %v3168_v14 }
 0xdb2   :  { %2180 = vmatpush.msra.mxu1 %v3167_v50 }
 0xdb4   :  { %2181 = vmatpush.msra.mxu1 %v3166_v15  ;;  %v3201_v15 = vld [vmem:[%s5656_s5 + $0xc80] sm:$0xff] }
 0xdb6   :  { %2182 = vmatpush.msra.mxu1 %v3165_v20  ;;  %v3269_v20 = vld [vmem:[%s5656_s5 + $0xe60] sm:$0xff] }
 0xdb7   :  { %2183 = vmatmul.f32.vlgmr.msra.gmra.mxu1 %v5282_v16 }
 0xe12   :  { %v2073_v21 = vpop.f32.mrf.mxu1 }
 0xe13   :  { %v2074_v45 = vadd.f32 %v3326_v27, %v2073_v21  ;;  %v3230_v27 = vld [vmem:[%s5656_s5 + $0xd58] sm:$0xff] }
 0xe15   :  { %v2076_v48 = vadd.f32 %v2074_v45, %v5214_v51  ;;  %v3214_v51 = vld [vmem:[%s5656_s5 + $0xce8] sm:$0xff]  ;;  %v3227_v45 = vld [vmem:[%s5656_s5 + $0xd40] sm:$0xff] }
 0xe16   :  { %2303 = vmatpush.msra.mxu2 %v3214_v51 }
 0xe17   :  { %v2077_v49 = vmax.f32 %v2076_v48, 0.0  ;;  %v3224_v48 = vld [vmem:[%s5656_s5 + $0xd28] sm:$0xff] }
 0xe1a   :  { %v2143_v23 = vpop.f32.mrf.mxu1 }
 0xe1b   :  { %v2144_v1 = vadd.f32 %v3327_v7, %v2143_v23  ;;  %v3268_v23 = vld [vmem:[%s5656_s5 + $0xe58] sm:$0xff]  ;;  %v3225_v7 = vld [vmem:[%s5656_s5 + $0xd30] sm:$0xff] }
 0xe1d   :  { %v2146_v33 = vadd.f32 %v2144_v1, %v5093_v18  ;;  %v3213_v18 = vld [vmem:[%s5656_s5 + $0xce0] sm:$0xff] }
 0xe1e   :  { %2304 = vmatpush.msra.mxu2 %v3213_v18  ;;  %v3223_v1 = vld [vmem:[%s5656_s5 + $0xd20] sm:$0xff] }
 0xe1f   :  { %v2147_v5 = vmax.f32 %v2146_v33, 0.0  ;;  %v3221_v33 = vld [vmem:[%s5656_s5 + $0xd10] sm:$0xff] }
 0xe20   :  { %2305 = vmatpush.msra.mxu2 %v3212_v56  ;;  %v3253_v56 = vld [vmem:[%s5656_s5 + $0xdf8] sm:$0xff] }
 0xe22   :  { %2306 = vmatpush.msra.mxu2 %v3211_v58  ;;  %v3251_v58 = vld [vmem:[%s5656_s5 + $0xde8] sm:$0xff] }
 0xe24   :  { %2307 = vmatpush.msra.mxu2 %v3210_v61  ;;  %v3249_v61 = vld [vmem:[%s5656_s5 + $0xdd8] sm:$0xff] }
 0xe26   :  { %2308 = vmatpush.msra.mxu2 %v3209_v0  ;;  %v3247_v0 = vld [vmem:[%s5656_s5 + $0xdc8] sm:$0xff] }
 0xe28   :  { %2309 = vmatpush.msra.mxu2 %v3208_v4  ;;  %v3246_v4 = vld [vmem:[%s5656_s5 + $0xdc0] sm:$0xff] }
 0xe2a   :  { %2310 = vmatpush.msra.mxu2 %v3207_v63  ;;  %v3245_v63 = vld [vmem:[%s5656_s5 + $0xdb8] sm:$0xff] }
 0xe2c   :  { %2311 = vmatpush.msra.mxu2 %v3206_v10  ;;  %v3244_v10 = vld [vmem:[%s5656_s5 + $0xdb0] sm:$0xff] }
 0xe2e   :  { %2312 = vmatpush.msra.mxu2 %v3205_v28  ;;  %v3243_v28 = vld [vmem:[%s5656_s5 + $0xda8] sm:$0xff] }
 0xe30   :  { %2313 = vmatpush.msra.mxu2 %v3204_v12  ;;  %v3242_v12 = vld [vmem:[%s5656_s5 + $0xda0] sm:$0xff] }
 0xe32   :  { %2314 = vmatpush.msra.mxu2 %v3203_v37  ;;  %v3241_v37 = vld [vmem:[%s5656_s5 + $0xd98] sm:$0xff] }
 0xe34   :  { %v2184_v26 = vpop.f32.mrf.mxu1  ;;  %2315 = vmatpush.msra.mxu2 %v3202_v13  ;;  %v3239_v13 = vld [vmem:[%s5656_s5 + $0xd88] sm:$0xff] }
 0xe35   :  { %2211 = vmatpush.msrb.mxu3 %v2184_v26  ;;  %v3267_v26 = vld [vmem:[%s5656_s5 + $0xe50] sm:$0xff] }
 0xe36   :  { %3183 = vmatmul.msk.f32.vlgmr.msrb.gmra.mxu3 %vm158_vm0, %v5288_v17  ;;  %2316 = vmatpush.msra.mxu2 %v3201_v15 }
 0xe37   :  { %2246 = vmatpush.msra.mxu3 %v3199_v29 }
 0xe39   :  { %2247 = vmatpush.msra.mxu3 %v3198_v38  ;;  %v3266_v38 = vld [vmem:[%s5656_s5 + $0xe48] sm:$0xff] }
 0xe3b   :  { %2248 = vmatpush.msra.mxu3 %v3197_v30  ;;  %v3264_v30 = vld [vmem:[%s5656_s5 + $0xe38] sm:$0xff] }
 0xe3d   :  { %2249 = vmatpush.msra.mxu3 %v3196_v31  ;;  %v3263_v31 = vld [vmem:[%s5656_s5 + $0xe30] sm:$0xff] }
 0xe3f   :  { %2250 = vmatpush.msra.mxu3 %v3195_v32  ;;  %v3262_v32 = vld [vmem:[%s5656_s5 + $0xe28] sm:$0xff] }
 0xe41   :  { %2251 = vmatpush.msra.mxu3 %v3194_v60  ;;  %v3261_v60 = vld [vmem:[%s5656_s5 + $0xe20] sm:$0xff] }
 0xe43   :  { %2252 = vmatpush.msra.mxu3 %v3193_v34  ;;  %v3260_v34 = vld [vmem:[%s5656_s5 + $0xe18] sm:$0xff] }
 0xe45   :  { %2253 = vmatpush.msra.mxu3 %v3192_v35  ;;  %v3259_v35 = vld [vmem:[%s5656_s5 + $0xe10] sm:$0xff] }
 0xe47   :  { %2254 = vmatpush.msra.mxu3 %v3191_v36  ;;  %v3258_v36 = vld [vmem:[%s5656_s5 + $0xe08] sm:$0xff] }
 0xe49   :  { %2255 = vmatpush.msra.mxu3 %v3190_v62  ;;  %v3257_v62 = vld [vmem:[%s5656_s5 + $0xe00] sm:$0xff] }
 0xe4b   :  { %2256 = vmatpush.msra.mxu3 %v3189_v19 }
 0xe4d   :  { %2257 = vmatpush.msra.mxu3 %v3188_v40 }
 0xe4f   :  { %2258 = vmatpush.msra.mxu3 %v3187_v9 }
 0xe51   :  { %2259 = vmatpush.msra.mxu3 %v3186_v11 }
 0xe53   :  { %2260 = vmatpush.msra.mxu3 %v3185_v42  ;;  %v3234_v42 = vld [vmem:[%s5656_s5 + $0xd78] sm:$0xff] }
 0xe55   :  { %2261 = vmatpush.msra.mxu3 %v3184_v22  ;;  %v3233_v22 = vld [vmem:[%s5656_s5 + $0xd70] sm:$0xff] }
 0xe56   :  { %2262 = vmatmul.f32.vlgmr.msra.gmra.mxu3 %v1937_v25  ;;  %v3232_v25 = vld [vmem:[%s5656_s5 + $0xd68] sm:$0xff] }
 0xe57   :  { %2510 = vmatpush.msrb.mxu3 %v3272_v53  ;;  %v3252_v53 = vld [vmem:[%s5656_s5 + $0xdf0] sm:$0xff] }
 0xe59   :  { %2511 = vmatpush.msrb.mxu3 %v3271_v55  ;;  %v3250_v55 = vld [vmem:[%s5656_s5 + $0xde0] sm:$0xff] }
 0xe5b   :  { %2512 = vmatpush.msrb.mxu3 %v3270_v52  ;;  %v3238_v52 = vld [vmem:[%s5656_s5 + $0xd80] sm:$0xff] }
 0xe5d   :  { %2513 = vmatpush.msrb.mxu3 %v3269_v20  ;;  %v3331_v20 = vld [vmem:[%s5657_s6 + $0x1a] ss:$0 sm:$0xff] }
 0xe5e   :  { %2265 = vmatmul.f32.gmra.mxu3 %v2007_v47  ;;  %v3226_v47 = vld [vmem:[%s5656_s5 + $0xd38] sm:$0xff] }
 0xe5f   :  { %2514 = vmatpush.msrb.mxu3 %v3268_v23 }
 0xe61   :  { %2515 = vmatpush.msrb.mxu3 %v3267_v26 }
 0xe63   :  { %2516 = vmatpush.msrb.mxu3 %v3266_v38 }
 0xe66   :  { %2268 = vmatmul.f32.gmra.mxu3 %v2077_v49  ;;  %v3222_v49 = vld [vmem:[%s5656_s5 + $0xd18] sm:$0xff] }
 0xe6e   :  { %2271 = vmatmul.f32.gmra.mxu3 %v2147_v5  ;;  %v3220_v5 = vld [vmem:[%s5656_s5 + $0xd08] sm:$0xff] }
 0xeb9   :  { %v2213_v14 = vpop.f32.mrf.mxu3 }
 0xeba   :  { %v2214_v50 = vadd.f32 %v3328_v2, %v2213_v14  ;;  %v3240_v2 = vld [vmem:[%s5656_s5 + $0xd90] sm:$0xff] }
 0xebc   :  { %v2216_v21 = vadd.f32 %v2214_v50, %v5282_v16  ;;  %v3265_v16 = vld [vmem:[%s5656_s5 + $0xe40] sm:$0xff]  ;;  %v3330_v50 = vld [vmem:[%s5657_s6 + $0x19] ss:$0 sm:$0xff] }
 0xebd   :  { %2517 = vmatpush.msrb.mxu3 %v3265_v16 }
 0xebe   :  { %v2217_v29 = vmax.f32 %v2216_v21, 0.0 }
 0xebf   :  { %2518 = vmatpush.msrb.mxu3 %v3264_v30 }
 0xec0   :  { %2274 = vmatmul.f32.gmra.mxu3 %v2217_v29 }
 0xec1   :  { %2519 = vmatpush.msrb.mxu3 %v3263_v31 }
 0xec3   :  { %2520 = vmatpush.msrb.mxu3 %v3262_v32 }
 0xec5   :  { %2521 = vmatpush.msrb.mxu3 %v3261_v60  ;;  %v3291_v60 = vld [vmem:[%s5656_s5 + $0xef8] sm:$0xff] }
 0xec7   :  { %2522 = vmatpush.msrb.mxu3 %v3260_v34 }
 0xec9   :  { %2523 = vmatpush.msrb.mxu3 %v3259_v35  ;;  %v3290_v35 = vld [vmem:[%s5656_s5 + $0xef0] sm:$0xff] }
 0xecb   :  { %2524 = vmatpush.msrb.mxu3 %v3258_v36  ;;  %v3289_v36 = vld [vmem:[%s5656_s5 + $0xee8] sm:$0xff] }
 0xecd   :  { %2525 = vmatpush.msrb.mxu3 %v3257_v62  ;;  %v3288_v62 = vld [vmem:[%s5656_s5 + $0xee0] sm:$0xff] }
 0xed9   :  { %v2263_v19 = vpop.f32.mrf.mxu3 }
 0xeda   :  { %v5464_v40 = vadd.f32 %v5461_v39, %v2263_v19  ;;  %v3286_v19 = vld [vmem:[%s5656_s5 + $0xed0] sm:$0xff] }
 0xedc   :  { %2317 = vmatmul.f32.vlgmr.msra.gmra.mxu2 %v5464_v40 }
 0xee1   :  { %v2266_v43 = vpop.f32.mrf.mxu3 }
 0xee2   :  { %v2267_v54 = vadd.f32 %v5461_v39, %v2266_v43  ;;  %v3284_v43 = vld [vmem:[%s5656_s5 + $0xec0] sm:$0xff] }
 0xee9   :  { %v5467_v9 = vpop.f32.mrf.mxu3 }
 0xeea   :  { %v2270_v14 = vadd.f32 %v5461_v39, %v5467_v9  ;;  %v3283_v9 = vld [vmem:[%s5656_s5 + $0xeb8] sm:$0xff] }
 0xef1   :  { %v2272_v11 = vpop.f32.mrf.mxu3 }
 0xef2   :  { %v5470_v3 = vadd.f32 %v5461_v39, %v2272_v11  ;;  %v3281_v11 = vld [vmem:[%s5656_s5 + $0xea8] sm:$0xff] }
 0xef4   :  { %2526 = vmatmul.f32.vlgmr.msrb.gmra.mxu3 %v5470_v3 }
 0xf43   :  { %v2275_v31 = vpop.f32.mrf.mxu3 }
 0xf5f   :  { %v2318_v24 = vpop.f32.mrf.mxu2 }
 0xf60   :  { %2345 = vmatpush.msra.mxu0 %v2318_v24  ;;  %v3280_v24 = vld [vmem:[%s5656_s5 + $0xea0] sm:$0xff] }
 0xf61   :  { %3218 = vmatmul.msk.f32.vlgmr.msra.gmra.mxu0 %vm158_vm0, %v5099_v46  ;;  %v3229_v46 = vld [vmem:[%s5656_s5 + $0xd50] sm:$0xff] }
 0xf62   :  { %2370 = vmatpush.msrb.mxu0 %v3234_v42  ;;  %v3279_v42 = vld [vmem:[%s5656_s5 + $0xe98] sm:$0xff] }
 0xf64   :  { %2371 = vmatpush.msrb.mxu0 %v3233_v22  ;;  %v3278_v22 = vld [vmem:[%s5656_s5 + $0xe90] sm:$0xff] }
 0xf66   :  { %2372 = vmatpush.msrb.mxu0 %v3232_v25  ;;  %v3277_v25 = vld [vmem:[%s5656_s5 + $0xe88] sm:$0xff] }
 0xf68   :  { %2373 = vmatpush.msrb.mxu0 %v3231_v59  ;;  %v3276_v59 = vld [vmem:[%s5656_s5 + $0xe80] sm:$0xff] }
 0xf6a   :  { %2374 = vmatpush.msrb.mxu0 %v3230_v27  ;;  %v2276_v27 = vadd.f32 %v5461_v39, %v2275_v31 }
 0xf6c   :  { %2375 = vmatpush.msrb.mxu0 %v3229_v46  ;;  %v3332_v46 = vld [vmem:[%s5657_s6 + $0x1b] ss:$0 sm:$0xff] }
 0xf6e   :  { %2376 = vmatpush.msrb.mxu0 %v3228_v44 }
 0xf70   :  { %2377 = vmatpush.msrb.mxu0 %v3227_v45 }
 0xf72   :  { %2378 = vmatpush.msrb.mxu0 %v3226_v47 }
 0xf74   :  { %2379 = vmatpush.msrb.mxu0 %v3225_v7 }
 0xf76   :  { %2380 = vmatpush.msrb.mxu0 %v3224_v48  ;;  %v3333_v48 = vld [vmem:[%s5657_s6 + $0x1c] ss:$0 sm:$0xff] }
 0xf77   :  { %v2527_v34 = vpop.f32.mrf.mxu3 }
 0xf78   :  { %2381 = vmatpush.msrb.mxu0 %v3223_v1 }
 0xf7a   :  { %2382 = vmatpush.msrb.mxu0 %v3222_v49 }
 0xf7c   :  { %2383 = vmatpush.msrb.mxu0 %v3221_v33 }
 0xf7e   :  { %2384 = vmatpush.msrb.mxu0 %v3220_v5 }
 0xf80   :  { %2385 = vmatpush.msrb.mxu0 %v3219_v57 }
 0xf81   :  { %2386 = vmatmul.f32.vlgmr.msrb.gmra.mxu0 %v2267_v54 }
 0xfde   :  { %v2347_v51 = vpop.f32.mrf.mxu0 }
 0xfdf   :  { %v2348_v15 = vadd.f32 %v3330_v50, %v2347_v51  ;;  %v3334_v51 = vld [vmem:[%s5657_s6 + $0x1d] ss:$0 sm:$0xff] }
 0xfe1   :  { %v2350_v23 = vadd.f32 %v2348_v15, %v5464_v40  ;;  %v3285_v40 = vld [vmem:[%s5656_s5 + $0xec8] sm:$0xff] }
 0xfe3   :  { %v2351_v38 = vmax.f32 %v2350_v23, 0.0 }
 0xffe   :  { %v2387_v18 = vpop.f32.mrf.mxu0 }
 0xfff   :  { %2414 = vmatpush.msrb.mxu1 %v2387_v18 }
0x1000   :  { %3237 = vmatmul.msk.f32.vlgmr.msrb.gmra.mxu1 %vm158_vm0, %v5160_v8  ;;  %v3248_v8 = vld [vmem:[%s5656_s5 + $0xdd0] sm:$0xff] }
0x1001   :  { %2440 = vmatpush.msra.mxu1 %v3253_v56 }
0x1003   :  { %2441 = vmatpush.msra.mxu1 %v3252_v53 }
0x1005   :  { %2442 = vmatpush.msra.mxu1 %v3251_v58 }
0x1007   :  { %2443 = vmatpush.msra.mxu1 %v3250_v55 }
0x1009   :  { %2444 = vmatpush.msra.mxu1 %v3249_v61 }
0x100b   :  { %2445 = vmatpush.msra.mxu1 %v3248_v8 }
0x100d   :  { %2446 = vmatpush.msra.mxu1 %v3247_v0 }
0x100f   :  { %2447 = vmatpush.msra.mxu1 %v3246_v4 }
0x1011   :  { %2448 = vmatpush.msra.mxu1 %v3245_v63 }
0x1013   :  { %2449 = vmatpush.msra.mxu1 %v3244_v10 }
0x1015   :  { %2450 = vmatpush.msra.mxu1 %v3243_v28 }
0x1017   :  { %2451 = vmatpush.msra.mxu1 %v3242_v12 }
0x1019   :  { %2452 = vmatpush.msra.mxu1 %v3241_v37 }
0x101b   :  { %2453 = vmatpush.msra.mxu1 %v3240_v2 }
0x101d   :  { %2454 = vmatpush.msra.mxu1 %v3239_v13 }
0x101f   :  { %2455 = vmatpush.msra.mxu1 %v3238_v52 }
0x1020   :  { %2456 = vmatmul.f32.vlgmr.msra.gmra.mxu1 %v2270_v14 }
0x107d   :  { %v2416_v21 = vpop.f32.mrf.mxu1 }
0x107e   :  { %v2417_v26 = vadd.f32 %v3331_v20, %v2416_v21 }
0x1080   :  { %v2419_v29 = vadd.f32 %v2417_v26, %v2267_v54 }
0x1082   :  { %v2420_v16 = vmax.f32 %v2419_v29, 0.0 }
0x1084   :  { %v2421_v30 = vadd.f32 %v2420_v16, %v2351_v38 }
0x109d   :  { %v2457_v32 = vpop.f32.mrf.mxu1 }
0x109e   :  { %2484 = vmatpush.msrb.mxu2 %v2457_v32 }
0x109f   :  { %3256 = vmatmul.msk.f32.vlgmr.msrb.gmra.mxu2 %vm158_vm0, %v5222_v41  ;;  %v3287_v41 = vld [vmem:[%s5656_s5 + $0xed8] sm:$0xff] }
0x10a0   :  { %2554 = vmatpush.msra.mxu2 %v2527_v34 }
0x10a2   :  { %2580 = vmatpush.msrb.mxu2 %v3291_v60 }
0x10a4   :  { %2581 = vmatpush.msrb.mxu2 %v3290_v35 }
0x10a6   :  { %2582 = vmatpush.msrb.mxu2 %v3289_v36 }
0x10a7   :  { %3275 = vmatmul.msk.f32.vlgmr.msra.gmra.mxu2 %vm158_vm0, %v5241_v6  ;;  %v3282_v6 = vld [vmem:[%s5656_s5 + $0xeb0] sm:$0xff] }
0x10a8   :  { %2583 = vmatpush.msrb.mxu2 %v3288_v62 }
0x10aa   :  { %2584 = vmatpush.msrb.mxu2 %v3287_v41 }
0x10ac   :  { %2585 = vmatpush.msrb.mxu2 %v3286_v19 }
0x10ae   :  { %2586 = vmatpush.msrb.mxu2 %v3285_v40 }
0x10b0   :  { %2587 = vmatpush.msrb.mxu2 %v3284_v43 }
0x10b2   :  { %2588 = vmatpush.msrb.mxu2 %v3283_v9 }
0x10b4   :  { %2589 = vmatpush.msrb.mxu2 %v3282_v6 }
0x10b6   :  { %2590 = vmatpush.msrb.mxu2 %v3281_v11 }
0x10b8   :  { %2591 = vmatpush.msrb.mxu2 %v3280_v24 }
0x10ba   :  { %2592 = vmatpush.msrb.mxu2 %v3279_v42 }
0x10bc   :  { %2593 = vmatpush.msrb.mxu2 %v3278_v22 }
0x10be   :  { %2594 = vmatpush.msrb.mxu2 %v3277_v25 }
0x10c0   :  { %2595 = vmatpush.msrb.mxu2 %v3276_v59 }
0x10c1   :  { %2596 = vmatmul.f32.vlgmr.msrb.gmra.mxu2 %v2276_v27 }
0x1122   :  { %v2486_v44 = vpop.f32.mrf.mxu2 }
0x1123   :  { %v2487_v45 = vadd.f32 %v3332_v46, %v2486_v44 }
0x1125   :  { %v2489_v47 = vadd.f32 %v2487_v45, %v2270_v14 }
0x1127   :  { %v2490_v7 = vmax.f32 %v2489_v47, 0.0 }
0x1129   :  { %v2491_v1 = vadd.f32 %v2490_v7, %v2421_v30 }
0x112a   :  { %v2556_v49 = vpop.f32.mrf.mxu2 }
0x112b   :  { %v2557_v33 = vadd.f32 %v3333_v48, %v2556_v49 }
0x112d   :  { %v2559_v5 = vadd.f32 %v2557_v33, %v5470_v3 }
0x112f   :  { %v2560_v39 = vmax.f32 %v2559_v5, 0.0 }
0x1131   :  { %v2561_v57 = vadd.f32 %v2560_v39, %v2491_v1 }
0x1144   :  { %v2597_v54 = vpop.f32.mrf.mxu2 }
0x1145   :  { %2624 = vmatpush.msra.mxu0 %v2597_v54 }
0x1146   :  { %3294 = vmatmul.msk.f32.vlgmr.msra.gmra.mxu0 %vm158_vm0, %v5288_v17 }
0x11c3   :  { %v2626_v18 = vpop.f32.mrf.mxu0 }
0x11c4   :  { %v2627_v56 = vadd.f32 %v3334_v51, %v2626_v18 }
0x11c6   :  { %v2629_v53 = vadd.f32 %v2627_v56, %v2276_v27 }
0x11c8   :  { %v2630_v58 = vmax.f32 %v2629_v53, 0.0 }
0x11ca   :  { %v2631_v3 = vadd.f32 %v2630_v58, %v2561_v57 }
0x11cc   :  { %v2632_v55 = vadd.f32 1e-08, %v2631_v3 }
0x11ce   :  { %2633 = vst [vmem:[#allocation7] sm:$0xff] %v2632_v55 }
0x11cf   :  { %2644 = dma.vmem_to_hbm [thread:$0]  %s2640_s0, 128, %s2642_s16, [#allocation5]  }
0x11d0   :  { %3373 = dma.done.wait [#allocation5], 128  }
0x11d1   :  { %3374 = vsyncadd [#allocation5], 4294967168 }
0x11d2   :  { %2649 = vsyncpa [#allocation5], 1 }
0x11d3   :  { %2650 = vsyncpa [#allocation6], 1 }

</bundles_post_ra>
